<compile_context>
chip_gen: v5e
topology: v5e:2x2
jax: 0.10.0
libtpu: 0.0.40
codegen_flags: <defaults>
</compile_context>

<pallas_src>
import numpy as np
import jax
import jax.numpy as jnp
from jax import lax
from jax.experimental import pallas as pl
from jax.experimental.pallas import tpu as pltpu

EPS = 0.1
THRESH = 0.1
MAX_ITER = 100
CHECK_EVERY = 5      # amortized convergence check (must divide MAX_ITER)
LANES = 128          # graphs per grid step (vreg lane width)


# ----------------------------- Pallas kernel ------------------------------ #
def gtot_kernel(wn_ref, a_ref, mask_ref, cost_ref):
    """One grid step = one tile of LANES graphs, batch packed on the lane axis.

    NOTE: the `err < thresh` early exit is coupled across the graphs of one tile
    (max over the tile), identical to the PyTorch batch-coupled exit when B <= LANES;
    for B > LANES tiles terminate independently (still within the thresh tolerance).
    """
    N = a_ref.shape[0]
    L = a_ref.shape[2]
    eps = jnp.float32(EPS)
    inv_eps = jnp.float32(1.0 / EPS)

    wn = wn_ref[0]                                    # scalar weight norm (SMEM, f32)
    A_in = a_ref[...].astype(jnp.float32)             # (N, N, L)  [i, j, b]
    mask = mask_ref[...].astype(jnp.float32)          # (N, L)     [node, b]

    # ---- GTOT.cost_matrix_from_weight: (wn + ones-with-zero-diag) * mask_i*mask_j ----
    rows = lax.broadcasted_iota(jnp.int32, (N, N), 0)
    cols = lax.broadcasted_iota(jnp.int32, (N, N), 1)
    notdiag = jnp.where(rows == cols, jnp.float32(0.0), jnp.float32(1.0))   # (N, N)
    mask_mat = mask[:, None, :] * mask[None, :, :]                          # (N, N, L)
    cos_dist = (wn + notdiag)[:, :, None] * mask_mat
    # `sensible_normalize` discards its result in the reference -> faithful no-op.

    # ---- got_dist: A = mask_matrix * A ; drop masked-but-disconnected rows ----
    A = mask_mat * A_in                               # exactly 0/1
    row_sum = jnp.sum(A, axis=1)                      # (N, L)  sum over j
    mask_new = jnp.where(row_sum + (1.0 - mask) == 0.0, 0.0, mask)

    # ---- GTOT.forward with (C=cos_dist, A=A, mask=mask_new) ----
    C = A * cos_dist                                  # C = A * C
    # Fold masked_fill((1-A).bool(), 0) into the cost ONCE: where A==0 the exponent is
    # ~-1e5, so exp() underflows to exactly 0.0 in f32 (no per-iteration select/bool buf).
    neg_C_over_eps = jnp.where(A == 0.0, jnp.float32(-1.0e5), -C * inv_eps)

    cnt = jnp.sum(mask_new, axis=0, keepdims=True)    # (1, L) valid nodes per graph
    inv_cnt = jnp.where(cnt > 0.0, 1.0 / cnt, 0.0)    # guard all-padding graphs
    mu = mask_new * inv_cnt                           # (N, L); nu == mu
    eps_log_mu = eps * jnp.log(mu + 1e-8)             # hoisted out of the loop
    eps_log_nu = eps_log_mu

    def exp_M(u, v):
        # S[i,j,b] = (-C[i,j,b] + u[i,b] + v[j,b]) / eps   (A-mask already folded in)
        return jnp.exp(neg_C_over_eps + (u[:, None, :] + v[None, :, :]) * inv_eps)

    def one_step(u, v, done):
        u1 = u
        # TODO(synk): for N >= 128 these reductions could be MXU matmuls against a
        # ones vector (frees the XLU); for small N the XLU reduce is fine.
        Ku = exp_M(u, v)
        un = eps_log_mu - eps * jnp.log(1e-8 + jnp.sum(Ku, axis=1)) + u   # sum over j
        un = mask_new * un
        Kv = exp_M(un, v)
        vn = eps_log_nu - eps * jnp.log(1e-8 + jnp.sum(Kv, axis=0)) + v   # sum over i
        vn = mask_new * vn
        err = jnp.max(jnp.sum(jnp.abs(un - u1), axis=0, keepdims=True))
        # Exact per-iteration early-exit semantics without a scalar branch every step:
        # once converged, freeze u/v via a select; the while_loop branch fires once
        # per CHECK_EVERY steps.
        u_out = jnp.where(done, u, un)
        v_out = jnp.where(done, v, vn)
        return u_out, v_out, jnp.logical_or(done, err < THRESH)

    def cond_fn(carry):
        it, _, _, done = carry
        return jnp.logical_and(it < MAX_ITER, jnp.logical_not(done))

    def body_fn(carry):
        it, u, v, done = carry
        for _ in range(CHECK_EVERY):          # unrolled group of Sinkhorn steps
            u, v, done = one_step(u, v, done)
        return it + CHECK_EVERY, u, v, done

    u0 = jnp.zeros((N, L), jnp.float32)
    _, u, v, _ = lax.while_loop(
        cond_fn, body_fn,
        (jnp.array(0, jnp.int32), u0, u0, jnp.array(False)))

    pi = exp_M(u, v)
    per_j = jnp.sum(pi * C, axis=0)                           # (N, L)
    cost_ref[...] = jnp.sum(per_j, axis=0, keepdims=True)     # (1, L) lane-dense


def gtot_sinkhorn_pallas(weight_norm, A_dense, mask_bool):
    """Returns per-graph OT cost wd, shape (B,)."""
    B, N, _ = A_dense.shape
    B_pad = ((B + LANES - 1) // LANES) * LANES

    # batch-on-lanes layout; bf16 0/1 inputs halve HBM->VMEM DMA bytes for A.
    A_t = jnp.pad(jnp.transpose(A_dense.astype(jnp.bfloat16), (1, 2, 0)),
                  ((0, 0), (0, 0), (0, B_pad - B)))            # (N, N, B_pad)
    m_t = jnp.pad(jnp.transpose(mask_bool.astype(jnp.bfloat16), (1, 0)),
                  ((0, 0), (0, B_pad - B)))                    # (N, B_pad)
    wn = jnp.reshape(weight_norm, (1,)).astype(jnp.float32)

    out = pl.pallas_call(
        gtot_kernel,
        out_shape=jax.ShapeDtypeStruct((1, B_pad), jnp.float32),
        grid_spec=pltpu.PrefetchScalarGridSpec(
            num_scalar_prefetch=0,
            grid=(B_pad // LANES,),                            # tile the batch
            in_specs=[
                pl.BlockSpec(memory_space=pltpu.MemorySpace.SMEM),   # weight_norm scalar
                pl.BlockSpec((N, N, LANES), lambda g: (0, 0, g)),    # adjacency tile
                pl.BlockSpec((N, LANES), lambda g: (0, g)),          # mask tile
            ],
            out_specs=pl.BlockSpec((1, LANES), lambda g: (0, g)),    # lane-dense cost
        ),
        compiler_params=pltpu.CompilerParams(
            dimension_semantics=("parallel",),    # shard batch tiles across cores (v7x)
            vmem_limit_bytes=64 * 1024 * 1024,    # tiles sized well under v7x 64 MiB VMEM
        ),
    )(wn, A_t, m_t)
    return out[0, :B]


# ------------------------- pure-JAX reference ------------------------------ #
def gtot_sinkhorn_ref(weight_norm, A_dense, mask_bool):
    wn = jnp.float32(weight_norm)
    mask = mask_bool.astype(jnp.float32)
    A_in = A_dense.astype(jnp.float32)
    B, N, _ = A_in.shape
    mask_mat = mask[:, :, None] * mask[:, None, :]
    notdiag = 1.0 - jnp.eye(N, dtype=jnp.float32)
    cos_dist = (wn + notdiag)[None] * mask_mat
    A = mask_mat * A_in
    mask_new = jnp.where((jnp.sum(A, -1) + (1.0 - mask)) == 0.0, 0.0, mask)
    C = A * cos_dist
    mu = mask_new * (1.0 / jnp.sum(mask_new, axis=1, keepdims=True))
    nu = mu
    kill = (1.0 - A) != 0.0

    def exp_M(u, v):
        return jnp.where(kill, 0.0, jnp.exp((-C + u[:, :, None] + v[:, None, :]) / EPS))

    def cond_fn(c):
        i, _, _, err = c
        return jnp.logical_and(i < MAX_ITER, err >= THRESH)

    def body_fn(c):
        i, u, v, _ = c
        u1 = u
        u = EPS * (jnp.log(mu + 1e-8) - jnp.log(1e-8 + jnp.sum(exp_M(u, v), -1))) + u
        u = mask_new * u
        v = EPS * (jnp.log(nu + 1e-8) - jnp.log(1e-8 + jnp.sum(exp_M(u, v), -2))) + v
        v = mask_new * v
        err = jnp.max(jnp.sum(jnp.abs(u - u1), axis=-1))
        return (i + 1, u, v, err)

    _, u, v, _ = lax.while_loop(
        cond_fn, body_fn,
        (jnp.array(0, jnp.int32), jnp.zeros_like(mu), jnp.zeros_like(nu),
         jnp.array(jnp.inf, jnp.float32)))
    pi = exp_M(u, v)
    return jnp.sum(pi * C, axis=(-2, -1))


# ------------------------ module-level forward glue ------------------------ #
def gtot_regularization_forward(weight_norm, A_dense, mask_bool,
                                layer_feats_src, layer_feats_tgt,
                                sinkhorn_fn):
    output = jnp.float32(0.0)
    for _f_s, _f_t in zip(layer_feats_src, layer_feats_tgt):
        # order=1 -> cost comes from cost_matrix_from_weight; features unused.
        wd = sinkhorn_fn(weight_norm, A_dense, mask_bool)   # (B,)
        twd = 0.5 * jnp.mean(wd)
        output = output + jnp.sum(twd)
    return output


if __name__ == "__main__":
    key = jax.random.PRNGKey(0)
    k1, k2, k3, k4, k5 = jax.random.split(key, 5)

    # --- synthetic "model" parameters (deterministic) for model_norm() ---
    params = {
        "gnn.conv1.weight": jax.random.normal(k3, (16, 16), jnp.float32),
        "gnn.conv2.weight": jax.random.normal(k4, (16, 16), jnp.float32),
        "graph_pred_linear.weight": jax.random.normal(k5, (16, 4), jnp.float32),  # excluded
    }
    tot_sum, tot_cnt = 0.0, 0.0
    for name, p in params.items():
        if "graph_pred_linear" in name:
            continue
        tot_sum = tot_sum + jnp.sum(p)
        tot_cnt = tot_cnt + p.size
    weight_norm = (tot_sum / tot_cnt).astype(jnp.float32)

    # --- synthetic batched graph: 2 graphs with 6 and 8 nodes, D=32 features ---
    num_nodes = [6, 8]
    B, N, D = 2, max(num_nodes), 32
    total_nodes = sum(num_nodes)
    batch_vec = np.array(sum([[b] * n for b, n in enumerate(num_nodes)], []))

    # ring edges per graph (both directions) — PyG edge_index style
    edges, offset = [], 0
    for n in num_nodes:
        for i in range(n):
            j = (i + 1) % n
            edges.append((offset + i, offset + j))
            edges.append((offset + j, offset + i))
        offset += n
    edge_index = np.array(edges, dtype=np.int64).T
    # add_remaining_self_loops
    self_loops = np.stack([np.arange(total_nodes), np.arange(total_nodes)])
    edge_index = np.concatenate([edge_index, self_loops], axis=1)

    # to_dense_batch mask + to_dense_adj
    counts = np.bincount(batch_vec, minlength=B)
    offsets = np.concatenate([[0], np.cumsum(counts)[:-1]])
    mask_np = np.zeros((B, N), dtype=bool)
    for b in range(B):
        mask_np[b, :counts[b]] = True
    A_np = np.zeros((B, N, N), dtype=np.float32)
    for e in range(edge_index.shape[1]):
        s, t = edge_index[0, e], edge_index[1, e]
        b = batch_vec[s]
        A_np[b, s - offsets[b], t - offsets[b]] = 1.0

    A_dense = jnp.asarray(A_np)
    mask_bool = jnp.asarray(mask_np)

    # two layer-output pairs (features don't affect the math for order=1)
    f_src = [jax.random.normal(k1, (total_nodes, D), jnp.float32)] * 2
    f_tgt = [jax.random.normal(k2, (total_nodes, D), jnp.float32)] * 2

    out_pallas = gtot_regularization_forward(
        weight_norm, A_dense, mask_bool, f_src, f_tgt, gtot_sinkhorn_pallas)
    out_pallas = jax.block_until_ready(out_pallas)

    out_ref = gtot_regularization_forward(
        weight_norm, A_dense, mask_bool, f_src, f_tgt, gtot_sinkhorn_ref)
    out_ref = jax.block_until_ready(out_ref)

    assert np.isfinite(np.asarray(out_pallas)).all()
    assert np.allclose(np.asarray(out_pallas), np.asarray(out_ref),
                       rtol=5e-4, atol=1e-5), (out_pallas, out_ref)
    print("KERNEL_OK")
</pallas_src>

<mosaic_0001>
module attributes {stable_mosaic.version = 11 : i64} {
  func.func @gtot_kernel(%arg0: i32, %arg1: memref<1xf32, #tpu.memory_space<smem>>, %arg2: memref<8x8x128xbf16, #tpu.memory_space<vmem>>, %arg3: memref<8x128xbf16, #tpu.memory_space<vmem>>, %arg4: memref<1x128xf32, #tpu.memory_space<vmem>>) attributes {dimension_semantics = [#tpu.dimension_semantics<parallel>], iteration_bounds = array<i64: 1>, scalar_prefetch = 0 : i64, scratch_operands = 0 : i64, tpu.core_type = #tpu.core_type<tc>, window_params = [{transform_indices = @transform_0, window_bounds = array<i64: 1>}, {transform_indices = @transform_1, window_bounds = array<i64: 8, 8, 128>}, {transform_indices = @transform_2, window_bounds = array<i64: 8, 128>}, {transform_indices = @transform_3, window_bounds = array<i64: 1, 128>}]} {
    %c0 = arith.constant 0 : index
    %0 = memref.load %arg1[%c0] : memref<1xf32, #tpu.memory_space<smem>>
    %c0_0 = arith.constant 0 : index
    %c0_1 = arith.constant 0 : index
    %c0_2 = arith.constant 0 : index
    %1 = vector.load %arg2[%c0_0, %c0_1, %c0_2] : memref<8x8x128xbf16, #tpu.memory_space<vmem>>, vector<8x8x128xbf16>
    %2 = arith.extf %1 : vector<8x8x128xbf16> to vector<8x8x128xf32>
    %c0_3 = arith.constant 0 : index
    %c0_4 = arith.constant 0 : index
    %3 = vector.load %arg3[%c0_3, %c0_4] : memref<8x128xbf16, #tpu.memory_space<vmem>>, vector<8x128xbf16>
    %4 = arith.extf %3 : vector<8x128xbf16> to vector<8x128xf32>
    %5 = tpu.iota {dimensions = array<i32: 0>} : vector<8x8xi32>
    %6 = tpu.iota {dimensions = array<i32: 1>} : vector<8x8xi32>
    %7 = arith.cmpi eq, %5, %6 : vector<8x8xi32>
    %cst = arith.constant 0.000000e+00 : f32
    %cst_5 = arith.constant 1.000000e+00 : f32
    %8 = vector.broadcast %cst : f32 to vector<8x8xf32>
    %9 = vector.broadcast %cst_5 : f32 to vector<8x8xf32>
    %10 = arith.select %7, %8, %9 : vector<8x8xi1>, vector<8x8xf32>
    %11 = vector.shape_cast %4 : vector<8x128xf32> to vector<8x1x128xf32>
    %12 = vector.shape_cast %4 : vector<8x128xf32> to vector<1x8x128xf32>
    %13 = vector.broadcast %11 : vector<8x1x128xf32> to vector<8x8x128xf32>
    %14 = vector.broadcast %12 : vector<1x8x128xf32> to vector<8x8x128xf32>
    %15 = arith.mulf %13, %14 : vector<8x8x128xf32>
    %16 = vector.broadcast %0 : f32 to vector<8x8xf32>
    %17 = arith.addf %16, %10 : vector<8x8xf32>
    %18 = vector.shape_cast %17 : vector<8x8xf32> to vector<8x8x1xf32>
    %19 = vector.broadcast %18 : vector<8x8x1xf32> to vector<8x8x128xf32>
    %20 = arith.mulf %19, %15 : vector<8x8x128xf32>
    %21 = arith.mulf %15, %2 : vector<8x8x128xf32>
    %cst_6 = arith.constant dense<0.000000e+00> : vector<8x128xf32>
    %22 = vector.multi_reduction <add>, %21, %cst_6 [1] : vector<8x8x128xf32> to vector<8x128xf32>
    %cst_7 = arith.constant 1.000000e+00 : f32
    %23 = vector.broadcast %cst_7 : f32 to vector<8x128xf32>
    %24 = arith.subf %23, %4 : vector<8x128xf32>
    %25 = arith.addf %22, %24 : vector<8x128xf32>
    %cst_8 = arith.constant 0.000000e+00 : f32
    %26 = vector.broadcast %cst_8 : f32 to vector<8x128xf32>
    %27 = arith.cmpf oeq, %25, %26 : vector<8x128xf32>
    %cst_9 = arith.constant 0.000000e+00 : f32
    %28 = vector.broadcast %cst_9 : f32 to vector<8x128xf32>
    %29 = arith.select %27, %28, %4 : vector<8x128xi1>, vector<8x128xf32>
    %30 = arith.mulf %21, %20 : vector<8x8x128xf32>
    %cst_10 = arith.constant 0.000000e+00 : f32
    %31 = vector.broadcast %cst_10 : f32 to vector<8x8x128xf32>
    %32 = arith.cmpf oeq, %21, %31 : vector<8x8x128xf32>
    %cst_11 = arith.constant 0.000000e+00 : f32
    %33 = vector.broadcast %cst_11 : f32 to vector<8x8x128xf32>
    %34 = arith.subf %33, %30 : vector<8x8x128xf32>
    %cst_12 = arith.constant 1.000000e+01 : f32
    %35 = vector.broadcast %cst_12 : f32 to vector<8x8x128xf32>
    %36 = arith.mulf %34, %35 : vector<8x8x128xf32>
    %cst_13 = arith.constant -1.000000e+05 : f32
    %37 = vector.broadcast %cst_13 : f32 to vector<8x8x128xf32>
    %38 = arith.select %32, %37, %36 : vector<8x8x128xi1>, vector<8x8x128xf32>
    %cst_14 = arith.constant dense<0.000000e+00> : vector<128xf32>
    %39 = vector.multi_reduction <add>, %29, %cst_14 [0] : vector<8x128xf32> to vector<128xf32>
    %40 = vector.shape_cast %39 : vector<128xf32> to vector<1x128xf32>
    %cst_15 = arith.constant 0.000000e+00 : f32
    %41 = vector.broadcast %cst_15 : f32 to vector<1x128xf32>
    %42 = arith.cmpf ogt, %40, %41 : vector<1x128xf32>
    %cst_16 = arith.constant 1.000000e+00 : f32
    %43 = vector.broadcast %cst_16 : f32 to vector<1x128xf32>
    %44 = arith.divf %43, %40 : vector<1x128xf32>
    %cst_17 = arith.constant 0.000000e+00 : f32
    %45 = vector.broadcast %cst_17 : f32 to vector<1x128xf32>
    %46 = arith.select %42, %44, %45 : vector<1x128xi1>, vector<1x128xf32>
    %47 = vector.broadcast %46 : vector<1x128xf32> to vector<8x128xf32>
    %48 = arith.mulf %29, %47 : vector<8x128xf32>
    %cst_18 = arith.constant 9.99999993E-9 : f32
    %49 = vector.broadcast %cst_18 : f32 to vector<8x128xf32>
    %50 = arith.addf %48, %49 : vector<8x128xf32>
    %51 = math.log %50 : vector<8x128xf32>
    %cst_19 = arith.constant 1.000000e-01 : f32
    %52 = vector.broadcast %cst_19 : f32 to vector<8x128xf32>
    %53 = arith.mulf %52, %51 : vector<8x128xf32>
    %cst_20 = arith.constant 0.000000e+00 : f32
    %54 = vector.broadcast %cst_20 : f32 to vector<8x128xf32>
    %cst_21 = arith.constant 1.000000e+01 : f32
    %cst_22 = arith.constant 1.000000e-01 : f32
    %c0_i32 = arith.constant 0 : i32
    %false = arith.constant false
    %55:4 = scf.while (%arg5 = %c0_i32, %arg6 = %54, %arg7 = %54, %arg8 = %false) : (i32, vector<8x128xf32>, vector<8x128xf32>, i1) -> (i32, vector<8x128xf32>, vector<8x128xf32>, i1) {
      %c100_i32 = arith.constant 100 : i32
      %70 = arith.cmpi slt, %arg5, %c100_i32 : i32
      %true = arith.constant true
      %71 = arith.xori %arg8, %true : i1
      %72 = arith.andi %70, %71 : i1
      scf.condition(%72) %arg5, %arg6, %arg7, %arg8 : i32, vector<8x128xf32>, vector<8x128xf32>, i1
    } do {
    ^bb0(%arg5: i32, %arg6: vector<8x128xf32>, %arg7: vector<8x128xf32>, %arg8: i1):
      %70 = vector.shape_cast %arg6 : vector<8x128xf32> to vector<8x1x128xf32>
      %71 = vector.shape_cast %arg7 : vector<8x128xf32> to vector<1x8x128xf32>
      %72 = vector.broadcast %70 : vector<8x1x128xf32> to vector<8x8x128xf32>
      %73 = vector.broadcast %71 : vector<1x8x128xf32> to vector<8x8x128xf32>
      %74 = arith.addf %72, %73 : vector<8x8x128xf32>
      %75 = vector.broadcast %cst_21 : f32 to vector<8x8x128xf32>
      %76 = arith.mulf %74, %75 : vector<8x8x128xf32>
      %77 = arith.addf %38, %76 : vector<8x8x128xf32>
      %78 = math.exp %77 : vector<8x8x128xf32>
      %cst_28 = arith.constant dense<0.000000e+00> : vector<8x128xf32>
      %79 = vector.multi_reduction <add>, %78, %cst_28 [1] : vector<8x8x128xf32> to vector<8x128xf32>
      %cst_29 = arith.constant 9.99999993E-9 : f32
      %80 = vector.broadcast %cst_29 : f32 to vector<8x128xf32>
      %81 = arith.addf %80, %79 : vector<8x128xf32>
      %82 = math.log %81 : vector<8x128xf32>
      %83 = vector.broadcast %cst_22 : f32 to vector<8x128xf32>
      %84 = arith.mulf %83, %82 : vector<8x128xf32>
      %85 = arith.subf %53, %84 : vector<8x128xf32>
      %86 = arith.addf %85, %arg6 : vector<8x128xf32>
      %87 = arith.mulf %29, %86 : vector<8x128xf32>
      %88 = vector.shape_cast %87 : vector<8x128xf32> to vector<8x1x128xf32>
      %89 = vector.shape_cast %arg7 : vector<8x128xf32> to vector<1x8x128xf32>
      %90 = vector.broadcast %88 : vector<8x1x128xf32> to vector<8x8x128xf32>
      %91 = vector.broadcast %89 : vector<1x8x128xf32> to vector<8x8x128xf32>
      %92 = arith.addf %90, %91 : vector<8x8x128xf32>
      %93 = vector.broadcast %cst_21 : f32 to vector<8x8x128xf32>
      %94 = arith.mulf %92, %93 : vector<8x8x128xf32>
      %95 = arith.addf %38, %94 : vector<8x8x128xf32>
      %96 = math.exp %95 : vector<8x8x128xf32>
      %cst_30 = arith.constant dense<0.000000e+00> : vector<8x128xf32>
      %97 = vector.multi_reduction <add>, %96, %cst_30 [0] : vector<8x8x128xf32> to vector<8x128xf32>
      %cst_31 = arith.constant 9.99999993E-9 : f32
      %98 = vector.broadcast %cst_31 : f32 to vector<8x128xf32>
      %99 = arith.addf %98, %97 : vector<8x128xf32>
      %100 = math.log %99 : vector<8x128xf32>
      %101 = vector.broadcast %cst_22 : f32 to vector<8x128xf32>
      %102 = arith.mulf %101, %100 : vector<8x128xf32>
      %103 = arith.subf %53, %102 : vector<8x128xf32>
      %104 = arith.addf %103, %arg7 : vector<8x128xf32>
      %105 = arith.mulf %29, %104 : vector<8x128xf32>
      %106 = arith.subf %87, %arg6 : vector<8x128xf32>
      %107 = math.absf %106 : vector<8x128xf32>
      %cst_32 = arith.constant dense<0.000000e+00> : vector<128xf32>
      %108 = vector.multi_reduction <add>, %107, %cst_32 [0] : vector<8x128xf32> to vector<128xf32>
      %109 = vector.shape_cast %108 : vector<128xf32> to vector<1x128xf32>
      %110 = vector.shape_cast %109 : vector<1x128xf32> to vector<1x1x128xf32>
      %cst_33 = arith.constant dense<0xFF800000> : vector<1xf32>
      %111 = vector.multi_reduction <maximumf>, %110, %cst_33 [1, 2] : vector<1x1x128xf32> to vector<1xf32>
      %112 = vector.shape_cast %111 : vector<1xf32> to vector<1x1x1xf32>
      %113 = vector.extract %112[0, 0, 0] : f32 from vector<1x1x1xf32>
      %114 = arith.select %arg8, %arg6, %87 : vector<8x128xf32>
      %115 = arith.select %arg8, %arg7, %105 : vector<8x128xf32>
      %cst_34 = arith.constant 1.000000e-01 : f32
      %116 = arith.cmpf olt, %113, %cst_34 : f32
      %117 = arith.ori %arg8, %116 : i1
      %118 = vector.shape_cast %114 : vector<8x128xf32> to vector<8x1x128xf32>
      %119 = vector.shape_cast %115 : vector<8x128xf32> to vector<1x8x128xf32>
      %120 = vector.broadcast %118 : vector<8x1x128xf32> to vector<8x8x128xf32>
      %121 = vector.broadcast %119 : vector<1x8x128xf32> to vector<8x8x128xf32>
      %122 = arith.addf %120, %121 : vector<8x8x128xf32>
      %123 = vector.broadcast %cst_21 : f32 to vector<8x8x128xf32>
      %124 = arith.mulf %122, %123 : vector<8x8x128xf32>
      %125 = arith.addf %38, %124 : vector<8x8x128xf32>
      %126 = math.exp %125 : vector<8x8x128xf32>
      %cst_35 = arith.constant dense<0.000000e+00> : vector<8x128xf32>
      %127 = vector.multi_reduction <add>, %126, %cst_35 [1] : vector<8x8x128xf32> to vector<8x128xf32>
      %cst_36 = arith.constant 9.99999993E-9 : f32
      %128 = vector.broadcast %cst_36 : f32 to vector<8x128xf32>
      %129 = arith.addf %128, %127 : vector<8x128xf32>
      %130 = math.log %129 : vector<8x128xf32>
      %131 = vector.broadcast %cst_22 : f32 to vector<8x128xf32>
      %132 = arith.mulf %131, %130 : vector<8x128xf32>
      %133 = arith.subf %53, %132 : vector<8x128xf32>
      %134 = arith.addf %133, %114 : vector<8x128xf32>
      %135 = arith.mulf %29, %134 : vector<8x128xf32>
      %136 = vector.shape_cast %135 : vector<8x128xf32> to vector<8x1x128xf32>
      %137 = vector.shape_cast %115 : vector<8x128xf32> to vector<1x8x128xf32>
      %138 = vector.broadcast %136 : vector<8x1x128xf32> to vector<8x8x128xf32>
      %139 = vector.broadcast %137 : vector<1x8x128xf32> to vector<8x8x128xf32>
      %140 = arith.addf %138, %139 : vector<8x8x128xf32>
      %141 = vector.broadcast %cst_21 : f32 to vector<8x8x128xf32>
      %142 = arith.mulf %140, %141 : vector<8x8x128xf32>
      %143 = arith.addf %38, %142 : vector<8x8x128xf32>
      %144 = math.exp %143 : vector<8x8x128xf32>
      %cst_37 = arith.constant dense<0.000000e+00> : vector<8x128xf32>
      %145 = vector.multi_reduction <add>, %144, %cst_37 [0] : vector<8x8x128xf32> to vector<8x128xf32>
      %cst_38 = arith.constant 9.99999993E-9 : f32
      %146 = vector.broadcast %cst_38 : f32 to vector<8x128xf32>
      %147 = arith.addf %146, %145 : vector<8x128xf32>
      %148 = math.log %147 : vector<8x128xf32>
      %149 = vector.broadcast %cst_22 : f32 to vector<8x128xf32>
      %150 = arith.mulf %149, %148 : vector<8x128xf32>
      %151 = arith.subf %53, %150 : vector<8x128xf32>
      %152 = arith.addf %151, %115 : vector<8x128xf32>
      %153 = arith.mulf %29, %152 : vector<8x128xf32>
      %154 = arith.subf %135, %114 : vector<8x128xf32>
      %155 = math.absf %154 : vector<8x128xf32>
      %cst_39 = arith.constant dense<0.000000e+00> : vector<128xf32>
      %156 = vector.multi_reduction <add>, %155, %cst_39 [0] : vector<8x128xf32> to vector<128xf32>
      %157 = vector.shape_cast %156 : vector<128xf32> to vector<1x128xf32>
      %158 = vector.shape_cast %157 : vector<1x128xf32> to vector<1x1x128xf32>
      %cst_40 = arith.constant dense<0xFF800000> : vector<1xf32>
      %159 = vector.multi_reduction <maximumf>, %158, %cst_40 [1, 2] : vector<1x1x128xf32> to vector<1xf32>
      %160 = vector.shape_cast %159 : vector<1xf32> to vector<1x1x1xf32>
      %161 = vector.extract %160[0, 0, 0] : f32 from vector<1x1x1xf32>
      %162 = arith.select %117, %114, %135 : vector<8x128xf32>
      %163 = arith.select %117, %115, %153 : vector<8x128xf32>
      %cst_41 = arith.constant 1.000000e-01 : f32
      %164 = arith.cmpf olt, %161, %cst_41 : f32
      %165 = arith.ori %117, %164 : i1
      %166 = vector.shape_cast %162 : vector<8x128xf32> to vector<8x1x128xf32>
      %167 = vector.shape_cast %163 : vector<8x128xf32> to vector<1x8x128xf32>
      %168 = vector.broadcast %166 : vector<8x1x128xf32> to vector<8x8x128xf32>
      %169 = vector.broadcast %167 : vector<1x8x128xf32> to vector<8x8x128xf32>
      %170 = arith.addf %168, %169 : vector<8x8x128xf32>
      %171 = vector.broadcast %cst_21 : f32 to vector<8x8x128xf32>
      %172 = arith.mulf %170, %171 : vector<8x8x128xf32>
      %173 = arith.addf %38, %172 : vector<8x8x128xf32>
      %174 = math.exp %173 : vector<8x8x128xf32>
      %cst_42 = arith.constant dense<0.000000e+00> : vector<8x128xf32>
      %175 = vector.multi_reduction <add>, %174, %cst_42 [1] : vector<8x8x128xf32> to vector<8x128xf32>
      %cst_43 = arith.constant 9.99999993E-9 : f32
      %176 = vector.broadcast %cst_43 : f32 to vector<8x128xf32>
      %177 = arith.addf %176, %175 : vector<8x128xf32>
      %178 = math.log %177 : vector<8x128xf32>
      %179 = vector.broadcast %cst_22 : f32 to vector<8x128xf32>
      %180 = arith.mulf %179, %178 : vector<8x128xf32>
      %181 = arith.subf %53, %180 : vector<8x128xf32>
      %182 = arith.addf %181, %162 : vector<8x128xf32>
      %183 = arith.mulf %29, %182 : vector<8x128xf32>
      %184 = vector.shape_cast %183 : vector<8x128xf32> to vector<8x1x128xf32>
      %185 = vector.shape_cast %163 : vector<8x128xf32> to vector<1x8x128xf32>
      %186 = vector.broadcast %184 : vector<8x1x128xf32> to vector<8x8x128xf32>
      %187 = vector.broadcast %185 : vector<1x8x128xf32> to vector<8x8x128xf32>
      %188 = arith.addf %186, %187 : vector<8x8x128xf32>
      %189 = vector.broadcast %cst_21 : f32 to vector<8x8x128xf32>
      %190 = arith.mulf %188, %189 : vector<8x8x128xf32>
      %191 = arith.addf %38, %190 : vector<8x8x128xf32>
      %192 = math.exp %191 : vector<8x8x128xf32>
      %cst_44 = arith.constant dense<0.000000e+00> : vector<8x128xf32>
      %193 = vector.multi_reduction <add>, %192, %cst_44 [0] : vector<8x8x128xf32> to vector<8x128xf32>
      %cst_45 = arith.constant 9.99999993E-9 : f32
      %194 = vector.broadcast %cst_45 : f32 to vector<8x128xf32>
      %195 = arith.addf %194, %193 : vector<8x128xf32>
      %196 = math.log %195 : vector<8x128xf32>
      %197 = vector.broadcast %cst_22 : f32 to vector<8x128xf32>
      %198 = arith.mulf %197, %196 : vector<8x128xf32>
      %199 = arith.subf %53, %198 : vector<8x128xf32>
      %200 = arith.addf %199, %163 : vector<8x128xf32>
      %201 = arith.mulf %29, %200 : vector<8x128xf32>
      %202 = arith.subf %183, %162 : vector<8x128xf32>
      %203 = math.absf %202 : vector<8x128xf32>
      %cst_46 = arith.constant dense<0.000000e+00> : vector<128xf32>
      %204 = vector.multi_reduction <add>, %203, %cst_46 [0] : vector<8x128xf32> to vector<128xf32>
      %205 = vector.shape_cast %204 : vector<128xf32> to vector<1x128xf32>
      %206 = vector.shape_cast %205 : vector<1x128xf32> to vector<1x1x128xf32>
      %cst_47 = arith.constant dense<0xFF800000> : vector<1xf32>
      %207 = vector.multi_reduction <maximumf>, %206, %cst_47 [1, 2] : vector<1x1x128xf32> to vector<1xf32>
      %208 = vector.shape_cast %207 : vector<1xf32> to vector<1x1x1xf32>
      %209 = vector.extract %208[0, 0, 0] : f32 from vector<1x1x1xf32>
      %210 = arith.select %165, %162, %183 : vector<8x128xf32>
      %211 = arith.select %165, %163, %201 : vector<8x128xf32>
      %cst_48 = arith.constant 1.000000e-01 : f32
      %212 = arith.cmpf olt, %209, %cst_48 : f32
      %213 = arith.ori %165, %212 : i1
      %214 = vector.shape_cast %210 : vector<8x128xf32> to vector<8x1x128xf32>
      %215 = vector.shape_cast %211 : vector<8x128xf32> to vector<1x8x128xf32>
      %216 = vector.broadcast %214 : vector<8x1x128xf32> to vector<8x8x128xf32>
      %217 = vector.broadcast %215 : vector<1x8x128xf32> to vector<8x8x128xf32>
      %218 = arith.addf %216, %217 : vector<8x8x128xf32>
      %219 = vector.broadcast %cst_21 : f32 to vector<8x8x128xf32>
      %220 = arith.mulf %218, %219 : vector<8x8x128xf32>
      %221 = arith.addf %38, %220 : vector<8x8x128xf32>
      %222 = math.exp %221 : vector<8x8x128xf32>
      %cst_49 = arith.constant dense<0.000000e+00> : vector<8x128xf32>
      %223 = vector.multi_reduction <add>, %222, %cst_49 [1] : vector<8x8x128xf32> to vector<8x128xf32>
      %cst_50 = arith.constant 9.99999993E-9 : f32
      %224 = vector.broadcast %cst_50 : f32 to vector<8x128xf32>
      %225 = arith.addf %224, %223 : vector<8x128xf32>
      %226 = math.log %225 : vector<8x128xf32>
      %227 = vector.broadcast %cst_22 : f32 to vector<8x128xf32>
      %228 = arith.mulf %227, %226 : vector<8x128xf32>
      %229 = arith.subf %53, %228 : vector<8x128xf32>
      %230 = arith.addf %229, %210 : vector<8x128xf32>
      %231 = arith.mulf %29, %230 : vector<8x128xf32>
      %232 = vector.shape_cast %231 : vector<8x128xf32> to vector<8x1x128xf32>
      %233 = vector.shape_cast %211 : vector<8x128xf32> to vector<1x8x128xf32>
      %234 = vector.broadcast %232 : vector<8x1x128xf32> to vector<8x8x128xf32>
      %235 = vector.broadcast %233 : vector<1x8x128xf32> to vector<8x8x128xf32>
      %236 = arith.addf %234, %235 : vector<8x8x128xf32>
      %237 = vector.broadcast %cst_21 : f32 to vector<8x8x128xf32>
      %238 = arith.mulf %236, %237 : vector<8x8x128xf32>
      %239 = arith.addf %38, %238 : vector<8x8x128xf32>
      %240 = math.exp %239 : vector<8x8x128xf32>
      %cst_51 = arith.constant dense<0.000000e+00> : vector<8x128xf32>
      %241 = vector.multi_reduction <add>, %240, %cst_51 [0] : vector<8x8x128xf32> to vector<8x128xf32>
      %cst_52 = arith.constant 9.99999993E-9 : f32
      %242 = vector.broadcast %cst_52 : f32 to vector<8x128xf32>
      %243 = arith.addf %242, %241 : vector<8x128xf32>
      %244 = math.log %243 : vector<8x128xf32>
      %245 = vector.broadcast %cst_22 : f32 to vector<8x128xf32>
      %246 = arith.mulf %245, %244 : vector<8x128xf32>
      %247 = arith.subf %53, %246 : vector<8x128xf32>
      %248 = arith.addf %247, %211 : vector<8x128xf32>
      %249 = arith.mulf %29, %248 : vector<8x128xf32>
      %250 = arith.subf %231, %210 : vector<8x128xf32>
      %251 = math.absf %250 : vector<8x128xf32>
      %cst_53 = arith.constant dense<0.000000e+00> : vector<128xf32>
      %252 = vector.multi_reduction <add>, %251, %cst_53 [0] : vector<8x128xf32> to vector<128xf32>
      %253 = vector.shape_cast %252 : vector<128xf32> to vector<1x128xf32>
      %254 = vector.shape_cast %253 : vector<1x128xf32> to vector<1x1x128xf32>
      %cst_54 = arith.constant dense<0xFF800000> : vector<1xf32>
      %255 = vector.multi_reduction <maximumf>, %254, %cst_54 [1, 2] : vector<1x1x128xf32> to vector<1xf32>
      %256 = vector.shape_cast %255 : vector<1xf32> to vector<1x1x1xf32>
      %257 = vector.extract %256[0, 0, 0] : f32 from vector<1x1x1xf32>
      %258 = arith.select %213, %210, %231 : vector<8x128xf32>
      %259 = arith.select %213, %211, %249 : vector<8x128xf32>
      %cst_55 = arith.constant 1.000000e-01 : f32
      %260 = arith.cmpf olt, %257, %cst_55 : f32
      %261 = arith.ori %213, %260 : i1
      %262 = vector.shape_cast %258 : vector<8x128xf32> to vector<8x1x128xf32>
      %263 = vector.shape_cast %259 : vector<8x128xf32> to vector<1x8x128xf32>
      %264 = vector.broadcast %262 : vector<8x1x128xf32> to vector<8x8x128xf32>
      %265 = vector.broadcast %263 : vector<1x8x128xf32> to vector<8x8x128xf32>
      %266 = arith.addf %264, %265 : vector<8x8x128xf32>
      %267 = vector.broadcast %cst_21 : f32 to vector<8x8x128xf32>
      %268 = arith.mulf %266, %267 : vector<8x8x128xf32>
      %269 = arith.addf %38, %268 : vector<8x8x128xf32>
      %270 = math.exp %269 : vector<8x8x128xf32>
      %cst_56 = arith.constant dense<0.000000e+00> : vector<8x128xf32>
      %271 = vector.multi_reduction <add>, %270, %cst_56 [1] : vector<8x8x128xf32> to vector<8x128xf32>
      %cst_57 = arith.constant 9.99999993E-9 : f32
      %272 = vector.broadcast %cst_57 : f32 to vector<8x128xf32>
      %273 = arith.addf %272, %271 : vector<8x128xf32>
      %274 = math.log %273 : vector<8x128xf32>
      %275 = vector.broadcast %cst_22 : f32 to vector<8x128xf32>
      %276 = arith.mulf %275, %274 : vector<8x128xf32>
      %277 = arith.subf %53, %276 : vector<8x128xf32>
      %278 = arith.addf %277, %258 : vector<8x128xf32>
      %279 = arith.mulf %29, %278 : vector<8x128xf32>
      %280 = vector.shape_cast %279 : vector<8x128xf32> to vector<8x1x128xf32>
      %281 = vector.shape_cast %259 : vector<8x128xf32> to vector<1x8x128xf32>
      %282 = vector.broadcast %280 : vector<8x1x128xf32> to vector<8x8x128xf32>
      %283 = vector.broadcast %281 : vector<1x8x128xf32> to vector<8x8x128xf32>
      %284 = arith.addf %282, %283 : vector<8x8x128xf32>
      %285 = vector.broadcast %cst_21 : f32 to vector<8x8x128xf32>
      %286 = arith.mulf %284, %285 : vector<8x8x128xf32>
      %287 = arith.addf %38, %286 : vector<8x8x128xf32>
      %288 = math.exp %287 : vector<8x8x128xf32>
      %cst_58 = arith.constant dense<0.000000e+00> : vector<8x128xf32>
      %289 = vector.multi_reduction <add>, %288, %cst_58 [0] : vector<8x8x128xf32> to vector<8x128xf32>
      %cst_59 = arith.constant 9.99999993E-9 : f32
      %290 = vector.broadcast %cst_59 : f32 to vector<8x128xf32>
      %291 = arith.addf %290, %289 : vector<8x128xf32>
      %292 = math.log %291 : vector<8x128xf32>
      %293 = vector.broadcast %cst_22 : f32 to vector<8x128xf32>
      %294 = arith.mulf %293, %292 : vector<8x128xf32>
      %295 = arith.subf %53, %294 : vector<8x128xf32>
      %296 = arith.addf %295, %259 : vector<8x128xf32>
      %297 = arith.mulf %29, %296 : vector<8x128xf32>
      %298 = arith.subf %279, %258 : vector<8x128xf32>
      %299 = math.absf %298 : vector<8x128xf32>
      %cst_60 = arith.constant dense<0.000000e+00> : vector<128xf32>
      %300 = vector.multi_reduction <add>, %299, %cst_60 [0] : vector<8x128xf32> to vector<128xf32>
      %301 = vector.shape_cast %300 : vector<128xf32> to vector<1x128xf32>
      %302 = vector.shape_cast %301 : vector<1x128xf32> to vector<1x1x128xf32>
      %cst_61 = arith.constant dense<0xFF800000> : vector<1xf32>
      %303 = vector.multi_reduction <maximumf>, %302, %cst_61 [1, 2] : vector<1x1x128xf32> to vector<1xf32>
      %304 = vector.shape_cast %303 : vector<1xf32> to vector<1x1x1xf32>
      %305 = vector.extract %304[0, 0, 0] : f32 from vector<1x1x1xf32>
      %306 = arith.select %261, %258, %279 : vector<8x128xf32>
      %307 = arith.select %261, %259, %297 : vector<8x128xf32>
      %cst_62 = arith.constant 1.000000e-01 : f32
      %308 = arith.cmpf olt, %305, %cst_62 : f32
      %309 = arith.ori %261, %308 : i1
      %c5_i32 = arith.constant 5 : i32
      %310 = arith.addi %arg5, %c5_i32 : i32
      scf.yield %310, %306, %307, %309 : i32, vector<8x128xf32>, vector<8x128xf32>, i1
    }
    %56 = vector.shape_cast %55#1 : vector<8x128xf32> to vector<8x1x128xf32>
    %57 = vector.shape_cast %55#2 : vector<8x128xf32> to vector<1x8x128xf32>
    %58 = vector.broadcast %56 : vector<8x1x128xf32> to vector<8x8x128xf32>
    %59 = vector.broadcast %57 : vector<1x8x128xf32> to vector<8x8x128xf32>
    %60 = arith.addf %58, %59 : vector<8x8x128xf32>
    %cst_23 = arith.constant 1.000000e+01 : f32
    %61 = vector.broadcast %cst_23 : f32 to vector<8x8x128xf32>
    %62 = arith.mulf %60, %61 : vector<8x8x128xf32>
    %63 = arith.addf %38, %62 : vector<8x8x128xf32>
    %64 = math.exp %63 : vector<8x8x128xf32>
    %65 = arith.mulf %64, %30 : vector<8x8x128xf32>
    %cst_24 = arith.constant dense<0.000000e+00> : vector<8x128xf32>
    %66 = vector.multi_reduction <add>, %65, %cst_24 [0] : vector<8x8x128xf32> to vector<8x128xf32>
    %cst_25 = arith.constant dense<0.000000e+00> : vector<128xf32>
    %67 = vector.multi_reduction <add>, %66, %cst_25 [0] : vector<8x128xf32> to vector<128xf32>
    %68 = vector.shape_cast %67 : vector<128xf32> to vector<1x128xf32>
    %c0_26 = arith.constant 0 : index
    %c0_27 = arith.constant 0 : index
    %69 = vector.load %arg4[%c0_26, %c0_27] : memref<1x128xf32, #tpu.memory_space<vmem>>, vector<1x128xf32>
    tpu.vector_store %arg4[%c0_26, %c0_27], %68 {strides = array<i32>} : memref<1x128xf32, #tpu.memory_space<vmem>>, vector<1x128xf32>,
    return
  }
  func.func @transform_0(%arg0: i32) -> i32 {
    %c0_i32 = arith.constant 0 : i32
    %c0_i32_0 = arith.constant 0 : i32
    return %c0_i32 : i32
  }
  func.func @transform_1(%arg0: i32) -> (i32, i32, i32) {
    %c0_i32 = arith.constant 0 : i32
    %c0_i32_0 = arith.constant 0 : i32
    %c0_i32_1 = arith.constant 0 : i32
    return %c0_i32, %c0_i32_0, %arg0 : i32, i32, i32
  }
  func.func @transform_2(%arg0: i32) -> (i32, i32) {
    %c0_i32 = arith.constant 0 : i32
    %c0_i32_0 = arith.constant 0 : i32
    return %c0_i32, %arg0 : i32, i32
  }
  func.func @transform_3(%arg0: i32) -> (i32, i32) {
    %c0_i32 = arith.constant 0 : i32
    %c0_i32_0 = arith.constant 0 : i32
    return %c0_i32, %arg0 : i32, i32
  }
}

</mosaic_0001>

<bundles_post_ra>
// kernel: tpu_custom_call.1
= control target key start
LH: loop header
LB: loop body
LE: loop exit
PB: predicated region body
PF: predicated region fallthrough
CT: control target
= control target key end

     0   :  { %9 = vsyncpa [#allocation4], 0  ;;  %s4644_s0 = inlined_call_operand.<no memory space> [shape: f32[1], index: 0, kind: input, shape index: {}]   ;;  %s4645_s1 = inlined_call_operand.hbm [shape: bf16[8,8,128], index: 1, kind: input, shape index: {}]   ;;  %s4646_s2 = inlined_call_operand.hbm [shape: bf16[8,128], index: 2, kind: input, shape index: {}]   ;;  %s4647_s3 = inlined_call_operand.hbm [shape: f32[1,128], index: 3, kind: output, shape index: {}]  }
   0x1   :  { %10 = vsyncpa [#allocation7], 0 }
   0x2   :  { %11 = vsyncpa [#allocation5], 0  ;;  %s18_s14 = sshll.u32 %s4645_s1, 4  ;;  %s3042_s15 = smov [#allocation3]   ;;  %s19_s14 = int_to_ptr.hbm [resolvable:$true] %s18_s14 }
   0x3   :  { %s20_s16 = sshll.u32 %s3042_s15, 4  ;;  %s32_s19 = sshll.u32 %s4646_s2, 4  ;;  %s21_s16 = int_to_ptr.vmem [resolvable:$true] %s20_s16  ;;  %s33_s19 = int_to_ptr.hbm [resolvable:$true] %s32_s19 }
   0x4   :  { %s3043_s20 = smov 64   ;;  %s3044_s21 = smov 4  }
   0x5   :  { %26 = dma.hbm_to_vmem [thread:$0]  %s19_s14, 512, %s21_s16, [#allocation4], %s3043_s20, %s3043_s20, %s3044_s21  }
   0x6   :  { %s3045_s22 = smov [#allocation6]  }
   0x7   :  { %s34_s23 = sshll.u32 %s3045_s22, 4  ;;  %s35_s23 = int_to_ptr.vmem [resolvable:$true] %s34_s23 }
   0x8   :  { %37 = dma.hbm_to_vmem [thread:$0]  %s33_s19, 64, %s35_s23, [#allocation7]  }
   0x9   :  { %2964 = dma.done.wait [#allocation4], 512  }
   0xa   :  { %2965 = vsyncadd [#allocation4], 4294966784  ;;  %v65_v0 = vlaneseq }
   0xb   :  { %2966 = dma.done.wait [#allocation7], 64  }
   0xc   :  { %2967 = vsyncadd [#allocation7], 4294967232  ;;  %v66_v1 = vshrl.u32 %v65_v0, 7  ;;  %v68_v2 = vand.u32 127, %v65_v0  ;;  %v103_v3 = vstv %s4644_s0  ;;  %v3046_v4 = vmov 1.0   ;;  %v2355_v23 = vld [vmem:[#allocation3] sm:$0xff]  }
   0xd   :  { %v63_v15 = vld [vmem:[#allocation6] sm:$0xf]  ;;  %v2370_v24 = vld [vmem:[#allocation3 + $0x8] sm:$0xff]   ;;  %v2357_v28 = vunpack.c.h.bf16 %v2355_v23  ;;  %v2371_v33 = vld [vmem:[#allocation3 + $0x10] sm:$0xff]   ;;  %v2356_v34 = vunpack.c.l.bf16 %v2355_v23  ;;  %vm323_vm5 = vcmask 1041409   ;;  %vm326_vm7 = vcmask 1042434  }
   0xe   :  { %2534 = vset.pattern.permute.xlu1 %v66_v1  ;;  %vm69_vm0 = vcmp.eq.s32.totalorder %v66_v1, %v68_v2  ;;  %2533 = vset.pattern.permute.xlu0 %v66_v1  ;;  %v3077_v16 = vunpack.c.l.bf16 %v63_v15  ;;  %v2360_v30 = vunpack.c.l.bf16 %v2370_v24  ;;  %v2361_v37 = vunpack.c.h.bf16 %v2370_v24  ;;  %v3129_v49 = vld [vmem:[#allocation3 + $0x18] sm:$0xff]   ;;  %p3312_p0 = pmov 0   ;;  %s3348_s25 = smov 0  }
   0xf   :  { %v70_v5 = vsel %vm69_vm0, 0.0, %v3046_v4  ;;  %2535 = vset.pattern.permute.xlu2 %v66_v1  ;;  %v2364_v38 = vunpack.c.l.bf16 %v2371_v33  ;;  %v2365_v43 = vunpack.c.h.bf16 %v2371_v33  ;;  %v2369_v60 = vunpack.c.h.bf16 %v3129_v49 }
  0x10   :  { %v104_v6 = vadd.f32 %v103_v3, %v70_v5  ;;  %v72_v17 = vrot.slane %v3077_v16, 1  ;;  %v73_v18 = vrot.slane %v3077_v16, 2  ;;  %v74_v19 = vrot.slane %v3077_v16, 3 }
  0x11   :  { %v75_v21 = vrot.slane %v3077_v16, 4  ;;  %v79_v25 = vperm.slane %v3077_v16, 0  ;;  %v76_v26 = vrot.slane %v3077_v16, 5  ;;  %v78_v50 = vrot.slane %v3077_v16, 7 }
  0x12   :  { %v119_v7 = vperm.slane %v104_v6, 2  ;;  %v105_v8 = vperm.slane %v104_v6, 0  ;;  %v133_v9 = vperm.slane %v104_v6, 4  ;;  %v126_v10 = vperm.slane %v104_v6, 3 }
  0x13   :  { %v112_v11 = vperm.slane %v104_v6, 1  ;;  %v140_v12 = vperm.slane %v104_v6, 5  ;;  %v154_v13 = vperm.slane %v104_v6, 7  ;;  %v147_v14 = vperm.slane %v104_v6, 6 }
  0x14   :  { %v80_v20 = vperm.slane %v72_v17, 0  ;;  %v81_v22 = vperm.slane %v73_v18, 0  ;;  %v82_v27 = vperm.slane %v74_v19, 0  ;;  %v83_v29 = vperm.slane %v75_v21, 0 }
  0x15   :  { %v3100_v35 = vmul.f32 %v79_v25, %v3077_v16  ;;  %v84_v36 = vperm.slane %v76_v26, 0  ;;  %v86_v57 = vperm.slane %v78_v50, 0  ;;  %vm329_vm9 = vcmask 1043459  }
  0x16   :  { %124 = vperm.xlu1 %2534, %v119_v7   ;;  %110 = vperm.xlu0 %2533, %v105_v8   ;;  %v3094_v31 = vmul.f32 %v81_v22, %v3077_v16  ;;  %v3097_v32 = vmul.f32 %v80_v20, %v3077_v16  ;;  %v3105_v39 = vmul.f32 %v83_v29, %v3077_v16  ;;  %v3155_v8 = vsub.f32 1.0, %v3077_v16 }
  0x17   :  { %138 = vperm.xlu2 %2535, %v133_v9   ;;  %v3111_v41 = vmul.f32 %v82_v27, %v3077_v16  ;;  %v3114_v42 = vmul.f32 %v2356_v34, %v3100_v35  ;;  %v3117_v44 = vmul.f32 %v84_v36, %v3077_v16  ;;  %v3148_v0 = vmul.f32 %v86_v57, %v3077_v16 }
  0x18   :  { %v3108_v40 = vmul.f32 %v2360_v30, %v3094_v31  ;;  %v3120_v45 = vmul.f32 %v2357_v28, %v3097_v32  ;;  %v3123_v46 = vmul.f32 %v2364_v38, %v3105_v39  ;;  %v227_v24 = vrot.slane %v3155_v8, 1 }
  0x19   :  { %v3127_v48 = vmul.f32 %v2361_v37, %v3111_v41  ;;  %v177_v51 = vrot.slane %v3114_v42, 4  ;;  %v3134_v52 = vmul.f32 %v2365_v43, %v3117_v44  ;;  %v3152_v7 = vmul.f32 %v2369_v60, %v3148_v0 }
  0x1a   :  { %v189_v47 = vrot.slane %v3108_v40, 4  ;;  %v183_v53 = vrot.slane %v3120_v45, 4  ;;  %v201_v54 = vrot.slane %v3123_v46, 4  ;;  %v228_v29 = vrot.slane %v3155_v8, 2 }
  0x1b   :  { %v195_v56 = vrot.slane %v3127_v48, 4  ;;  %v178_v58 = vadd.f32 %v177_v51, %v3114_v42  ;;  %v207_v62 = vrot.slane %v3134_v52, 4  ;;  %v219_v15 = vrot.slane %v3152_v7, 4 }
  0x1c   :  { %v190_v55 = vadd.f32 %v189_v47, %v3108_v40  ;;  %v184_v59 = vadd.f32 %v183_v53, %v3120_v45  ;;  %v202_v1 = vadd.f32 %v201_v54, %v3123_v46  ;;  %v77_v38 = vrot.slane %v3077_v16, 6 }
  0x1d   :  { %v196_v63 = vadd.f32 %v195_v56, %v3127_v48  ;;  %v179_v2 = vrot.slane %v178_v58, 2  ;;  %v220_v30 = vadd.f32 %v219_v15, %v3152_v7  ;;  %v229_v47 = vrot.slane %v3155_v8, 3 }
  0x1e   :  { %131 = vperm.xlu1 %2534, %v126_v10   ;;  %117 = vperm.xlu0 %2533, %v112_v11   ;;  %v191_v61 = vrot.slane %v190_v55, 2  ;;  %v185_v3 = vrot.slane %v184_v59, 2  ;;  %v208_v10 = vadd.f32 %v207_v62, %v3134_v52  ;;  %v203_v11 = vrot.slane %v202_v1, 2 }
  0x1f   :  { %145 = vperm.xlu2 %2535, %v140_v12   ;;  %v197_v4 = vrot.slane %v196_v63, 2  ;;  %v180_v9 = vadd.f32 %v179_v2, %v178_v58  ;;  %v221_v53 = vrot.slane %v220_v30, 2  ;;  %v2368_v56 = vunpack.c.l.bf16 %v3129_v49 }
  0x20   :  { %v192_v5 = vadd.f32 %v191_v61, %v190_v55  ;;  %v186_v6 = vadd.f32 %v185_v3, %v184_v59  ;;  %v209_v22 = vrot.slane %v208_v10, 2  ;;  %v204_v25 = vadd.f32 %v203_v11, %v202_v1 }
  0x21   :  { %v181_v20 = vrot.slane %v180_v9, 1  ;;  %v230_v58 = vrot.slane %v3155_v8, 4  ;;  %v222_v59 = vadd.f32 %v221_v53, %v220_v30  ;;  %v85_v60 = vperm.slane %v77_v38, 0 }
  0x22   :  { %v187_v12 = vrot.slane %v186_v6, 1  ;;  %v210_v34 = vadd.f32 %v209_v22, %v208_v10  ;;  %v205_v37 = vrot.slane %v204_v25, 1  ;;  %v231_v2 = vrot.slane %v3155_v8, 5 }
  0x23   :  { %v182_v33 = vadd.f32 %v181_v20, %v180_v9  ;;  %v223_v3 = vrot.slane %v222_v59, 1  ;;  %v232_v30 = vrot.slane %v3155_v8, 6  ;;  %vm332_vm11 = vcmask 1044484  }
  0x24   :  { %v188_v23 = vadd.f32 %v187_v12, %v186_v6  ;;  %v211_v54 = vrot.slane %v210_v34, 1  ;;  %v206_v57 = vadd.f32 %v205_v37, %v204_v25  ;;  %v233_v12 = vrot.slane %v3155_v8, 7 }
  0x25   :  { %v242_v55 = vadd.f32 %v3155_v8, %v182_v33  ;;  %v224_v11 = vadd.f32 %v223_v3, %v222_v59  ;;  %vm335_vm12 = vcmask 1045509   ;;  %vm338_vm14 = vcmask 1046534  }
  0x26   :  { %159 = vperm.xlu1 %2534, %v154_v13   ;;  %152 = vperm.xlu0 %2533, %v147_v14   ;;  %v198_v13 = vadd.f32 %v197_v4, %v196_v63  ;;  %v193_v14 = vrot.slane %v192_v5, 1  ;;  %v243_v36 = vadd.f32 %v227_v24, %v188_v23  ;;  %v3172_v63 = vmul.f32 %v85_v60, %v3077_v16 }
  0x27   :  { %v212_v1 = vadd.f32 %v211_v54, %v210_v34  ;;  %vm250_vm3 = vcmp.eq.f32.partialorder %v242_v55, 0.0  ;;  %v246_v49 = vadd.f32 %v230_v58, %v206_v57  ;;  %v249_v24 = vadd.f32 %v233_v12, %v224_v11 }
  0x28   :  { %v199_v27 = vrot.slane %v198_v13, 1  ;;  %v194_v28 = vadd.f32 %v193_v14, %v192_v5  ;;  %vm251_vm1 = vcmp.eq.f32.partialorder %v243_v36, 0.0  ;;  %v3176_v4 = vmul.f32 %v2368_v56, %v3172_v63 }
  0x29   :  { %v3169_v62 = vsel %vm251_vm1, 0.0, %v72_v17  ;;  %v3184_v6 = vsel %vm250_vm3, 0.0, %v3077_v16  ;;  %v247_v10 = vadd.f32 %v231_v2, %v212_v1  ;;  %vm254_vm6 = vcmp.eq.f32.partialorder %v246_v49, 0.0 }
  0x2a   :  { %v200_v43 = vadd.f32 %v199_v27, %v198_v13  ;;  %v244_v51 = vadd.f32 %v228_v29, %v194_v28  ;;  %v322_v17 = vrot.slane %v3169_v62, 7  ;;  %v213_v9 = vrot.slane %v3176_v4, 4 }
  0x2b   :  { %v3198_v22 = vsel %vm254_vm6, 0.0, %v75_v21  ;;  %vm255_vm8 = vcmp.eq.f32.partialorder %v247_v10, 0.0  ;;  %vm257_vm10 = vcmp.eq.f32.partialorder %v249_v24, 0.0  ;;  %vm341_vm15 = vcmask 1047559  }
  0x2c   :  { %v245_v61 = vadd.f32 %v229_v47, %v200_v43  ;;  %vm252_vm2 = vcmp.eq.f32.partialorder %v244_v51, 0.0  ;;  %v214_v14 = vadd.f32 %v213_v9, %v3176_v4  ;;  %v324_v15 = vsel %vm323_vm5, %v322_v17, %v3184_v6 }
  0x2d   :  { %v3180_v5 = vsel %vm252_vm2, 0.0, %v73_v18  ;;  %v331_v27 = vrot.slane %v3198_v22, 4  ;;  %v3205_v28 = vsel %vm255_vm8, 0.0, %v76_v26  ;;  %v3212_v36 = vsel %vm257_vm10, 0.0, %v78_v50 }
  0x2e   :  { %vm253_vm4 = vcmp.eq.f32.partialorder %v245_v61, 0.0  ;;  %v325_v13 = vrot.slane %v3180_v5, 6  ;;  %v215_v20 = vrot.slane %v214_v14, 2  ;;  %v334_v34 = vrot.slane %v3205_v28, 3 }
  0x2f   :  { %v3191_v18 = vsel %vm253_vm4, 0.0, %v74_v19  ;;  %v340_v26 = vrot.slane %v3212_v36, 1  ;;  %vm286_vm0 = vcmp.eq.f32.partialorder %v3123_v46, 0.0  ;;  %vm287_vm1 = vcmp.eq.f32.partialorder %v3134_v52, 0.0 }
  0x30   :  { %v328_v23 = vrot.slane %v3191_v18, 5  ;;  %v327_v25 = vsel %vm326_vm7, %v325_v13, %v324_v15  ;;  %v216_v19 = vadd.f32 %v215_v20, %v214_v14  ;;  %vm284_vm10 = vcmp.eq.f32.partialorder %v3108_v40, 0.0 }
  0x32   :  { %v217_v29 = vrot.slane %v216_v19, 1  ;;  %v330_v21 = vsel %vm329_vm9, %v328_v23, %v327_v25 }
  0x33   :  { %v333_v43 = vsel %vm332_vm11, %v331_v27, %v330_v21 }
  0x34   :  { %v218_v33 = vadd.f32 %v217_v29, %v216_v19  ;;  %v336_v47 = vsel %vm335_vm12, %v334_v34, %v333_v43 }
  0x36   :  { %v248_v37 = vadd.f32 %v232_v30, %v218_v33 }
  0x38   :  { %vm256_vm13 = vcmp.eq.f32.partialorder %v248_v37, 0.0 }
  0x39   :  { %v3216_v8 = vsel %vm256_vm13, 0.0, %v77_v38  ;;  %vm282_vm13 = vcmp.eq.f32.partialorder %v3114_v42, 0.0 }
  0x3a   :  { %v337_v51 = vrot.slane %v3216_v8, 2 }
  0x3c   :  { %v339_v53 = vsel %vm338_vm14, %v337_v51, %v336_v47 }
  0x3d   :  { %v342_v16 = vsel %vm341_vm15, %v340_v26, %v339_v53 }
  0x3e   :  { %v344_v50 = vrot.slane %v342_v16, 4 }
  0x40   :  { %v345_v54 = vadd.f32 %v344_v50, %v342_v16 }
  0x42   :  { %v346_v55 = vrot.slane %v345_v54, 2 }
  0x44   :  { %v347_v57 = vadd.f32 %v346_v55, %v345_v54 }
  0x46   :  { %v348_v59 = vrot.slane %v347_v57, 1 }
  0x48   :  { %v349_v60 = vadd.f32 %v348_v59, %v347_v57 }
  0x4a   :  { %2536 = vrcp.f32 %v349_v60  ;;  %vm356_vm2 = vweird.f32 %v349_v60  ;;  %v362_v11 = vand.u32 2147483648, %v349_v60  ;;  %v360_v13 = vand.u32 2147483647, %v349_v60 }
  0x4b   :  { %vm350_vm8 = vcmp.gt.f32.partialorder %v349_v60, 0.0 }
  0x4c   :  { %vm361_vm6 = vcmp.eq.f32.partialorder %v360_v13, 8.507059e+37 }
  0x71   :  { %v139_v56 = vpop.permute.xlu2 %138 }
  0x72   :  { %v165_v58 = vmul.f32 %v139_v56, %v3105_v39  ;;  %v2537_v39 = vpop.eup %2536 }
  0x73   :  { %v352_v10 = vmul.f32 %v2537_v39, %v349_v60  ;;  %vm357_vm3 = vweird.f32 %v2537_v39 }
  0x74   :  { %v3224_v38 = vmul.f32 %v3123_v46, %v165_v58  ;;  %vm358_vm4 = vmor %vm356_vm2, %vm357_vm3  ;;  %vm289_vm2 = vcmp.eq.f32.partialorder %v3152_v7, 0.0  ;;  %vm288_vm3 = vcmp.eq.f32.partialorder %v3176_v4, 0.0 }
  0x75   :  { %v353_v46 = vsub.f32 1.0, %v352_v10 }
  0x76   :  { %4753 = vst [vmem:[#allocation12_spill] sm:$0xff] %v3224_v38  ;;  %v294_v61 = vsub.f32 0.0, %v3224_v38 }
  0x77   :  { %v354_v15 = vmul.f32 %v2537_v39, %v353_v46 }
  0x78   :  { %v302_v1 = vmul.f32 10.0, %v294_v61 }
  0x79   :  { %v146_v2 = vpop.permute.xlu2 %145  ;;  %v355_v20 = vadd.f32 %v2537_v39, %v354_v15 }
  0x7a   :  { %v3228_v3 = vsel %vm286_vm0, -100000.0, %v302_v1  ;;  %v166_v49 = vmul.f32 %v146_v2, %v3117_v44  ;;  %v363_v44 = vor.u32 1.1754944e-38, %v362_v11  ;;  %vm285_vm0 = vcmp.eq.f32.partialorder %v3127_v48, 0.0 }
  0x7b   :  { %v359_v23 = vsel %vm358_vm4, %v2537_v39, %v355_v20 }
  0x7c   :  { %v3232_v17 = vmul.f32 %v3134_v52, %v166_v49  ;;  %v364_v24 = vsel %vm361_vm6, %v363_v44, %v359_v23 }
  0x7d   :  { %v366_v27 = vsel %vm350_vm8, %v364_v24, 0.0 }
  0x7e   :  { %4754 = vst [vmem:[#allocation13_spill] sm:$0xff] %v3232_v17  ;;  %v295_v9 = vsub.f32 0.0, %v3232_v17  ;;  %v367_v30 = vperm.slane %v366_v27, 0 }
  0x80   :  { %v303_v12 = vmul.f32 10.0, %v295_v9  ;;  %v368_v34 = vmul.f32 %v367_v30, %v3184_v6  ;;  %v369_v37 = vmul.f32 %v367_v30, %v3169_v62  ;;  %v370_v43 = vmul.f32 %v367_v30, %v3180_v5 }
  0x81   :  { %v371_v26 = vmul.f32 %v367_v30, %v3191_v18  ;;  %v372_v47 = vmul.f32 %v367_v30, %v3198_v22  ;;  %v373_v51 = vmul.f32 %v367_v30, %v3205_v28  ;;  %v374_v55 = vmul.f32 %v367_v30, %v3216_v8 }
  0x82   :  { %v3236_v14 = vsel %vm287_vm1, -100000.0, %v303_v12  ;;  %v376_v53 = vadd.f32 1e-08, %v368_v34  ;;  %v377_v16 = vadd.f32 1e-08, %v369_v37  ;;  %v375_v59 = vmul.f32 %v367_v30, %v3212_v36 }
  0x83   :  { %v378_v56 = vadd.f32 1e-08, %v370_v43  ;;  %v379_v60 = vadd.f32 1e-08, %v371_v26  ;;  %v380_v61 = vadd.f32 1e-08, %v372_v47 }
  0x84   :  { %2538 = vlog2.f32 %v376_v53  ;;  %v381_v39 = vadd.f32 1e-08, %v373_v51  ;;  %v382_v11 = vadd.f32 1e-08, %v374_v55  ;;  %v383_v12 = vadd.f32 1e-08, %v375_v59 }
  0x85   :  { %2540 = vlog2.f32 %v377_v16  ;;  %vm283_vm1 = vcmp.eq.f32.partialorder %v3120_v45, 0.0 }
  0x86   :  { %2542 = vlog2.f32 %v378_v56 }
  0x87   :  { %2544 = vlog2.f32 %v379_v60 }
  0x88   :  { %v125_v25 = vpop.permute.xlu1 %124  ;;  %v111_v19 = vpop.permute.xlu0 %110  ;;  %2546 = vlog2.f32 %v380_v61 }
  0x89   :  { %v163_v52 = vmul.f32 %v125_v25, %v3094_v31  ;;  %v161_v29 = vmul.f32 %v111_v19, %v3100_v35  ;;  %2548 = vlog2.f32 %v381_v39 }
  0x8a   :  { %2550 = vlog2.f32 %v382_v11  ;;  %v3320_v11 = vmov 0.0  }
  0x8b   :  { %v3241_v21 = vmul.f32 %v3108_v40, %v163_v52  ;;  %v3244_v33 = vmul.f32 %v3114_v42, %v161_v29  ;;  %2552 = vlog2.f32 %v383_v12  ;;  %v3322_v12 = vmov 0.0  }
  0x8d   :  { %4755 = vst [vmem:[#allocation14_spill] sm:$0xff] %v3241_v21  ;;  %v292_v31 = vsub.f32 0.0, %v3241_v21  ;;  %v290_v35 = vsub.f32 0.0, %v3244_v33 }
  0x8e   :  { %4756 = vst [vmem:[#allocation15_spill] sm:$0xff] %v3244_v33 }
  0x8f   :  { %v300_v50 = vmul.f32 10.0, %v292_v31  ;;  %v298_v54 = vmul.f32 10.0, %v290_v35 }
  0x90   :  { %v132_v57 = vpop.permute.xlu1 %131  ;;  %v118_v58 = vpop.permute.xlu0 %117 }
  0x91   :  { %v3260_v1 = vsel %vm284_vm10, -100000.0, %v300_v50  ;;  %v3262_v42 = vsel %vm282_vm13, -100000.0, %v298_v54  ;;  %v164_v2 = vmul.f32 %v132_v57, %v3111_v41  ;;  %v162_v49 = vmul.f32 %v118_v58, %v3097_v32  ;;  %v2539_v41 = vpop.eup %2538 }
  0x92   :  { %v385_v15 = vmul.f32 0.6931472, %v2539_v41  ;;  %v2541_v44 = vpop.eup %2540  ;;  %v3328_v41 = vmov 0.0  }
  0x93   :  { %v3267_v9 = vmul.f32 %v3127_v48, %v164_v2  ;;  %v3270_v10 = vmul.f32 %v3120_v45, %v162_v49  ;;  %v2543_v24 = vpop.eup %2542  ;;  %v387_v45 = vmul.f32 0.6931472, %v2541_v44  ;;  %v3336_v44 = vmov 0.0  }
  0x94   :  { %v2545_v52 = vpop.eup %2544  ;;  %v389_v29 = vmul.f32 0.6931472, %v2543_v24  ;;  %v3282_v30 = vmul.f32 0.1, %v385_v15  ;;  %v3334_v15 = vmov 0.0   ;;  %v3342_v24 = vmov 0.0  }
  0x95   :  { %4757 = vst [vmem:[#allocation16_spill] sm:$0xff] %v3267_v9  ;;  %v293_v40 = vsub.f32 0.0, %v3267_v9  ;;  %v291_v46 = vsub.f32 0.0, %v3270_v10  ;;  %v2547_v34 = vpop.eup %2546  ;;  %v391_v26 = vmul.f32 0.6931472, %v2545_v52 }
  0x96   :  { %4758 = vst [vmem:[#allocation17_spill] sm:$0xff] %v3270_v10  ;;  %v2549_v47 = vpop.eup %2548  ;;  %v393_v31 = vmul.f32 0.6931472, %v2547_v34  ;;  %v3290_v35 = vmul.f32 0.1, %v387_v45 }
  0x97   :  { %v301_v32 = vmul.f32 10.0, %v293_v40  ;;  %v299_v13 = vmul.f32 10.0, %v291_v46  ;;  %v395_v16 = vmul.f32 0.6931472, %v2549_v47  ;;  %v3296_v50 = vmul.f32 0.1, %v391_v26 }
  0x98   :  { %v160_v20 = vpop.permute.xlu1 %159  ;;  %v153_v23 = vpop.permute.xlu0 %152  ;;  %v3300_v56 = vmul.f32 0.1, %v393_v31  ;;  %v3324_v40 = vmov 0.0   ;;  %v3326_v46 = vmov 0.0  }
  0x99   :  { %v3276_v25 = vsel %vm285_vm0, -100000.0, %v301_v32  ;;  %v3278_v19 = vsel %vm283_vm1, -100000.0, %v299_v13  ;;  %v168_v27 = vmul.f32 %v160_v20, %v3148_v0  ;;  %v167_v48 = vmul.f32 %v153_v23, %v3172_v63  ;;  %v2551_v63 = vpop.eup %2550 }
  0x9a   :  { %v3292_v0 = vmul.f32 0.1, %v389_v29  ;;  %v2553_v54 = vpop.eup %2552  ;;  %v397_v55 = vmul.f32 0.6931472, %v2551_v63  ;;  %4761 = vst [vmem:[#allocation20_spill] sm:$0xff] %v3300_v56  ;;  %v3330_v32 = vmov 0.0  }
  0x9b   :  { %v3285_v37 = vmul.f32 %v3152_v7, %v168_v27  ;;  %v3288_v43 = vmul.f32 %v3176_v4, %v167_v48  ;;  %v399_v59 = vmul.f32 0.6931472, %v2553_v54  ;;  %v3302_v60 = vmul.f32 0.1, %v395_v16 }
  0x9c   :  { %v3304_v61 = vmul.f32 0.1, %v397_v55  ;;  %v3316_v7 = vmov 0.0   ;;  %v3318_v4 = vmov 0.0   ;;  %v3332_v13 = vmov 0.0  }
  0x9d   :  { %4759 = vst [vmem:[#allocation18_spill] sm:$0xff] %v3285_v37  ;;  %v297_v51 = vsub.f32 0.0, %v3285_v37  ;;  %v296_v53 = vsub.f32 0.0, %v3288_v43  ;;  %v3310_v39 = vmul.f32 0.1, %v399_v59  ;;  %v3338_v20 = vmov 0.0  }
  0x9e   :  { %4760 = vst [vmem:[#allocation19_spill] sm:$0xff] %v3288_v43  ;;  %v3340_v23 = vmov 0.0   ;;  %v3344_v27 = vmov 0.0   ;;  %v3346_v48 = vmov 0.0  }
  0x9f   :  { %v305_v57 = vmul.f32 10.0, %v297_v51  ;;  %v304_v58 = vmul.f32 10.0, %v296_v53  ;;  %4762 = vst [vmem:[#allocation21_spill] sm:$0xff] %v3302_v60 }
  0xa0   :  { %4763 = vst [vmem:[#allocation22_spill] sm:$0xff] %v3304_v61 }
  0xa1   :  { %v3306_v2 = vsel %vm289_vm2, -100000.0, %v305_v57  ;;  %v3308_v49 = vsel %vm288_vm3, -100000.0, %v304_v58  ;;  %4766 = vst [vmem:[#allocation25_spill] sm:$0xff] %v3310_v39 }
  0xa2   :  { %4764 = vst [vmem:[#allocation23_spill] sm:$0xff] %v3306_v2 }
  0xa3   :  { %4765 = vst [vmem:[#allocation24_spill] sm:$0xff] %v3308_v49 }
  0xa4 LB: > { %v4769_v56 = vld [vmem:[#allocation20_spill] sm:$0xff]  ;;  %4774 = vst [vmem:[#allocation26_spill] sm:$0xff] %v2976_v7  ;;  %v449_v52 = vrot.slane %v3000_v41, 7  ;;  %v451_v45 = vrot.slane %v2996_v46, 6  ;;  %v453_v29 = vrot.slane %v2992_v40, 5  ;;  %v455_v34 = vrot.slane %v2988_v12, 4  ;;  %v2980_v4 = vphi %v3318_v4, %v4889_v4   ;;  %v2976_v7 = vphi %v3316_v7, %v4888_v7   ;;  %p2972_p0 = pphi %p3312_p0, %p2183_p0   ;;  %s3040_s25 = sphi %s3348_s25, %s4904_s25   ;;  %v3036_v48 = vphi %v3346_v48, %v4903_v48   ;;  %v3032_v27 = vphi %v3344_v27, %v4902_v27   ;;  %v3028_v24 = vphi %v3342_v24, %v4901_v24   ;;  %v3024_v23 = vphi %v3340_v23, %v4900_v23   ;;  %v3020_v20 = vphi %v3338_v20, %v4899_v20   ;;  %v3016_v44 = vphi %v3336_v44, %v4898_v44   ;;  %v3012_v15 = vphi %v3334_v15, %v4897_v15   ;;  %v3008_v13 = vphi %v3332_v13, %v4896_v13   ;;  %v3004_v32 = vphi %v3330_v32, %v4895_v32   ;;  %v3000_v41 = vphi %v3328_v41, %v4894_v41   ;;  %v2996_v46 = vphi %v3326_v46, %v4893_v46   ;;  %v2992_v40 = vphi %v3324_v40, %v4892_v40   ;;  %v2988_v12 = vphi %v3322_v12, %v4891_v12   ;;  %v2984_v11 = vphi %v3320_v11, %v4890_v11  }
  0xa5   : > { %4775 = vst [vmem:[#allocation27_spill] sm:$0xff] %v2980_v4  ;;  %v457_v47 = vrot.slane %v2984_v11, 3  ;;  %v459_v63 = vrot.slane %v2980_v4, 2  ;;  %v433_v51 = vperm.slane %v3036_v48, 0  ;;  %v434_v53 = vperm.slane %v3032_v27, 0  ;;  %s2184_s13 = sadd.s32 5, %s3040_s25  }
  0xa6   : > { %v4772_v60 = vld [vmem:[#allocation21_spill] sm:$0xff]  ;;  %4776 = vst [vmem:[#allocation28_spill] sm:$0xff] %v2984_v11  ;;  %v450_v26 = vsel %vm323_vm5, %v449_v52, %v3004_v32  ;;  %v461_v54 = vrot.slane %v2976_v7, 1  ;;  %v435_v55 = vperm.slane %v3028_v24, 0  ;;  %v436_v57 = vperm.slane %v3024_v23, 0  ;;  %p427_p10 = scmp.lt.s32.totalorder %s2184_s13, 100  ;;  %s4904_s25 = smov %s2184_s13 }
  0xa7   : > { %v4771_v61 = vld [vmem:[#allocation22_spill] sm:$0xff]  ;;  %4777 = vst [vmem:[#allocation29_spill] sm:$0xff] %v2988_v12  ;;  %v452_v31 = vsel %vm326_vm7, %v451_v45, %v450_v26  ;;  %v437_v58 = vperm.slane %v3020_v20, 0  ;;  %v438_v52 = vperm.slane %v3016_v44, 0  ;;  %v439_v45 = vperm.slane %v3012_v15, 0 }
  0xa8   : > { %v4770_v39 = vld [vmem:[#allocation25_spill] sm:$0xff]  ;;  %4778 = vst [vmem:[#allocation30_spill] sm:$0xff] %v2992_v40  ;;  %v454_v16 = vsel %vm329_vm9, %v453_v29, %v452_v31  ;;  %v440_v26 = vperm.slane %v3008_v13, 0  ;;  %vm752_vm4 = vcmask 1040384   ;;  %s763_s27 = scalar_select %p2972_p0, 1, 0 }
  0xa9   : > { %4779 = vst [vmem:[#allocation31_spill] sm:$0xff] %v2996_v46  ;;  %v456_v59 = vsel %vm332_vm11, %v455_v34, %v454_v16  ;;  %v4783_v2 = vld [vmem:[#allocation23_spill] sm:$0xff] }
  0xaa   : > { %4780 = vst [vmem:[#allocation32_spill] sm:$0xff] %v3000_v41  ;;  %v458_v37 = vsel %vm335_vm12, %v457_v47, %v456_v59  ;;  %v4782_v49 = vld [vmem:[#allocation24_spill] sm:$0xff] }
  0xab   : > { %4781 = vst [vmem:[#allocation33_spill] sm:$0xff] %v3004_v32  ;;  %v460_v29 = vsel %vm338_vm14, %v459_v63, %v458_v37 }
  0xac   : > { %v3431_v31 = vsel %vm341_vm15, %v461_v54, %v460_v29 }
  0xad   : > { %v464_v43 = vadd.f32 %v3431_v31, %v433_v51  ;;  %v465_v17 = vadd.f32 %v3431_v31, %v434_v53  ;;  %v466_v38 = vadd.f32 %v3431_v31, %v435_v55  ;;  %v467_v34 = vadd.f32 %v3431_v31, %v436_v57 }
  0xae   : > { %v468_v16 = vadd.f32 %v3431_v31, %v437_v58  ;;  %v469_v9 = vadd.f32 %v3431_v31, %v438_v52  ;;  %v470_v21 = vadd.f32 %v3431_v31, %v439_v45  ;;  %v471_v47 = vadd.f32 %v3431_v31, %v440_v26 }
  0xaf   : > { %v472_v37 = vmul.f32 10.0, %v464_v43  ;;  %v473_v63 = vmul.f32 10.0, %v465_v17  ;;  %v474_v54 = vmul.f32 10.0, %v466_v38  ;;  %v475_v59 = vmul.f32 10.0, %v467_v34 }
  0xb0   : > { %v476_v29 = vmul.f32 10.0, %v468_v16  ;;  %v477_v51 = vmul.f32 10.0, %v469_v9  ;;  %v478_v10 = vmul.f32 10.0, %v470_v21  ;;  %v479_v53 = vmul.f32 10.0, %v471_v47 }
  0xb1   : > { %v480_v55 = vadd.f32 %v472_v37, %v3262_v42  ;;  %v481_v57 = vadd.f32 %v473_v63, %v3278_v19  ;;  %v482_v58 = vadd.f32 %v474_v54, %v3260_v1  ;;  %v483_v52 = vadd.f32 %v475_v59, %v3276_v25 }
  0xb2   : > { %v484_v45 = vadd.f32 %v476_v29, %v3228_v3  ;;  %v485_v26 = vadd.f32 %v477_v51, %v3236_v14  ;;  %v486_v17 = vadd.f32 %v478_v10, %v4782_v49  ;;  %v487_v21 = vadd.f32 %v479_v53, %v4783_v2 }
  0xb3   : > { %v488_v38 = vmul.f32 1.442695, %v480_v55  ;;  %v490_v43 = vmul.f32 1.442695, %v481_v57  ;;  %v492_v34 = vmul.f32 1.442695, %v482_v58 }
  0xb4   : > { %v494_v9 = vmul.f32 1.442695, %v483_v52  ;;  %v496_v16 = vmul.f32 1.442695, %v484_v45  ;;  %v498_v47 = vmul.f32 1.442695, %v485_v26 }
  0xb5   : > { %2554 = vpow2.f32 %v488_v38  ;;  %v500_v37 = vmul.f32 1.442695, %v486_v17  ;;  %v502_v63 = vmul.f32 1.442695, %v487_v21 }
  0xb6   : > { %2556 = vpow2.f32 %v490_v43 }
  0xb7   : > { %2558 = vpow2.f32 %v492_v34 }
  0xb8   : > { %2560 = vpow2.f32 %v494_v9 }
  0xb9   : > { %2562 = vpow2.f32 %v496_v16 }
  0xba   : > { %2564 = vpow2.f32 %v498_v47 }
  0xbb   : > { %v2555_v54 = vpop.eup %2554  ;;  %2566 = vpow2.f32 %v500_v37 }
  0xbc   : > { %v2557_v59 = vpop.eup %2556  ;;  %2568 = vpow2.f32 %v502_v63  ;;  %v504_v10 = vrot.slane %v2555_v54, 4 }
  0xbd   : > { %v2559_v29 = vpop.eup %2558  ;;  %v510_v51 = vrot.slane %v2557_v59, 4 }
  0xbe   : > { %v2561_v55 = vpop.eup %2560  ;;  %v505_v53 = vadd.f32 %v2555_v54, %v504_v10  ;;  %v516_v57 = vrot.slane %v2559_v29, 4 }
  0xbf   : > { %v2563_v58 = vpop.eup %2562  ;;  %v511_v52 = vadd.f32 %v2557_v59, %v510_v51  ;;  %v522_v45 = vrot.slane %v2561_v55, 4 }
  0xc0   : > { %v2565_v26 = vpop.eup %2564  ;;  %v506_v38 = vrot.slane %v505_v53, 2  ;;  %v517_v17 = vadd.f32 %v2559_v29, %v516_v57  ;;  %v528_v43 = vrot.slane %v2563_v58, 4 }
  0xc1   : > { %v2567_v34 = vpop.eup %2566  ;;  %v512_v21 = vrot.slane %v511_v52, 2  ;;  %v523_v9 = vadd.f32 %v2561_v55, %v522_v45  ;;  %v534_v16 = vrot.slane %v2565_v26, 4 }
  0xc2   : > { %v2569_v47 = vpop.eup %2568  ;;  %v507_v37 = vadd.f32 %v506_v38, %v505_v53  ;;  %v518_v63 = vrot.slane %v517_v17, 2  ;;  %v529_v33 = vadd.f32 %v2563_v58, %v528_v43  ;;  %v540_v7 = vrot.slane %v2567_v34, 4 }
  0xc3   : > { %v513_v4 = vadd.f32 %v512_v21, %v511_v52  ;;  %v524_v11 = vrot.slane %v523_v9, 2  ;;  %v535_v54 = vadd.f32 %v2565_v26, %v534_v16  ;;  %v546_v10 = vrot.slane %v2569_v47, 4 }
  0xc4   : > { %v508_v12 = vrot.slane %v507_v37, 1  ;;  %v519_v59 = vadd.f32 %v518_v63, %v517_v17  ;;  %v530_v51 = vrot.slane %v529_v33, 2  ;;  %v541_v40 = vadd.f32 %v2567_v34, %v540_v7 }
  0xc5   : > { %v514_v46 = vrot.slane %v513_v4, 1  ;;  %v525_v29 = vadd.f32 %v524_v11, %v523_v9  ;;  %v536_v57 = vrot.slane %v535_v54, 2  ;;  %v547_v41 = vadd.f32 %v2569_v47, %v546_v10 }
  0xc6   : > { %v509_v32 = vadd.f32 %v508_v12, %v507_v37  ;;  %v520_v55 = vrot.slane %v519_v59, 1  ;;  %v531_v45 = vadd.f32 %v530_v51, %v529_v33  ;;  %v542_v2 = vrot.slane %v541_v40, 2 }
  0xc7   : > { %v515_v53 = vadd.f32 %v514_v46, %v513_v4  ;;  %v526_v38 = vrot.slane %v525_v29, 1  ;;  %v537_v58 = vadd.f32 %v536_v57, %v535_v54  ;;  %v548_v43 = vrot.slane %v547_v41, 2 }
  0xc8   : > { %v521_v52 = vadd.f32 %v520_v55, %v519_v59  ;;  %v532_v21 = vrot.slane %v531_v45, 1  ;;  %v543_v26 = vadd.f32 %v542_v2, %v541_v40  ;;  %v552_v16 = vadd.f32 1e-08, %v509_v32 }
  0xc9   : > { %v527_v49 = vadd.f32 %v526_v38, %v525_v29  ;;  %v538_v17 = vrot.slane %v537_v58, 1  ;;  %v549_v63 = vadd.f32 %v548_v43, %v547_v41  ;;  %v553_v7 = vadd.f32 1e-08, %v515_v53 }
  0xca   : > { %v533_v34 = vadd.f32 %v532_v21, %v531_v45  ;;  %v544_v11 = vrot.slane %v543_v26, 1  ;;  %v554_v9 = vadd.f32 1e-08, %v521_v52  ;;  %2570 = vlog2.f32 %v552_v16 }
  0xcb   : > { %v539_v12 = vadd.f32 %v538_v17, %v537_v58  ;;  %v550_v47 = vrot.slane %v549_v63, 1  ;;  %v555_v33 = vadd.f32 1e-08, %v527_v49  ;;  %2572 = vlog2.f32 %v553_v7 }
  0xcc   : > { %v545_v4 = vadd.f32 %v544_v11, %v543_v26  ;;  %v556_v46 = vadd.f32 1e-08, %v533_v34  ;;  %2574 = vlog2.f32 %v554_v9 }
  0xcd   : > { %v551_v37 = vadd.f32 %v550_v47, %v549_v63  ;;  %v557_v54 = vadd.f32 1e-08, %v539_v12  ;;  %2576 = vlog2.f32 %v555_v33 }
  0xce   : > { %v558_v2 = vadd.f32 1e-08, %v545_v4  ;;  %2578 = vlog2.f32 %v556_v46 }
  0xcf   : > { %v559_v40 = vadd.f32 1e-08, %v551_v37  ;;  %2580 = vlog2.f32 %v557_v54 }
  0xd0   : > { %v2571_v41 = vpop.eup %2570  ;;  %2582 = vlog2.f32 %v558_v2 }
  0xd1   : > { %v2573_v32 = vpop.eup %2572  ;;  %v561_v10 = vmul.f32 0.6931472, %v2571_v41  ;;  %2584 = vlog2.f32 %v559_v40 }
  0xd2   : > { %v2575_v59 = vpop.eup %2574  ;;  %v563_v51 = vmul.f32 0.6931472, %v2573_v32 }
  0xd3   : > { %v2577_v29 = vpop.eup %2576  ;;  %v565_v49 = vmul.f32 0.6931472, %v2575_v59  ;;  %v576_v57 = vmul.f32 0.1, %v561_v10 }
  0xd4   : > { %v2579_v55 = vpop.eup %2578  ;;  %v567_v45 = vmul.f32 0.6931472, %v2577_v29  ;;  %v577_v53 = vmul.f32 0.1, %v563_v51 }
  0xd5   : > { %v2581_v38 = vpop.eup %2580  ;;  %v569_v58 = vmul.f32 0.6931472, %v2579_v55  ;;  %v578_v43 = vmul.f32 0.1, %v565_v49  ;;  %v584_v52 = vsub.f32 %v3282_v30, %v576_v57 }
  0xd6   : > { %v2583_v21 = vpop.eup %2582  ;;  %v571_v26 = vmul.f32 0.6931472, %v2581_v38  ;;  %v579_v16 = vmul.f32 0.1, %v567_v45  ;;  %v585_v17 = vsub.f32 %v3290_v35, %v577_v53 }
  0xd7   : > { %v2585_v63 = vpop.eup %2584  ;;  %v573_v7 = vmul.f32 0.6931472, %v2583_v21  ;;  %v580_v34 = vmul.f32 0.1, %v569_v58  ;;  %v586_v11 = vsub.f32 %v3292_v0, %v578_v43  ;;  %v592_v9 = vadd.f32 %v3036_v48, %v584_v52 }
  0xd8   : > { %v575_v12 = vmul.f32 0.6931472, %v2585_v63  ;;  %v581_v47 = vmul.f32 0.1, %v571_v26  ;;  %v587_v33 = vsub.f32 %v3296_v50, %v579_v16  ;;  %v593_v4 = vadd.f32 %v3032_v27, %v585_v17 }
  0xd9   : > { %v582_v46 = vmul.f32 0.1, %v573_v7  ;;  %v588_v37 = vsub.f32 %v4769_v56, %v580_v34  ;;  %v594_v54 = vadd.f32 %v3028_v24, %v586_v11  ;;  %v3458_v2 = vmul.f32 %v592_v9, %v3184_v6 }
  0xda   : > { %v583_v40 = vmul.f32 0.1, %v575_v12  ;;  %v589_v41 = vsub.f32 %v4772_v60, %v581_v47  ;;  %v595_v32 = vadd.f32 %v3024_v23, %v587_v33  ;;  %v3463_v10 = vmul.f32 %v593_v4, %v3169_v62 }
  0xdb   : > { %v590_v59 = vsub.f32 %v4771_v61, %v582_v46  ;;  %v596_v51 = vadd.f32 %v3020_v20, %v588_v37  ;;  %v3468_v29 = vmul.f32 %v594_v54, %v3180_v5  ;;  %v707_v49 = vsub.f32 %v3458_v2, %v3036_v48 }
  0xdc   : > { %v591_v57 = vsub.f32 %v4770_v39, %v583_v40  ;;  %v597_v55 = vadd.f32 %v3016_v44, %v589_v41  ;;  %v3475_v45 = vmul.f32 %v595_v32, %v3191_v18  ;;  %v708_v53 = vsub.f32 %v3463_v10, %v3032_v27 }
  0xdd   : > { %v598_v38 = vadd.f32 %v3012_v15, %v590_v59  ;;  %v3481_v58 = vmul.f32 %v596_v51, %v3198_v22  ;;  %v709_v43 = vsub.f32 %v3468_v29, %v3028_v24  ;;  %v715_v52 = vand.u32 2147483647, %v707_v49 }
  0xde   : > { %v599_v21 = vadd.f32 %v3008_v13, %v591_v57  ;;  %v3487_v26 = vmul.f32 %v597_v55, %v3205_v28  ;;  %v710_v16 = vsub.f32 %v3475_v45, %v3024_v23  ;;  %v716_v17 = vand.u32 2147483647, %v708_v53 }
  0xdf   : > { %v3492_v63 = vmul.f32 %v598_v38, %v3216_v8  ;;  %v711_v7 = vsub.f32 %v3481_v58, %v3020_v20  ;;  %v717_v34 = vand.u32 2147483647, %v709_v43  ;;  %v608_v11 = vperm.slane %v3458_v2, 0 }
  0xe0   : > { %v3498_v9 = vmul.f32 %v599_v21, %v3212_v36  ;;  %v712_v12 = vsub.f32 %v3487_v26, %v3016_v44  ;;  %v718_v47 = vand.u32 2147483647, %v710_v16  ;;  %v731_v33 = vrot.slane %v716_v17, 7 }
  0xe1   : > { %v713_v4 = vsub.f32 %v3492_v63, %v3012_v15  ;;  %v719_v46 = vand.u32 2147483647, %v711_v7  ;;  %v733_v37 = vrot.slane %v717_v34, 6  ;;  %v609_v54 = vperm.slane %v3463_v10, 0 }
  0xe2   : > { %v714_v40 = vsub.f32 %v3498_v9, %v3008_v13  ;;  %v720_v41 = vand.u32 2147483647, %v712_v12  ;;  %v732_v32 = vsel %vm323_vm5, %v731_v33, %v715_v52  ;;  %v735_v59 = vrot.slane %v718_v47, 5 }
  0xe3   : > { %v721_v51 = vand.u32 2147483647, %v713_v4  ;;  %v734_v49 = vsel %vm326_vm7, %v733_v37, %v732_v32  ;;  %v737_v57 = vrot.slane %v719_v46, 4  ;;  %v610_v55 = vperm.slane %v3468_v29, 0 }
  0xe4   : > { %v722_v53 = vand.u32 2147483647, %v714_v40  ;;  %v736_v38 = vsel %vm329_vm9, %v735_v59, %v734_v49  ;;  %v739_v43 = vrot.slane %v720_v41, 3  ;;  %v611_v21 = vperm.slane %v3475_v45, 0 }
  0xe5   : > { %v738_v16 = vsel %vm332_vm11, %v737_v57, %v736_v38  ;;  %v741_v17 = vrot.slane %v721_v51, 2  ;;  %v612_v7 = vperm.slane %v3481_v58, 0  ;;  %v613_v52 = vperm.slane %v3487_v26, 0 }
  0xe6   : > { %v740_v34 = vsel %vm335_vm12, %v739_v43, %v738_v16  ;;  %v743_v12 = vrot.slane %v722_v53, 1  ;;  %v614_v47 = vperm.slane %v3492_v63, 0  ;;  %v615_v33 = vperm.slane %v3498_v9, 0 }
  0xe7   : > { %v742_v4 = vsel %vm338_vm14, %v741_v17, %v740_v34  ;;  %v616_v46 = vadd.f32 %v608_v11, %v3431_v31  ;;  %v617_v37 = vadd.f32 %v609_v54, %v3431_v31  ;;  %v618_v40 = vadd.f32 %v610_v55, %v3431_v31 }
  0xe8   : > { %v744_v41 = vsel %vm341_vm15, %v743_v12, %v742_v4  ;;  %v619_v32 = vadd.f32 %v611_v21, %v3431_v31  ;;  %v620_v59 = vadd.f32 %v612_v7, %v3431_v31  ;;  %v621_v51 = vadd.f32 %v613_v52, %v3431_v31 }
  0xe9   : > { %v746_v49 = vrot.slane %v744_v41, 4  ;;  %v622_v57 = vadd.f32 %v614_v47, %v3431_v31  ;;  %v624_v53 = vmul.f32 10.0, %v616_v46  ;;  %v625_v38 = vmul.f32 10.0, %v617_v37 }
  0xea   : > { %v626_v43 = vmul.f32 10.0, %v618_v40  ;;  %v627_v16 = vmul.f32 10.0, %v619_v32  ;;  %v628_v11 = vmul.f32 10.0, %v620_v59  ;;  %v623_v54 = vadd.f32 %v615_v33, %v3431_v31 }
  0xeb   : > { %v747_v17 = vadd.f32 %v746_v49, %v744_v41  ;;  %v629_v55 = vmul.f32 10.0, %v621_v51  ;;  %v632_v34 = vadd.f32 %v624_v53, %v3262_v42  ;;  %v633_v21 = vadd.f32 %v625_v38, %v3278_v19  ;;  %v4784_v51 = vld [vmem:[#allocation24_spill] sm:$0xff] }
  0xec   : > { %v634_v7 = vadd.f32 %v626_v43, %v3260_v1  ;;  %v635_v52 = vadd.f32 %v627_v16, %v3276_v25  ;;  %v630_v4 = vmul.f32 10.0, %v622_v57  ;;  %v636_v47 = vadd.f32 %v628_v11, %v3228_v3  ;;  %v4785_v57 = vld [vmem:[#allocation23_spill] sm:$0xff] }
  0xed   : > { %v748_v12 = vrot.slane %v747_v17, 2  ;;  %v640_v46 = vmul.f32 1.442695, %v632_v34  ;;  %v642_v37 = vmul.f32 1.442695, %v633_v21  ;;  %v631_v41 = vmul.f32 10.0, %v623_v54 }
  0xee   : > { %v644_v40 = vmul.f32 1.442695, %v634_v7  ;;  %v637_v31 = vadd.f32 %v629_v55, %v3236_v14  ;;  %v646_v33 = vmul.f32 1.442695, %v635_v52  ;;  %v638_v49 = vadd.f32 %v630_v4, %v4784_v51 }
  0xef   : > { %v749_v32 = vadd.f32 %v748_v12, %v747_v17  ;;  %2586 = vpow2.f32 %v640_v46  ;;  %v648_v53 = vmul.f32 1.442695, %v636_v47  ;;  %v639_v43 = vadd.f32 %v631_v41, %v4785_v57 }
  0xf0   : > { %2588 = vpow2.f32 %v642_v37  ;;  %v650_v16 = vmul.f32 1.442695, %v637_v31  ;;  %v652_v17 = vmul.f32 1.442695, %v638_v49 }
  0xf1   : > { %v750_v59 = vrot.slane %v749_v32, 1  ;;  %2590 = vpow2.f32 %v644_v40  ;;  %v654_v34 = vmul.f32 1.442695, %v639_v43 }
  0xf2   : > { %2592 = vpow2.f32 %v646_v33 }
  0xf3   : > { %v751_v38 = vadd.f32 %v750_v59, %v749_v32  ;;  %2594 = vpow2.f32 %v648_v53  ;;  %v764_v53 = vstv %s763_s27 }
  0xf4   : > { %2596 = vpow2.f32 %v650_v16  ;;  %vm765_vm6 = vcmp.eq.s32.totalorder %v764_v53, 1 }
  0xf5   : > { %v753_v11 = vsel %vm752_vm4, %v751_v38, -inf  ;;  %v2587_v54 = vpop.eup %2586  ;;  %2598 = vpow2.f32 %v652_v17  ;;  %v3542_v16 = vsel %vm765_vm6, %v3036_v48, %v3458_v2  ;;  %v3552_v17 = vsel %vm765_vm6, %v3028_v24, %v3468_v29 }
  0xf6   : > { %754 = vmax.xlane.f32.xlu0 %v753_v11  ;;  %v2589_v55 = vpop.eup %2588  ;;  %2600 = vpow2.f32 %v654_v34  ;;  %v3547_v11 = vsel %vm765_vm6, %v3032_v27, %v3463_v10 }
  0xf7   : > { %v2591_v21 = vpop.eup %2590  ;;  %v656_v7 = vadd.f32 %v2589_v55, %v2587_v54 }
  0xf8   : > { %v2593_v52 = vpop.eup %2592 }
  0xf9   : > { %v657_v12 = vadd.f32 %v2591_v21, %v656_v7  ;;  %v2595_v4 = vpop.eup %2594 }
  0xfa   : > { %v2597_v46 = vpop.eup %2596 }
  0xfb   : > { %v658_v47 = vadd.f32 %v2593_v52, %v657_v12  ;;  %v2599_v40 = vpop.eup %2598 }
  0xfc   : > { %v2601_v41 = vpop.eup %2600 }
  0xfd   : > { %v659_v37 = vadd.f32 %v2595_v4, %v658_v47 }
  0xff   : > { %v660_v32 = vadd.f32 %v2597_v46, %v659_v37  ;;  %v4786_v46 = vld [vmem:[#allocation33_spill] sm:$0xff] }
 0x101   : > { %v661_v31 = vadd.f32 %v2599_v40, %v660_v32  ;;  %v4787_v40 = vld [vmem:[#allocation32_spill] sm:$0xff] }
 0x103   : > { %v662_v33 = vadd.f32 %v2601_v41, %v661_v31  ;;  %v4788_v41 = vld [vmem:[#allocation31_spill] sm:$0xff] }
 0x105   : > { %v663_v59 = vadd.f32 1e-08, %v662_v33  ;;  %v4789_v33 = vld [vmem:[#allocation30_spill] sm:$0xff] }
 0x107   : > { %2602 = vlog2.f32 %v663_v59 }
 0x10d   : > { %v2603_v49 = vpop.eup %2602 }
 0x10e   : > { %v665_v38 = vmul.f32 0.6931472, %v2603_v49  ;;  %v4790_v49 = vld [vmem:[#allocation29_spill] sm:$0xff] }
 0x110   : > { %v666_v43 = vmul.f32 0.1, %v665_v38 }
 0x112   : > { %v668_v54 = vrot.slane %v666_v43, 1  ;;  %v669_v55 = vrot.slane %v666_v43, 2  ;;  %v670_v34 = vrot.slane %v666_v43, 3  ;;  %v671_v21 = vrot.slane %v666_v43, 4 }
 0x113   : > { %v672_v7 = vrot.slane %v666_v43, 5  ;;  %v673_v52 = vrot.slane %v666_v43, 6  ;;  %v674_v12 = vrot.slane %v666_v43, 7  ;;  %v683_v48 = vsub.f32 %v3282_v30, %v666_v43  ;;  %v4791_v43 = vld [vmem:[#allocation28_spill] sm:$0xff] }
 0x114   : > { %v684_v2 = vsub.f32 %v3290_v35, %v668_v54  ;;  %v685_v4 = vsub.f32 %v3292_v0, %v669_v55  ;;  %v686_v27 = vsub.f32 %v3296_v50, %v670_v34  ;;  %v687_v10 = vsub.f32 %v4769_v56, %v671_v21  ;;  %v4792_v55 = vld [vmem:[#allocation27_spill] sm:$0xff]  ;;  %v4793_v21 = vld [vmem:[#allocation26_spill] sm:$0xff] }
 0x115   : > { %v688_v24 = vsub.f32 %v4772_v60, %v672_v7  ;;  %v689_v29 = vsub.f32 %v4771_v61, %v673_v52  ;;  %v690_v47 = vsub.f32 %v4770_v39, %v674_v12  ;;  %v691_v37 = vadd.f32 %v4786_v46, %v683_v48 }
 0x116   : > { %v692_v32 = vadd.f32 %v4787_v40, %v684_v2  ;;  %v693_v31 = vadd.f32 %v4788_v41, %v685_v4  ;;  %v694_v59 = vadd.f32 %v4789_v33, %v686_v27  ;;  %v695_v38 = vadd.f32 %v4790_v49, %v687_v10 }
 0x117   : > { %v696_v54 = vadd.f32 %v4791_v43, %v688_v24  ;;  %v697_v34 = vadd.f32 %v4792_v55, %v689_v29  ;;  %v698_v7 = vadd.f32 %v4793_v21, %v690_v47  ;;  %v699_v52 = vmul.f32 %v691_v37, %v3184_v6 }
 0x118   : > { %v700_v12 = vmul.f32 %v692_v32, %v3169_v62  ;;  %v701_v48 = vmul.f32 %v693_v31, %v3180_v5  ;;  %v702_v2 = vmul.f32 %v694_v59, %v3191_v18  ;;  %v703_v4 = vmul.f32 %v695_v38, %v3198_v22 }
 0x119   : > { %v704_v27 = vmul.f32 %v696_v54, %v3205_v28  ;;  %v705_v10 = vmul.f32 %v697_v34, %v3216_v8  ;;  %v706_v24 = vmul.f32 %v698_v7, %v3212_v36  ;;  %v3580_v29 = vsel %vm765_vm6, %v4786_v46, %v699_v52 }
 0x11a   : > { %4794 = vst [vmem:[#allocation33_spill] sm:$0xff] %v3580_v29  ;;  %v3584_v47 = vsel %vm765_vm6, %v4787_v40, %v700_v12  ;;  %v3588_v37 = vsel %vm765_vm6, %v4788_v41, %v701_v48  ;;  %v3592_v32 = vsel %vm765_vm6, %v4789_v33, %v702_v2  ;;  %v3596_v31 = vsel %vm765_vm6, %v4790_v49, %v703_v4 }
 0x11b   : > { %4795 = vst [vmem:[#allocation32_spill] sm:$0xff] %v3584_v47  ;;  %v3601_v46 = vsel %vm765_vm6, %v3024_v23, %v3475_v45  ;;  %v3605_v40 = vsel %vm765_vm6, %v4791_v43, %v704_v27  ;;  %v3609_v41 = vsel %vm765_vm6, %v4792_v55, %v705_v10  ;;  %v800_v33 = vrot.slane %v3584_v47, 7 }
 0x11c   : > { %4796 = vst [vmem:[#allocation31_spill] sm:$0xff] %v3588_v37  ;;  %v3614_v59 = vsel %vm765_vm6, %v4793_v21, %v706_v24  ;;  %v802_v49 = vrot.slane %v3588_v37, 6  ;;  %v804_v38 = vrot.slane %v3592_v32, 5  ;;  %v806_v23 = vrot.slane %v3596_v31, 4 }
 0x11d   : > { %4797 = vst [vmem:[#allocation30_spill] sm:$0xff] %v3592_v32  ;;  %v3622_v45 = vsel %vm765_vm6, %v3020_v20, %v3481_v58  ;;  %v3627_v43 = vsel %vm765_vm6, %v3016_v44, %v3487_v26  ;;  %v801_v54 = vsel %vm323_vm5, %v800_v33, %v3580_v29  ;;  %v808_v55 = vrot.slane %v3605_v40, 3 }
 0x11e   : > { %4798 = vst [vmem:[#allocation29_spill] sm:$0xff] %v3596_v31  ;;  %v3635_v34 = vsel %vm765_vm6, %v3012_v15, %v3492_v63  ;;  %v3640_v20 = vsel %vm765_vm6, %v3008_v13, %v3498_v9  ;;  %v803_v58 = vsel %vm326_vm7, %v802_v49, %v801_v54  ;;  %v810_v44 = vrot.slane %v3609_v41, 2 }
 0x11f   : > { %4799 = vst [vmem:[#allocation28_spill] sm:$0xff] %v3605_v40  ;;  %v784_v26 = vperm.slane %v3542_v16, 0  ;;  %v785_v21 = vperm.slane %v3547_v11, 0  ;;  %v805_v7 = vsel %vm329_vm9, %v804_v38, %v803_v58  ;;  %v812_v52 = vrot.slane %v3614_v59, 1 }
 0x120   : > { %4800 = vst [vmem:[#allocation27_spill] sm:$0xff] %v3609_v41  ;;  %v786_v15 = vperm.slane %v3552_v17, 0  ;;  %v787_v63 = vperm.slane %v3601_v46, 0  ;;  %v788_v53 = vperm.slane %v3622_v45, 0  ;;  %v807_v13 = vsel %vm332_vm11, %v806_v23, %v805_v7 }
 0x121   : > { %4801 = vst [vmem:[#allocation26_spill] sm:$0xff] %v3614_v59  ;;  %v789_v9 = vperm.slane %v3627_v43, 0  ;;  %v790_v12 = vperm.slane %v3635_v34, 0  ;;  %v791_v48 = vperm.slane %v3640_v20, 0  ;;  %v809_v2 = vsel %vm335_vm12, %v808_v55, %v807_v13 }
 0x122   : > { %v811_v4 = vsel %vm338_vm14, %v810_v44, %v809_v2 }
 0x123   : > { %v3658_v27 = vsel %vm341_vm15, %v812_v52, %v811_v4 }
 0x124   : > { %v815_v10 = vadd.f32 %v3658_v27, %v784_v26  ;;  %v816_v24 = vadd.f32 %v3658_v27, %v785_v21  ;;  %v817_v33 = vadd.f32 %v3658_v27, %v786_v15  ;;  %v818_v49 = vadd.f32 %v3658_v27, %v787_v63 }
 0x125   : > { %v819_v38 = vadd.f32 %v3658_v27, %v788_v53  ;;  %v820_v23 = vadd.f32 %v3658_v27, %v789_v9  ;;  %v821_v54 = vadd.f32 %v3658_v27, %v790_v12  ;;  %v822_v55 = vadd.f32 %v3658_v27, %v791_v48 }
 0x126   : > { %v823_v58 = vmul.f32 10.0, %v815_v10  ;;  %v824_v44 = vmul.f32 10.0, %v816_v24  ;;  %v825_v7 = vmul.f32 10.0, %v817_v33  ;;  %v826_v52 = vmul.f32 10.0, %v818_v49 }
 0x127   : > { %v827_v13 = vmul.f32 10.0, %v819_v38  ;;  %v828_v26 = vmul.f32 10.0, %v820_v23  ;;  %v829_v2 = vmul.f32 10.0, %v821_v54  ;;  %v830_v21 = vmul.f32 10.0, %v822_v55 }
 0x128   : > { %v831_v15 = vadd.f32 %v823_v58, %v3262_v42  ;;  %v832_v63 = vadd.f32 %v824_v44, %v3278_v19  ;;  %v833_v53 = vadd.f32 %v825_v7, %v3260_v1  ;;  %v834_v9 = vadd.f32 %v826_v52, %v3276_v25 }
 0x129   : > { %v835_v12 = vadd.f32 %v827_v13, %v3228_v3  ;;  %v836_v48 = vadd.f32 %v828_v26, %v3236_v14  ;;  %v837_v4 = vadd.f32 %v829_v2, %v4784_v51  ;;  %v838_v49 = vadd.f32 %v830_v21, %v4785_v57 }
 0x12a   : > { %v839_v10 = vmul.f32 1.442695, %v831_v15  ;;  %v841_v24 = vmul.f32 1.442695, %v832_v63  ;;  %v843_v33 = vmul.f32 1.442695, %v833_v53 }
 0x12b   : > { %v845_v38 = vmul.f32 1.442695, %v834_v9  ;;  %v847_v23 = vmul.f32 1.442695, %v835_v12  ;;  %v849_v54 = vmul.f32 1.442695, %v836_v48 }
 0x12c   : > { %2604 = vpow2.f32 %v839_v10  ;;  %v851_v55 = vmul.f32 1.442695, %v837_v4  ;;  %v853_v58 = vmul.f32 1.442695, %v838_v49 }
 0x12d   : > { %2606 = vpow2.f32 %v841_v24 }
 0x12e   : > { %2608 = vpow2.f32 %v843_v33 }
 0x12f   : > { %2610 = vpow2.f32 %v845_v38 }
 0x130   : > { %2612 = vpow2.f32 %v847_v23 }
 0x131   : > { %2614 = vpow2.f32 %v849_v54 }
 0x132   : > { %v2605_v44 = vpop.eup %2604  ;;  %2616 = vpow2.f32 %v851_v55 }
 0x133   : > { %v2607_v7 = vpop.eup %2606  ;;  %2618 = vpow2.f32 %v853_v58  ;;  %v855_v52 = vrot.slane %v2605_v44, 4 }
 0x134   : > { %v2609_v13 = vpop.eup %2608  ;;  %v861_v26 = vrot.slane %v2607_v7, 4 }
 0x135   : > { %v2611_v2 = vpop.eup %2610  ;;  %v856_v21 = vadd.f32 %v2605_v44, %v855_v52  ;;  %v867_v15 = vrot.slane %v2609_v13, 4 }
 0x136   : > { %v2613_v63 = vpop.eup %2612  ;;  %v862_v53 = vadd.f32 %v2607_v7, %v861_v26  ;;  %v873_v9 = vrot.slane %v2611_v2, 4 }
 0x137   : > { %v2615_v12 = vpop.eup %2614  ;;  %v857_v48 = vrot.slane %v856_v21, 2  ;;  %v868_v4 = vadd.f32 %v2609_v13, %v867_v15  ;;  %v879_v10 = vrot.slane %v2613_v63, 4 }
 0x138   : > { %v2617_v24 = vpop.eup %2616  ;;  %v863_v33 = vrot.slane %v862_v53, 2  ;;  %v874_v49 = vadd.f32 %v2611_v2, %v873_v9  ;;  %v885_v38 = vrot.slane %v2615_v12, 4 }
 0x139   : > { %v2619_v23 = vpop.eup %2618  ;;  %v858_v54 = vadd.f32 %v857_v48, %v856_v21  ;;  %v869_v55 = vrot.slane %v868_v4, 2  ;;  %v880_v58 = vadd.f32 %v2613_v63, %v879_v10  ;;  %v891_v59 = vrot.slane %v2617_v24, 4 }
 0x13a   : > { %v864_v41 = vadd.f32 %v863_v33, %v862_v53  ;;  %v875_v40 = vrot.slane %v874_v49, 2  ;;  %v886_v44 = vadd.f32 %v2615_v12, %v885_v38  ;;  %v897_v52 = vrot.slane %v2619_v23, 4 }
 0x13b   : > { %v859_v29 = vrot.slane %v858_v54, 1  ;;  %v870_v7 = vadd.f32 %v869_v55, %v868_v4  ;;  %v881_v26 = vrot.slane %v880_v58, 2  ;;  %v892_v31 = vadd.f32 %v2617_v24, %v891_v59 }
 0x13c   : > { %v865_v32 = vrot.slane %v864_v41, 1  ;;  %v876_v13 = vadd.f32 %v875_v40, %v874_v49  ;;  %v887_v15 = vrot.slane %v886_v44, 2  ;;  %v898_v37 = vadd.f32 %v2619_v23, %v897_v52 }
 0x13d   : > { %v860_v47 = vadd.f32 %v859_v29, %v858_v54  ;;  %v871_v2 = vrot.slane %v870_v7, 1  ;;  %v882_v9 = vadd.f32 %v881_v26, %v880_v58  ;;  %v893_v57 = vrot.slane %v892_v31, 2 }
 0x13e   : > { %v866_v21 = vadd.f32 %v865_v32, %v864_v41  ;;  %v877_v48 = vrot.slane %v876_v13, 1  ;;  %v888_v63 = vadd.f32 %v887_v15, %v886_v44  ;;  %v899_v10 = vrot.slane %v898_v37, 2 }
 0x13f   : > { %v872_v53 = vadd.f32 %v871_v2, %v870_v7  ;;  %v883_v33 = vrot.slane %v882_v9, 1  ;;  %v894_v12 = vadd.f32 %v893_v57, %v892_v31  ;;  %v903_v38 = vadd.f32 1e-08, %v860_v47 }
 0x140   : > { %v878_v51 = vadd.f32 %v877_v48, %v876_v13  ;;  %v889_v4 = vrot.slane %v888_v63, 1  ;;  %v900_v55 = vadd.f32 %v899_v10, %v898_v37  ;;  %v904_v59 = vadd.f32 1e-08, %v866_v21 }
 0x141   : > { %v884_v24 = vadd.f32 %v883_v33, %v882_v9  ;;  %v895_v40 = vrot.slane %v894_v12, 1  ;;  %v905_v49 = vadd.f32 1e-08, %v872_v53  ;;  %2620 = vlog2.f32 %v903_v38 }
 0x142   : > { %v890_v29 = vadd.f32 %v889_v4, %v888_v63  ;;  %v901_v23 = vrot.slane %v900_v55, 1  ;;  %v906_v54 = vadd.f32 1e-08, %v878_v51  ;;  %2622 = vlog2.f32 %v904_v59 }
 0x143   : > { %v896_v32 = vadd.f32 %v895_v40, %v894_v12  ;;  %v907_v41 = vadd.f32 1e-08, %v884_v24  ;;  %2624 = vlog2.f32 %v905_v49 }
 0x144   : > { %v902_v58 = vadd.f32 %v901_v23, %v900_v55  ;;  %v908_v44 = vadd.f32 1e-08, %v890_v29  ;;  %2626 = vlog2.f32 %v906_v54 }
 0x145   : > { %v909_v57 = vadd.f32 1e-08, %v896_v32  ;;  %2628 = vlog2.f32 %v907_v41 }
 0x146   : > { %v910_v47 = vadd.f32 1e-08, %v902_v58  ;;  %2630 = vlog2.f32 %v908_v44 }
 0x147   : > { %v2621_v37 = vpop.eup %2620  ;;  %2632 = vlog2.f32 %v909_v57 }
 0x148   : > { %v2623_v31 = vpop.eup %2622  ;;  %v912_v52 = vmul.f32 0.6931472, %v2621_v37  ;;  %2634 = vlog2.f32 %v910_v47 }
 0x149   : > { %v2625_v7 = vpop.eup %2624  ;;  %v914_v26 = vmul.f32 0.6931472, %v2623_v31 }
 0x14a   : > { %v2627_v13 = vpop.eup %2626  ;;  %v916_v51 = vmul.f32 0.6931472, %v2625_v7  ;;  %v927_v15 = vmul.f32 0.1, %v912_v52 }
 0x14b   : > { %v2629_v2 = vpop.eup %2628  ;;  %v918_v9 = vmul.f32 0.6931472, %v2627_v13  ;;  %v928_v21 = vmul.f32 0.1, %v914_v26 }
 0x14c   : > { %v2631_v48 = vpop.eup %2630  ;;  %v920_v63 = vmul.f32 0.6931472, %v2629_v2  ;;  %v929_v10 = vmul.f32 0.1, %v916_v51  ;;  %v935_v53 = vsub.f32 %v3282_v30, %v927_v15 }
 0x14d   : > { %v2633_v33 = vpop.eup %2632  ;;  %v922_v12 = vmul.f32 0.6931472, %v2631_v48  ;;  %v930_v38 = vmul.f32 0.1, %v918_v9  ;;  %v936_v4 = vsub.f32 %v3290_v35, %v928_v21 }
 0x14e   : > { %v2635_v55 = vpop.eup %2634  ;;  %v924_v59 = vmul.f32 0.6931472, %v2633_v33  ;;  %v931_v24 = vmul.f32 0.1, %v920_v63  ;;  %v937_v40 = vsub.f32 %v3292_v0, %v929_v10  ;;  %v943_v49 = vadd.f32 %v935_v53, %v3542_v16 }
 0x14f   : > { %v926_v29 = vmul.f32 0.6931472, %v2635_v55  ;;  %v932_v23 = vmul.f32 0.1, %v922_v12  ;;  %v938_v54 = vsub.f32 %v3296_v50, %v930_v38  ;;  %v944_v32 = vadd.f32 %v936_v4, %v3547_v11 }
 0x150   : > { %v933_v41 = vmul.f32 0.1, %v924_v59  ;;  %v939_v58 = vsub.f32 %v4769_v56, %v931_v24  ;;  %v945_v44 = vadd.f32 %v937_v40, %v3552_v17  ;;  %v3685_v57 = vmul.f32 %v943_v49, %v3184_v6 }
 0x151   : > { %v934_v47 = vmul.f32 0.1, %v926_v29  ;;  %v940_v37 = vsub.f32 %v4772_v60, %v932_v23  ;;  %v946_v31 = vadd.f32 %v938_v54, %v3601_v46  ;;  %v3690_v52 = vmul.f32 %v944_v32, %v3169_v62 }
 0x152   : > { %v941_v7 = vsub.f32 %v4771_v61, %v933_v41  ;;  %v947_v26 = vadd.f32 %v939_v58, %v3622_v45  ;;  %v3695_v13 = vmul.f32 %v945_v44, %v3180_v5  ;;  %v1058_v51 = vsub.f32 %v3685_v57, %v3542_v16 }
 0x153   : > { %v942_v15 = vsub.f32 %v4770_v39, %v934_v47  ;;  %v948_v2 = vadd.f32 %v940_v37, %v3627_v43  ;;  %v3702_v9 = vmul.f32 %v946_v31, %v3191_v18  ;;  %v1059_v21 = vsub.f32 %v3690_v52, %v3547_v11 }
 0x154   : > { %v949_v48 = vadd.f32 %v941_v7, %v3635_v34  ;;  %v3708_v63 = vmul.f32 %v947_v26, %v3198_v22  ;;  %v1060_v10 = vsub.f32 %v3695_v13, %v3552_v17  ;;  %v1066_v53 = vand.u32 2147483647, %v1058_v51 }
 0x155   : > { %v950_v33 = vadd.f32 %v942_v15, %v3640_v20  ;;  %v3714_v12 = vmul.f32 %v948_v2, %v3205_v28  ;;  %v1061_v38 = vsub.f32 %v3702_v9, %v3601_v46  ;;  %v1067_v4 = vand.u32 2147483647, %v1059_v21 }
 0x156   : > { %v3719_v55 = vmul.f32 %v949_v48, %v3216_v8  ;;  %v1062_v59 = vsub.f32 %v3708_v63, %v3622_v45  ;;  %v1068_v24 = vand.u32 2147483647, %v1060_v10 }
 0x157   : > { %v3724_v40 = vmul.f32 %v950_v33, %v3212_v36  ;;  %v1063_v49 = vsub.f32 %v3714_v12, %v3627_v43  ;;  %v1069_v29 = vand.u32 2147483647, %v1061_v38  ;;  %v1082_v23 = vrot.slane %v1067_v4, 7 }
 0x158   : > { %v1064_v54 = vsub.f32 %v3719_v55, %v3635_v34  ;;  %v1070_v32 = vand.u32 2147483647, %v1062_v59  ;;  %v1084_v41 = vrot.slane %v1068_v24, 6 }
 0x159   : > { %v1065_v58 = vsub.f32 %v3724_v40, %v3640_v20  ;;  %v1071_v44 = vand.u32 2147483647, %v1063_v49  ;;  %v1083_v47 = vsel %vm323_vm5, %v1082_v23, %v1066_v53  ;;  %v1086_v37 = vrot.slane %v1069_v29, 5 }
 0x15a   : > { %v1072_v31 = vand.u32 2147483647, %v1064_v54  ;;  %v1085_v7 = vsel %vm326_vm7, %v1084_v41, %v1083_v47  ;;  %v1088_v26 = vrot.slane %v1070_v32, 4  ;;  %v959_v29 = vperm.slane %v3685_v57, 0 }
 0x15b   : > { %v1073_v51 = vand.u32 2147483647, %v1065_v58  ;;  %v1087_v15 = vsel %vm329_vm9, %v1086_v37, %v1085_v7  ;;  %v1090_v2 = vrot.slane %v1071_v44, 3  ;;  %v960_v23 = vperm.slane %v3690_v52, 0 }
 0x15c   : > { %v1089_v21 = vsel %vm332_vm11, %v1088_v26, %v1087_v15  ;;  %v1092_v48 = vrot.slane %v1072_v31, 2  ;;  %v961_v58 = vperm.slane %v3695_v13, 0  ;;  %v967_v44 = vadd.f32 %v959_v29, %v3658_v27 }
 0x15d   : > { %v1091_v10 = vsel %vm335_vm12, %v1090_v2, %v1089_v21  ;;  %v1094_v33 = vrot.slane %v1073_v51, 1  ;;  %v968_v47 = vadd.f32 %v960_v23, %v3658_v27  ;;  %v962_v7 = vperm.slane %v3702_v9, 0 }
 0x15e   : > { %v1093_v38 = vsel %vm338_vm14, %v1092_v48, %v1091_v10  ;;  %v969_v26 = vadd.f32 %v961_v58, %v3658_v27  ;;  %v975_v51 = vmul.f32 10.0, %v967_v44  ;;  %v963_v48 = vperm.slane %v3708_v63, 0 }
 0x15f   : > { %v1095_v4 = vsel %vm341_vm15, %v1094_v33, %v1093_v38  ;;  %v976_v2 = vmul.f32 10.0, %v968_v47  ;;  %v970_v10 = vadd.f32 %v962_v7, %v3658_v27  ;;  %v966_v7 = vperm.slane %v3724_v40, 0 }
 0x160   : > { %v1097_v53 = vrot.slane %v1095_v4, 4  ;;  %v977_v33 = vmul.f32 10.0, %v969_v26  ;;  %v983_v38 = vadd.f32 %v975_v51, %v3262_v42 }
 0x162   : > { %v1098_v59 = vadd.f32 %v1097_v53, %v1095_v4  ;;  %v984_v4 = vadd.f32 %v976_v2, %v3278_v19  ;;  %v985_v29 = vadd.f32 %v977_v33, %v3260_v1  ;;  %v991_v23 = vmul.f32 1.442695, %v983_v38 }
 0x164   : > { %v1099_v24 = vrot.slane %v1098_v59, 2  ;;  %2636 = vpow2.f32 %v991_v23 }
 0x166   : > { %v1100_v49 = vadd.f32 %v1099_v24, %v1098_v59  ;;  %v964_v59 = vperm.slane %v3714_v12, 0  ;;  %v971_v24 = vadd.f32 %v963_v48, %v3658_v27 }
 0x168   : > { %v1101_v54 = vrot.slane %v1100_v49, 1  ;;  %v972_v58 = vadd.f32 %v964_v59, %v3658_v27  ;;  %v979_v44 = vmul.f32 10.0, %v971_v24 }
 0x169   : > { %v755_v32 = vpop.xlane.xlu0 %754 }
 0x16a   : > { %v756_v41 = vrot.slane %v755_v32, 4  ;;  %v1102_v37 = vadd.f32 %v1101_v54, %v1100_v49  ;;  %v978_v49 = vmul.f32 10.0, %v970_v10  ;;  %v993_v54 = vmul.f32 1.442695, %v984_v4  ;;  %v4802_v4 = vld [vmem:[#allocation24_spill] sm:$0xff]  ;;  %v2637_v24 = vpop.eup %2636 }
 0x16b   : > { %v980_v51 = vmul.f32 10.0, %v972_v58 }
 0x16c   : > { %v757_v31 = vmax.f32 %v755_v32, %v756_v41  ;;  %v1103_v15 = vsel %vm752_vm4, %v1102_v37, -inf  ;;  %v965_v41 = vperm.slane %v3719_v55, 0  ;;  %v986_v47 = vadd.f32 %v978_v49, %v3276_v25  ;;  %v4803_v49 = vld [vmem:[#allocation23_spill] sm:$0xff] }
 0x16d   : > { %1104 = vmax.xlane.f32.xlu0 %v1103_v15  ;;  %v995_v37 = vmul.f32 1.442695, %v985_v29  ;;  %v987_v15 = vadd.f32 %v979_v44, %v3228_v3  ;;  %2638 = vpow2.f32 %v993_v54  ;;  %v988_v10 = vadd.f32 %v980_v51, %v3236_v14 }
 0x16e   : > { %v758_v21 = vrot.slane %v757_v31, 2  ;;  %v973_v26 = vadd.f32 %v965_v41, %v3658_v27  ;;  %v997_v2 = vmul.f32 1.442695, %v986_v47 }
 0x16f   : > { %2640 = vpow2.f32 %v995_v37  ;;  %v999_v33 = vmul.f32 1.442695, %v987_v15  ;;  %v1001_v59 = vmul.f32 1.442695, %v988_v10 }
 0x170   : > { %v759_v53 = vmax.f32 %v757_v31, %v758_v21  ;;  %v974_v21 = vadd.f32 %v966_v7, %v3658_v27  ;;  %v981_v48 = vmul.f32 10.0, %v973_v26  ;;  %2642 = vpow2.f32 %v997_v2 }
 0x171   : > { %2644 = vpow2.f32 %v999_v33 }
 0x172   : > { %v760_v32 = vrot.slane %v759_v53, 1  ;;  %v982_v38 = vmul.f32 10.0, %v974_v21  ;;  %2646 = vpow2.f32 %v1001_v59 }
 0x173   : > { %v2639_v54 = vpop.eup %2638 }
 0x174   : > { %v761_v31 = vmax.f32 %v759_v53, %v760_v32  ;;  %v989_v53 = vadd.f32 %v981_v48, %v4802_v4  ;;  %v990_v29 = vadd.f32 %v982_v38, %v4803_v49  ;;  %v1007_v41 = vadd.f32 %v2639_v54, %v2637_v24 }
 0x175   : > { %v2641_v32 = vpop.eup %2640 }
 0x176   : > { %2373 = vpush %v761_v31  ;;  %v1003_v23 = vmul.f32 1.442695, %v989_v53  ;;  %v2643_v27 = vpop.eup %2642  ;;  %v1005_v58 = vmul.f32 1.442695, %v990_v29  ;;  %v1008_v44 = vadd.f32 %v2641_v32, %v1007_v41 }
 0x177   : > { %v2645_v47 = vpop.eup %2644 }
 0x178   : > { %2648 = vpow2.f32 %v1003_v23  ;;  %v1009_v37 = vadd.f32 %v2643_v27, %v1008_v44  ;;  %v2647_v31 = vpop.eup %2646 }
 0x179   : > { %2650 = vpow2.f32 %v1005_v58 }
 0x17a   : > { %v1010_v7 = vadd.f32 %v2645_v47, %v1009_v37 }
 0x17c   : > { %v1011_v51 = vadd.f32 %v2647_v31, %v1010_v7  ;;  %v4805_v31 = vld [vmem:[#allocation32_spill] sm:$0xff] }
 0x17e   : > { %v2649_v26 = vpop.eup %2648 }
 0x17f   : > { %v1012_v15 = vadd.f32 %v2649_v26, %v1011_v51  ;;  %v2651_v2 = vpop.eup %2650  ;;  %v4806_v26 = vld [vmem:[#allocation31_spill] sm:$0xff] }
 0x181   : > { %v1013_v21 = vadd.f32 %v2651_v2, %v1012_v15 }
 0x183   : > { %v1014_v48 = vadd.f32 1e-08, %v1013_v21  ;;  %v4807_v21 = vld [vmem:[#allocation30_spill] sm:$0xff] }
 0x185   : > { %2652 = vlog2.f32 %v1014_v48 }
 0x18b   : > { %v2653_v10 = vpop.eup %2652 }
 0x18c   : > { %v1016_v33 = vmul.f32 0.6931472, %v2653_v10  ;;  %v4808_v10 = vld [vmem:[#allocation29_spill] sm:$0xff] }
 0x18e   : > { %v1017_v38 = vmul.f32 0.1, %v1016_v33 }
 0x190   : > { %v1019_v53 = vrot.slane %v1017_v38, 1  ;;  %v1020_v59 = vrot.slane %v1017_v38, 2  ;;  %v1021_v24 = vrot.slane %v1017_v38, 3  ;;  %v1022_v29 = vrot.slane %v1017_v38, 4 }
 0x191   : > { %v1023_v23 = vrot.slane %v1017_v38, 5  ;;  %v1024_v41 = vrot.slane %v1017_v38, 6  ;;  %v1025_v27 = vrot.slane %v1017_v38, 7  ;;  %v1034_v47 = vsub.f32 %v3282_v30, %v1017_v38  ;;  %v4810_v38 = vld [vmem:[#allocation28_spill] sm:$0xff] }
 0x192   : > { %v1035_v54 = vsub.f32 %v3290_v35, %v1019_v53  ;;  %v1036_v32 = vsub.f32 %v3292_v0, %v1020_v59  ;;  %v1037_v58 = vsub.f32 %v3296_v50, %v1021_v24  ;;  %v1038_v44 = vsub.f32 %v4769_v56, %v1022_v29  ;;  %v4809_v59 = vld [vmem:[#allocation33_spill] sm:$0xff] }
 0x193   : > { %v1039_v37 = vsub.f32 %v4772_v60, %v1023_v23  ;;  %v1040_v15 = vsub.f32 %v4771_v61, %v1024_v41  ;;  %v1041_v2 = vsub.f32 %v4770_v39, %v1025_v27  ;;  %v1042_v24 = vadd.f32 %v1034_v47, %v4809_v59  ;;  %v4812_v41 = vld [vmem:[#allocation26_spill] sm:$0xff] }
 0x194   : > { %v1043_v7 = vadd.f32 %v1035_v54, %v4805_v31  ;;  %v1044_v51 = vadd.f32 %v1036_v32, %v4806_v26  ;;  %v1045_v48 = vadd.f32 %v1037_v58, %v4807_v21  ;;  %v1046_v33 = vadd.f32 %v1038_v44, %v4808_v10  ;;  %v4811_v32 = vld [vmem:[#allocation27_spill] sm:$0xff] }
 0x195   : > { %v1047_v29 = vadd.f32 %v1039_v37, %v4810_v38  ;;  %v1048_v60 = vadd.f32 %v1040_v15, %v4811_v32  ;;  %v1049_v61 = vadd.f32 %v1041_v2, %v4812_v41  ;;  %v1050_v44 = vmul.f32 %v1042_v24, %v3184_v6 }
 0x196   : > { %v1051_v23 = vmul.f32 %v1043_v7, %v3169_v62  ;;  %v1052_v54 = vmul.f32 %v1044_v51, %v3180_v5  ;;  %v1053_v27 = vmul.f32 %v1045_v48, %v3191_v18  ;;  %v1054_v58 = vmul.f32 %v1046_v33, %v3198_v22 }
 0x197   : > { %v1055_v39 = vmul.f32 %v1047_v29, %v3205_v28  ;;  %v1056_v7 = vmul.f32 %v1048_v60, %v3216_v8  ;;  %v1057_v51 = vmul.f32 %v1049_v61, %v3212_v36 }
 0x1a7   : > { %s2374_s28 = spop %2373 }
 0x1a8   : > { %p782_p1 = scmp.lt.f32.partialorder %s2374_s28, 0.1 }
 0x1aa   : > { %p3769_p2 = por %p2972_p0, %p782_p1 }
 0x1ac   : > { %s1113_s30 = scalar_select %p3769_p2, 1, 0 }
 0x1ae   : > { %v1114_v53 = vstv %s1113_s30 }
 0x1af   : > { %vm1115_vm8 = vcmp.eq.s32.totalorder %v1114_v53, 1 }
 0x1b0   : > { %v3796_v47 = vsel %vm1115_vm8, %v4805_v31, %v1051_v23  ;;  %v3800_v37 = vsel %vm1115_vm8, %v4806_v26, %v1052_v54  ;;  %v3806_v15 = vsel %vm1115_vm8, %v4807_v21, %v1053_v27  ;;  %v3810_v2 = vsel %vm1115_vm8, %v4808_v10, %v1054_v58 }
 0x1b1   : > { %4813 = vst [vmem:[#allocation32_spill] sm:$0xff] %v3800_v37  ;;  %v1150_v48 = vrot.slane %v3796_v47, 7  ;;  %v1152_v31 = vrot.slane %v3800_v37, 6  ;;  %v3817_v26 = vsel %vm1115_vm8, %v3542_v16, %v3685_v57  ;;  %v3822_v60 = vsel %vm1115_vm8, %v3547_v11, %v3690_v52 }
 0x1b2   : > { %4814 = vst [vmem:[#allocation31_spill] sm:$0xff] %v3806_v15  ;;  %v3826_v61 = vsel %vm1115_vm8, %v4809_v59, %v1050_v44  ;;  %v3830_v21 = vsel %vm1115_vm8, %v4810_v38, %v1055_v39  ;;  %v3835_v10 = vsel %vm1115_vm8, %v3552_v17, %v3695_v13  ;;  %v3839_v16 = vsel %vm1115_vm8, %v4811_v32, %v1056_v7 }
 0x1b3   : > { %4815 = vst [vmem:[#allocation30_spill] sm:$0xff] %v3810_v2  ;;  %v1151_v11 = vsel %vm323_vm5, %v1150_v48, %v3826_v61  ;;  %v1154_v57 = vrot.slane %v3806_v15, 5  ;;  %v3847_v52 = vsel %vm1115_vm8, %v3601_v46, %v3702_v9  ;;  %v3851_v39 = vsel %vm1115_vm8, %v4812_v41, %v1057_v51 }
 0x1b4   : > { %4816 = vst [vmem:[#allocation29_spill] sm:$0xff] %v3826_v61  ;;  %v1153_v17 = vsel %vm326_vm7, %v1152_v31, %v1151_v11  ;;  %v1156_v13 = vrot.slane %v3810_v2, 4  ;;  %v3858_v33 = vsel %vm1115_vm8, %v3622_v45, %v3708_v63  ;;  %v3863_v59 = vsel %vm1115_vm8, %v3627_v43, %v3714_v12 }
 0x1b5   : > { %4817 = vst [vmem:[#allocation33_spill] sm:$0xff] %v3830_v21  ;;  %v1155_v46 = vsel %vm329_vm9, %v1154_v57, %v1153_v17  ;;  %v1158_v9 = vrot.slane %v3830_v21, 3  ;;  %v3870_v24 = vsel %vm1115_vm8, %v3635_v34, %v3719_v55  ;;  %v3875_v38 = vsel %vm1115_vm8, %v3640_v20, %v3724_v40 }
 0x1b6   : > { %4818 = vst [vmem:[#allocation28_spill] sm:$0xff] %v3839_v16  ;;  %v1157_v45 = vsel %vm332_vm11, %v1156_v13, %v1155_v46  ;;  %v1160_v63 = vrot.slane %v3839_v16, 2  ;;  %v1134_v43 = vperm.slane %v3817_v26, 0  ;;  %v1135_v12 = vperm.slane %v3822_v60, 0 }
 0x1b7   : > { %4819 = vst [vmem:[#allocation27_spill] sm:$0xff] %v3851_v39  ;;  %v1159_v29 = vsel %vm335_vm12, %v1158_v9, %v1157_v45  ;;  %v1162_v23 = vrot.slane %v3851_v39, 1  ;;  %v1136_v34 = vperm.slane %v3835_v10, 0  ;;  %v1137_v55 = vperm.slane %v3847_v52, 0 }
 0x1b8   : > { %4820 = vst [vmem:[#allocation26_spill] sm:$0xff] %v3875_v38  ;;  %v1138_v53 = vperm.slane %v3858_v33, 0  ;;  %v1161_v20 = vsel %vm338_vm14, %v1160_v63, %v1159_v29  ;;  %v1139_v40 = vperm.slane %v3863_v59, 0  ;;  %v1140_v54 = vperm.slane %v3870_v24, 0 }
 0x1b9   : > { %v1141_v32 = vperm.slane %v3875_v38, 0  ;;  %v3891_v41 = vsel %vm341_vm15, %v1162_v23, %v1161_v20 }
 0x1ba   : > { %v1165_v27 = vadd.f32 %v3891_v41, %v1134_v43  ;;  %v1166_v58 = vadd.f32 %v3891_v41, %v1135_v12  ;;  %v1167_v44 = vadd.f32 %v3891_v41, %v1136_v34  ;;  %v1168_v7 = vadd.f32 %v3891_v41, %v1137_v55 }
 0x1bb   : > { %v1169_v51 = vadd.f32 %v3891_v41, %v1138_v53  ;;  %v1170_v48 = vadd.f32 %v3891_v41, %v1139_v40  ;;  %v1171_v31 = vadd.f32 %v3891_v41, %v1140_v54  ;;  %v1172_v11 = vadd.f32 %v3891_v41, %v1141_v32 }
 0x1bc   : > { %v1173_v57 = vmul.f32 10.0, %v1165_v27  ;;  %v1174_v17 = vmul.f32 10.0, %v1166_v58  ;;  %v1175_v13 = vmul.f32 10.0, %v1167_v44  ;;  %v1176_v46 = vmul.f32 10.0, %v1168_v7 }
 0x1bd   : > { %v1177_v9 = vmul.f32 10.0, %v1169_v51  ;;  %v1178_v45 = vmul.f32 10.0, %v1170_v48  ;;  %v1179_v63 = vmul.f32 10.0, %v1171_v31  ;;  %v1180_v43 = vmul.f32 10.0, %v1172_v11 }
 0x1be   : > { %v1181_v12 = vadd.f32 %v1173_v57, %v3262_v42  ;;  %v1182_v29 = vadd.f32 %v1174_v17, %v3278_v19  ;;  %v1183_v23 = vadd.f32 %v1175_v13, %v3260_v1  ;;  %v1184_v34 = vadd.f32 %v1176_v46, %v3276_v25 }
 0x1bf   : > { %v1185_v55 = vadd.f32 %v1177_v9, %v3228_v3  ;;  %v1186_v53 = vadd.f32 %v1178_v45, %v3236_v14  ;;  %v1187_v20 = vadd.f32 %v1179_v63, %v4802_v4  ;;  %v1188_v27 = vadd.f32 %v1180_v43, %v4803_v49 }
 0x1c0   : > { %v1189_v40 = vmul.f32 1.442695, %v1181_v12  ;;  %v1191_v54 = vmul.f32 1.442695, %v1182_v29  ;;  %v1193_v32 = vmul.f32 1.442695, %v1183_v23 }
 0x1c1   : > { %v1195_v58 = vmul.f32 1.442695, %v1184_v34  ;;  %v1197_v44 = vmul.f32 1.442695, %v1185_v55  ;;  %v1199_v7 = vmul.f32 1.442695, %v1186_v53 }
 0x1c2   : > { %2654 = vpow2.f32 %v1189_v40  ;;  %v1201_v51 = vmul.f32 1.442695, %v1187_v20  ;;  %v1203_v48 = vmul.f32 1.442695, %v1188_v27 }
 0x1c3   : > { %2656 = vpow2.f32 %v1191_v54 }
 0x1c4   : > { %2658 = vpow2.f32 %v1193_v32 }
 0x1c5   : > { %2660 = vpow2.f32 %v1195_v58 }
 0x1c6   : > { %2662 = vpow2.f32 %v1197_v44 }
 0x1c7   : > { %2664 = vpow2.f32 %v1199_v7 }
 0x1c8   : > { %v2655_v31 = vpop.eup %2654  ;;  %2666 = vpow2.f32 %v1201_v51 }
 0x1c9   : > { %v2657_v11 = vpop.eup %2656  ;;  %2668 = vpow2.f32 %v1203_v48  ;;  %v1205_v57 = vrot.slane %v2655_v31, 4 }
 0x1ca   : > { %v2659_v17 = vpop.eup %2658  ;;  %v1211_v13 = vrot.slane %v2657_v11, 4 }
 0x1cb   : > { %v2661_v46 = vpop.eup %2660  ;;  %v1206_v9 = vadd.f32 %v2655_v31, %v1205_v57  ;;  %v1217_v45 = vrot.slane %v2659_v17, 4 }
 0x1cc   : > { %v2663_v63 = vpop.eup %2662  ;;  %v1212_v43 = vadd.f32 %v2657_v11, %v1211_v13  ;;  %v1223_v12 = vrot.slane %v2661_v46, 4 }
 0x1cd   : > { %v2665_v29 = vpop.eup %2664  ;;  %v1207_v23 = vrot.slane %v1206_v9, 2  ;;  %v1218_v34 = vadd.f32 %v2659_v17, %v1217_v45  ;;  %v1229_v55 = vrot.slane %v2663_v63, 4 }
 0x1ce   : > { %v2667_v53 = vpop.eup %2666  ;;  %v1213_v20 = vrot.slane %v1212_v43, 2  ;;  %v1224_v40 = vadd.f32 %v2661_v46, %v1223_v12  ;;  %v1235_v54 = vrot.slane %v2665_v29, 4 }
 0x1cf   : > { %v2669_v32 = vpop.eup %2668  ;;  %v1208_v27 = vadd.f32 %v1207_v23, %v1206_v9  ;;  %v1219_v58 = vrot.slane %v1218_v34, 2  ;;  %v1230_v44 = vadd.f32 %v2663_v63, %v1229_v55  ;;  %v1241_v7 = vrot.slane %v2667_v53, 4 }
 0x1d0   : > { %v1214_v51 = vadd.f32 %v1213_v20, %v1212_v43  ;;  %v1225_v48 = vrot.slane %v1224_v40, 2  ;;  %v1236_v31 = vadd.f32 %v2665_v29, %v1235_v54  ;;  %v1247_v57 = vrot.slane %v2669_v32, 4 }
 0x1d1   : > { %v1209_v39 = vrot.slane %v1208_v27, 1  ;;  %v1220_v11 = vadd.f32 %v1219_v58, %v1218_v34  ;;  %v1231_v13 = vrot.slane %v1230_v44, 2  ;;  %v1242_v61 = vadd.f32 %v2667_v53, %v1241_v7 }
 0x1d2   : > { %v1215_v16 = vrot.slane %v1214_v51, 1  ;;  %v1226_v17 = vadd.f32 %v1225_v48, %v1224_v40  ;;  %v1237_v45 = vrot.slane %v1236_v31, 2  ;;  %v1248_v21 = vadd.f32 %v2669_v32, %v1247_v57 }
 0x1d3   : > { %v1210_v2 = vadd.f32 %v1209_v39, %v1208_v27  ;;  %v1221_v46 = vrot.slane %v1220_v11, 1  ;;  %v1232_v12 = vadd.f32 %v1231_v13, %v1230_v44  ;;  %v1243_v15 = vrot.slane %v1242_v61, 2 }
 0x1d4   : > { %v1216_v9 = vadd.f32 %v1215_v16, %v1214_v51  ;;  %v1227_v23 = vrot.slane %v1226_v17, 1  ;;  %v1238_v63 = vadd.f32 %v1237_v45, %v1236_v31  ;;  %v1249_v55 = vrot.slane %v1248_v21, 2 }
 0x1d5   : > { %v1222_v43 = vadd.f32 %v1221_v46, %v1220_v11  ;;  %v1233_v20 = vrot.slane %v1232_v12, 1  ;;  %v1244_v29 = vadd.f32 %v1243_v15, %v1242_v61  ;;  %v1253_v54 = vadd.f32 1e-08, %v1210_v2 }
 0x1d6   : > { %v1228_v37 = vadd.f32 %v1227_v23, %v1226_v17  ;;  %v1239_v34 = vrot.slane %v1238_v63, 1  ;;  %v1250_v58 = vadd.f32 %v1249_v55, %v1248_v21  ;;  %v1254_v53 = vadd.f32 1e-08, %v1216_v9 }
 0x1d7   : > { %v1234_v7 = vadd.f32 %v1233_v20, %v1232_v12  ;;  %v1245_v40 = vrot.slane %v1244_v29, 1  ;;  %v1255_v48 = vadd.f32 1e-08, %v1222_v43  ;;  %2670 = vlog2.f32 %v1253_v54 }
 0x1d8   : > { %v1240_v39 = vadd.f32 %v1239_v34, %v1238_v63  ;;  %v1251_v32 = vrot.slane %v1250_v58, 1  ;;  %v1256_v27 = vadd.f32 1e-08, %v1228_v37  ;;  %2672 = vlog2.f32 %v1254_v53 }
 0x1d9   : > { %v1246_v16 = vadd.f32 %v1245_v40, %v1244_v29  ;;  %v1257_v44 = vadd.f32 1e-08, %v1234_v7  ;;  %2674 = vlog2.f32 %v1255_v48 }
 0x1da   : > { %v1252_v51 = vadd.f32 %v1251_v32, %v1250_v58  ;;  %v1258_v31 = vadd.f32 1e-08, %v1240_v39  ;;  %2676 = vlog2.f32 %v1256_v27 }
 0x1db   : > { %v1259_v15 = vadd.f32 1e-08, %v1246_v16  ;;  %2678 = vlog2.f32 %v1257_v44 }
 0x1dc   : > { %v1260_v61 = vadd.f32 1e-08, %v1252_v51  ;;  %2680 = vlog2.f32 %v1258_v31 }
 0x1dd   : > { %v2671_v21 = vpop.eup %2670  ;;  %2682 = vlog2.f32 %v1259_v15 }
 0x1de   : > { %v2673_v11 = vpop.eup %2672  ;;  %v1262_v13 = vmul.f32 0.6931472, %v2671_v21  ;;  %2684 = vlog2.f32 %v1260_v61 }
 0x1df   : > { %v2675_v17 = vpop.eup %2674  ;;  %v1264_v45 = vmul.f32 0.6931472, %v2673_v11 }
 0x1e0   : > { %v1105_v2 = vpop.xlane.xlu0 %1104  ;;  %v2677_v46 = vpop.eup %2676  ;;  %v1266_v12 = vmul.f32 0.6931472, %v2675_v17  ;;  %v1277_v9 = vmul.f32 0.1, %v1262_v13 }
 0x1e1   : > { %v1106_v57 = vrot.slane %v1105_v2, 4  ;;  %v2679_v23 = vpop.eup %2678  ;;  %v1268_v55 = vmul.f32 0.6931472, %v2677_v46  ;;  %v1278_v43 = vmul.f32 0.1, %v1264_v45 }
 0x1e2   : > { %v2681_v20 = vpop.eup %2680  ;;  %v1270_v29 = vmul.f32 0.6931472, %v2679_v23  ;;  %v1279_v54 = vmul.f32 0.1, %v1266_v12  ;;  %v1285_v34 = vsub.f32 %v3282_v30, %v1277_v9  ;;  %v4822_v12 = vld [vmem:[#allocation22_spill] sm:$0xff] }
 0x1e3   : > { %v1107_v37 = vmax.f32 %v1105_v2, %v1106_v57  ;;  %v2683_v58 = vpop.eup %2682  ;;  %v1272_v7 = vmul.f32 0.6931472, %v2681_v20  ;;  %v1280_v40 = vmul.f32 0.1, %v1268_v55  ;;  %v1286_v48 = vsub.f32 %v3290_v35, %v1278_v43  ;;  %v4823_v43 = vld [vmem:[#allocation25_spill] sm:$0xff] }
 0x1e4   : > { %v2685_v39 = vpop.eup %2684  ;;  %v1274_v32 = vmul.f32 0.6931472, %v2683_v58  ;;  %v1281_v27 = vmul.f32 0.1, %v1270_v29  ;;  %v1287_v16 = vsub.f32 %v3292_v0, %v1279_v54  ;;  %v1293_v44 = vadd.f32 %v1285_v34, %v3817_v26 }
 0x1e5   : > { %v1108_v63 = vrot.slane %v1107_v37, 2  ;;  %v1276_v31 = vmul.f32 0.6931472, %v2685_v39  ;;  %v1282_v15 = vmul.f32 0.1, %v1272_v7  ;;  %v1288_v2 = vsub.f32 %v3296_v50, %v1280_v40 }
 0x1e6   : > { %v1283_v61 = vmul.f32 0.1, %v1274_v32  ;;  %v1289_v21 = vsub.f32 %v4769_v56, %v1281_v27  ;;  %v1294_v57 = vadd.f32 %v1286_v48, %v3822_v60  ;;  %v1295_v11 = vadd.f32 %v1287_v16, %v3835_v10 }
 0x1e7   : > { %v1109_v53 = vmax.f32 %v1107_v37, %v1108_v63  ;;  %v1284_v17 = vmul.f32 0.1, %v1276_v31  ;;  %v4821_v37 = vld [vmem:[#allocation21_spill] sm:$0xff]  ;;  %v1296_v46 = vadd.f32 %v1288_v2, %v3847_v52  ;;  %v3922_v63 = vmul.f32 %v1293_v44, %v3184_v6 }
 0x1e8   : > { %v1290_v45 = vsub.f32 %v4821_v37, %v1282_v15  ;;  %v1291_v9 = vsub.f32 %v4822_v12, %v1283_v61  ;;  %v1297_v23 = vadd.f32 %v1289_v21, %v3858_v33  ;;  %v3925_v55 = vmul.f32 %v1294_v57, %v3169_v62 }
 0x1e9   : > { %v1110_v51 = vrot.slane %v1109_v53, 1  ;;  %v1292_v20 = vsub.f32 %v4823_v43, %v1284_v17  ;;  %v3930_v54 = vmul.f32 %v1295_v11, %v3180_v5  ;;  %v3933_v34 = vmul.f32 %v1296_v46, %v3191_v18 }
 0x1ea   : > { %v1298_v29 = vadd.f32 %v1290_v45, %v3863_v59  ;;  %v1299_v58 = vadd.f32 %v1291_v9, %v3870_v24  ;;  %v1408_v7 = vsub.f32 %v3922_v63, %v3817_v26  ;;  %v1409_v40 = vsub.f32 %v3925_v55, %v3822_v60 }
 0x1eb   : > { %v1111_v13 = vmax.f32 %v1109_v53, %v1110_v51  ;;  %v3937_v53 = vmul.f32 %v1297_v23, %v3198_v22  ;;  %v1300_v48 = vadd.f32 %v1292_v20, %v3875_v38  ;;  %v1410_v32 = vsub.f32 %v3930_v54, %v3835_v10 }
 0x1ec   : > { %v3945_v39 = vmul.f32 %v1298_v29, %v3205_v28  ;;  %v1411_v27 = vsub.f32 %v3933_v34, %v3847_v52  ;;  %v3952_v16 = vmul.f32 %v1299_v58, %v3216_v8  ;;  %v1417_v51 = vand.u32 2147483647, %v1409_v40 }
 0x1ed   : > { %2375 = vpush %v1111_v13  ;;  %v1412_v44 = vsub.f32 %v3937_v53, %v3858_v33  ;;  %v3957_v31 = vmul.f32 %v1300_v48, %v3212_v36  ;;  %v1418_v2 = vand.u32 2147483647, %v1410_v32  ;;  %v1416_v57 = vand.u32 2147483647, %v1408_v7 }
 0x1ee   : > { %v1413_v15 = vsub.f32 %v3945_v39, %v3863_v59  ;;  %v1419_v61 = vand.u32 2147483647, %v1411_v27  ;;  %v1414_v21 = vsub.f32 %v3952_v16, %v3870_v24  ;;  %v1432_v13 = vrot.slane %v1417_v51, 7 }
 0x1ef   : > { %4824 = vst [vmem:[#allocation34_spill] sm:$0xff] %v3957_v31  ;;  %v1420_v11 = vand.u32 2147483647, %v1412_v44  ;;  %v1415_v17 = vsub.f32 %v3957_v31, %v3875_v38  ;;  %v1434_v46 = vrot.slane %v1418_v2, 6  ;;  %v1309_v9 = vperm.slane %v3922_v63, 0 }
 0x1f0   : > { %v1421_v45 = vand.u32 2147483647, %v1413_v15  ;;  %v1422_v23 = vand.u32 2147483647, %v1414_v21  ;;  %v1433_v20 = vsel %vm323_vm5, %v1432_v13, %v1416_v57  ;;  %v1436_v29 = vrot.slane %v1419_v61, 5 }
 0x1f1   : > { %v1310_v58 = vperm.slane %v3925_v55, 0  ;;  %v1423_v40 = vand.u32 2147483647, %v1415_v17  ;;  %v1435_v48 = vsel %vm326_vm7, %v1434_v46, %v1433_v20  ;;  %v1438_v32 = vrot.slane %v1420_v11, 4 }
 0x1f2   : > { %v1311_v7 = vperm.slane %v3930_v54, 0  ;;  %v1437_v27 = vsel %vm329_vm9, %v1436_v29, %v1435_v48  ;;  %v1440_v44 = vrot.slane %v1421_v45, 3  ;;  %v1312_v51 = vperm.slane %v3933_v34, 0 }
 0x1f3   : > { %v1313_v15 = vperm.slane %v3937_v53, 0  ;;  %v1439_v2 = vsel %vm332_vm11, %v1438_v32, %v1437_v27  ;;  %v1442_v21 = vrot.slane %v1422_v23, 2  ;;  %v1444_v57 = vrot.slane %v1423_v40, 1 }
 0x1f4   : > { %v1314_v61 = vperm.slane %v3945_v39, 0  ;;  %v1441_v13 = vsel %vm335_vm12, %v1440_v44, %v1439_v2  ;;  %v1315_v17 = vperm.slane %v3952_v16, 0  ;;  %v1317_v11 = vadd.f32 %v1309_v9, %v3891_v41 }
 0x1f5   : > { %v1318_v46 = vadd.f32 %v1310_v58, %v3891_v41  ;;  %v1443_v45 = vsel %vm338_vm14, %v1442_v21, %v1441_v13  ;;  %v1319_v20 = vadd.f32 %v1311_v7, %v3891_v41  ;;  %v1320_v29 = vadd.f32 %v1312_v51, %v3891_v41 }
 0x1f6   : > { %v1321_v48 = vadd.f32 %v1313_v15, %v3891_v41  ;;  %v1445_v23 = vsel %vm341_vm15, %v1444_v57, %v1443_v45  ;;  %v1316_v40 = vperm.slane %v3957_v31, 0  ;;  %v1322_v32 = vadd.f32 %v1314_v61, %v3891_v41 }
 0x1f7   : > { %v1447_v27 = vrot.slane %v1445_v23, 4  ;;  %v1325_v44 = vmul.f32 10.0, %v1317_v11  ;;  %v1326_v2 = vmul.f32 10.0, %v1318_v46  ;;  %v1327_v9 = vmul.f32 10.0, %v1319_v20 }
 0x1f8   : > { %v1323_v58 = vadd.f32 %v1315_v17, %v3891_v41  ;;  %v1328_v38 = vmul.f32 10.0, %v1320_v29  ;;  %v1329_v21 = vmul.f32 10.0, %v1321_v48  ;;  %v1324_v15 = vadd.f32 %v1316_v40, %v3891_v41 }
 0x1f9   : > { %v1448_v13 = vadd.f32 %v1447_v27, %v1445_v23  ;;  %v1333_v7 = vadd.f32 %v1325_v44, %v3262_v42  ;;  %v1334_v51 = vadd.f32 %v1326_v2, %v3278_v19  ;;  %v1330_v57 = vmul.f32 10.0, %v1322_v32 }
 0x1fa   : > { %v1335_v45 = vadd.f32 %v1327_v9, %v3260_v1  ;;  %v1336_v61 = vadd.f32 %v1328_v38, %v3276_v25  ;;  %v1331_v46 = vmul.f32 10.0, %v1323_v58  ;;  %v1337_v20 = vadd.f32 %v1329_v21, %v3228_v3 }
 0x1fb   : > { %v1449_v31 = vrot.slane %v1448_v13, 2  ;;  %v1341_v11 = vmul.f32 1.442695, %v1333_v7  ;;  %v1343_v17 = vmul.f32 1.442695, %v1334_v51  ;;  %v1332_v23 = vmul.f32 10.0, %v1324_v15 }
 0x1fc   : > { %v1345_v29 = vmul.f32 1.442695, %v1335_v45  ;;  %v1338_v27 = vadd.f32 %v1330_v57, %v3236_v14  ;;  %v1347_v44 = vmul.f32 1.442695, %v1336_v61  ;;  %v1339_v40 = vadd.f32 %v1331_v46, %v4802_v4 }
 0x1fd   : > { %v1450_v48 = vadd.f32 %v1449_v31, %v1448_v13  ;;  %2686 = vpow2.f32 %v1341_v11  ;;  %v1349_v32 = vmul.f32 1.442695, %v1337_v20  ;;  %v1340_v2 = vadd.f32 %v1332_v23, %v4803_v49 }
 0x1fe   : > { %2688 = vpow2.f32 %v1343_v17  ;;  %v1351_v9 = vmul.f32 1.442695, %v1338_v27  ;;  %v1353_v13 = vmul.f32 1.442695, %v1339_v40 }
 0x1ff   : > { %v1451_v41 = vrot.slane %v1450_v48, 1  ;;  %2690 = vpow2.f32 %v1345_v29  ;;  %v1355_v15 = vmul.f32 1.442695, %v1340_v2 }
 0x200   : > { %2692 = vpow2.f32 %v1347_v44 }
 0x201   : > { %v1452_v38 = vadd.f32 %v1451_v41, %v1450_v48  ;;  %2694 = vpow2.f32 %v1349_v32 }
 0x202   : > { %2696 = vpow2.f32 %v1351_v9 }
 0x203   : > { %v2687_v58 = vpop.eup %2686  ;;  %v1453_v21 = vsel %vm752_vm4, %v1452_v38, -inf  ;;  %2698 = vpow2.f32 %v1353_v13 }
 0x204   : > { %v2689_v31 = vpop.eup %2688  ;;  %1454 = vmax.xlane.f32.xlu1 %v1453_v21  ;;  %2700 = vpow2.f32 %v1355_v15 }
 0x205   : > { %v1357_v7 = vadd.f32 %v2689_v31, %v2687_v58  ;;  %v2691_v51 = vpop.eup %2690 }
 0x206   : > { %v2693_v45 = vpop.eup %2692 }
 0x207   : > { %v1358_v57 = vadd.f32 %v2691_v51, %v1357_v7  ;;  %v2695_v11 = vpop.eup %2694 }
 0x208   : > { %v2697_v20 = vpop.eup %2696 }
 0x209   : > { %v1359_v61 = vadd.f32 %v2693_v45, %v1358_v57  ;;  %v2699_v29 = vpop.eup %2698 }
 0x20a   : > { %v2701_v23 = vpop.eup %2700 }
 0x20b   : > { %v1360_v46 = vadd.f32 %v2695_v11, %v1359_v61  ;;  %v4826_v11 = vld [vmem:[#allocation32_spill] sm:$0xff] }
 0x20d   : > { %v1361_v17 = vadd.f32 %v2697_v20, %v1360_v46 }
 0x20f   : > { %v1362_v48 = vadd.f32 %v2699_v29, %v1361_v17 }
 0x211   : > { %v1363_v27 = vadd.f32 %v2701_v23, %v1362_v48  ;;  %v4827_v48 = vld [vmem:[#allocation31_spill] sm:$0xff] }
 0x213   : > { %v1364_v44 = vadd.f32 1e-08, %v1363_v27  ;;  %v4828_v27 = vld [vmem:[#allocation30_spill] sm:$0xff] }
 0x215   : > { %2702 = vlog2.f32 %v1364_v44 }
 0x21b   : > { %v2703_v41 = vpop.eup %2702 }
 0x21c   : > { %v1366_v40 = vmul.f32 0.6931472, %v2703_v41 }
 0x21e   : > { %s2376_s4 = spop %2375  ;;  %v1367_v32 = vmul.f32 0.1, %v1366_v40  ;;  %v4829_v40 = vld [vmem:[#allocation33_spill] sm:$0xff] }
 0x21f   : > { %p1132_p3 = scmp.lt.f32.partialorder %s2376_s4, 0.1 }
 0x220   : > { %v1369_v38 = vrot.slane %v1367_v32, 1  ;;  %v1370_v2 = vrot.slane %v1367_v32, 2  ;;  %v1371_v9 = vrot.slane %v1367_v32, 3  ;;  %v1372_v58 = vrot.slane %v1367_v32, 4 }
 0x221   : > { %p3999_p4 = por %p1132_p3, %p3769_p2  ;;  %v1373_v21 = vrot.slane %v1367_v32, 5  ;;  %v1374_v31 = vrot.slane %v1367_v32, 6  ;;  %v1375_v13 = vrot.slane %v1367_v32, 7  ;;  %v1384_v17 = vsub.f32 %v3282_v30, %v1367_v32 }
 0x222   : > { %v1385_v7 = vsub.f32 %v3290_v35, %v1369_v38  ;;  %v1386_v51 = vsub.f32 %v3292_v0, %v1370_v2  ;;  %v1387_v15 = vsub.f32 %v3296_v50, %v1371_v9  ;;  %v1388_v57 = vsub.f32 %v4769_v56, %v1372_v58  ;;  %v4830_v58 = vld [vmem:[#allocation28_spill] sm:$0xff] }
 0x223   : > { %s1463_s6 = scalar_select %p3999_p4, 1, 0  ;;  %v1389_v45 = vsub.f32 %v4821_v37, %v1373_v21  ;;  %v1390_v20 = vsub.f32 %v4822_v12, %v1374_v31  ;;  %v1391_v29 = vsub.f32 %v4823_v43, %v1375_v13 }
 0x224   : > { %v1393_v61 = vadd.f32 %v1385_v7, %v3796_v47  ;;  %v1394_v46 = vadd.f32 %v1386_v51, %v4826_v11  ;;  %v1395_v23 = vadd.f32 %v1387_v15, %v4827_v48  ;;  %v1396_v44 = vadd.f32 %v1388_v57, %v4828_v27  ;;  %v4831_v7 = vld [vmem:[#allocation29_spill] sm:$0xff]  ;;  %v4832_v51 = vld [vmem:[#allocation27_spill] sm:$0xff] }
 0x225   : > { %v1464_v41 = vstv %s1463_s6  ;;  %v1397_v38 = vadd.f32 %v1389_v45, %v4829_v40  ;;  %v1398_v21 = vadd.f32 %v1390_v20, %v4830_v58  ;;  %v1392_v31 = vadd.f32 %v1384_v17, %v4831_v7 }
 0x226   : > { %v1401_v2 = vmul.f32 %v1393_v61, %v3169_v62  ;;  %v1402_v9 = vmul.f32 %v1394_v46, %v3180_v5  ;;  %vm1465_vm10 = vcmp.eq.s32.totalorder %v1464_v41, 1  ;;  %v1399_v32 = vadd.f32 %v1391_v29, %v4832_v51 }
 0x227   : > { %v1403_v13 = vmul.f32 %v1395_v23, %v3191_v18  ;;  %v1404_v15 = vmul.f32 %v1396_v44, %v3198_v22  ;;  %v1405_v57 = vmul.f32 %v1397_v38, %v3205_v28  ;;  %v1406_v46 = vmul.f32 %v1398_v21, %v3216_v8 }
 0x228   : > { %v4028_v45 = vsel %vm1465_vm10, %v3796_v47, %v1401_v2  ;;  %v4032_v61 = vsel %vm1465_vm10, %v4826_v11, %v1402_v9  ;;  %v1400_v20 = vmul.f32 %v1392_v31, %v3184_v6  ;;  %v1407_v17 = vmul.f32 %v1399_v32, %v3212_v36  ;;  %v4842_v31 = vld [vmem:[#allocation26_spill] sm:$0xff] }
 0x229   : > { %4833 = vst [vmem:[#allocation32_spill] sm:$0xff] %v4028_v45  ;;  %v4039_v29 = vsel %vm1465_vm10, %v4827_v48, %v1403_v13  ;;  %v4043_v23 = vsel %vm1465_vm10, %v4828_v27, %v1404_v15  ;;  %v1500_v47 = vrot.slane %v4028_v45, 7  ;;  %v1502_v44 = vrot.slane %v4032_v61, 6 }
 0x22a   : > { %4834 = vst [vmem:[#allocation31_spill] sm:$0xff] %v4032_v61  ;;  %v4050_v11 = vsel %vm1465_vm10, %v3817_v26, %v3922_v63  ;;  %v4055_v38 = vsel %vm1465_vm10, %v3822_v60, %v3925_v55  ;;  %v4059_v48 = vsel %vm1465_vm10, %v4831_v7, %v1400_v20  ;;  %v4063_v27 = vsel %vm1465_vm10, %v4829_v40, %v1405_v57  ;;  %v4841_v7 = vld [vmem:[#allocation34_spill] sm:$0xff] }
 0x22b   : > { %4835 = vst [vmem:[#allocation30_spill] sm:$0xff] %v4039_v29  ;;  %v4068_v2 = vsel %vm1465_vm10, %v3835_v10, %v3930_v54  ;;  %v4072_v26 = vsel %vm1465_vm10, %v4830_v58, %v1406_v46  ;;  %v1501_v60 = vsel %vm323_vm5, %v1500_v47, %v4059_v48  ;;  %v1504_v63 = vrot.slane %v4039_v29, 5 }
 0x22c   : > { %4836 = vst [vmem:[#allocation33_spill] sm:$0xff] %v4043_v23  ;;  %v4080_v55 = vsel %vm1465_vm10, %v3847_v52, %v3933_v34  ;;  %v4084_v40 = vsel %vm1465_vm10, %v4832_v51, %v1407_v17  ;;  %v1503_v10 = vsel %vm326_vm7, %v1502_v44, %v1501_v60  ;;  %v1506_v54 = vrot.slane %v4043_v23, 4 }
 0x22d   : > { %4837 = vst [vmem:[#allocation28_spill] sm:$0xff] %v4059_v48  ;;  %v4091_v9 = vsel %vm1465_vm10, %v3858_v33, %v3937_v53  ;;  %v4096_v58 = vsel %vm1465_vm10, %v3863_v59, %v3945_v39  ;;  %v1505_v52 = vsel %vm329_vm9, %v1504_v63, %v1503_v10  ;;  %v1508_v34 = vrot.slane %v4063_v27, 3 }
 0x22e   : > { %4838 = vst [vmem:[#allocation29_spill] sm:$0xff] %v4063_v27  ;;  %v4103_v21 = vsel %vm1465_vm10, %v3870_v24, %v3952_v16  ;;  %v4108_v51 = vsel %vm1465_vm10, %v4842_v31, %v4841_v7  ;;  %v1507_v33 = vsel %vm332_vm11, %v1506_v54, %v1505_v52  ;;  %v1510_v53 = vrot.slane %v4072_v26, 2 }
 0x22f   : > { %4839 = vst [vmem:[#allocation27_spill] sm:$0xff] %v4072_v26  ;;  %v1484_v59 = vperm.slane %v4050_v11, 0  ;;  %v1485_v39 = vperm.slane %v4055_v38, 0  ;;  %v1509_v32 = vsel %vm335_vm12, %v1508_v34, %v1507_v33  ;;  %v1512_v13 = vrot.slane %v4084_v40, 1 }
 0x230   : > { %4840 = vst [vmem:[#allocation35_spill] sm:$0xff] %v4084_v40  ;;  %v1486_v24 = vperm.slane %v4068_v2, 0  ;;  %v1487_v16 = vperm.slane %v4080_v55, 0  ;;  %v1488_v41 = vperm.slane %v4091_v9, 0  ;;  %v1511_v15 = vsel %vm338_vm14, %v1510_v53, %v1509_v32 }
 0x231   : > { %v1489_v57 = vperm.slane %v4096_v58, 0  ;;  %v1490_v46 = vperm.slane %v4103_v21, 0  ;;  %v1491_v20 = vperm.slane %v4108_v51, 0  ;;  %v4124_v17 = vsel %vm341_vm15, %v1512_v13, %v1511_v15 }
 0x232   : > { %v1515_v47 = vadd.f32 %v4124_v17, %v1484_v59  ;;  %v1516_v44 = vadd.f32 %v4124_v17, %v1485_v39  ;;  %v1517_v60 = vadd.f32 %v4124_v17, %v1486_v24  ;;  %v1518_v63 = vadd.f32 %v4124_v17, %v1487_v16 }
 0x233   : > { %v1519_v10 = vadd.f32 %v4124_v17, %v1488_v41  ;;  %v1520_v54 = vadd.f32 %v4124_v17, %v1489_v57  ;;  %v1521_v52 = vadd.f32 %v4124_v17, %v1490_v46  ;;  %v1522_v34 = vadd.f32 %v4124_v17, %v1491_v20 }
 0x234   : > { %v1523_v7 = vmul.f32 10.0, %v1515_v47  ;;  %v1524_v31 = vmul.f32 10.0, %v1516_v44  ;;  %v1525_v33 = vmul.f32 10.0, %v1517_v60  ;;  %v1526_v53 = vmul.f32 10.0, %v1518_v63 }
 0x235   : > { %v1527_v32 = vmul.f32 10.0, %v1519_v10  ;;  %v1528_v59 = vmul.f32 10.0, %v1520_v54  ;;  %v1529_v13 = vmul.f32 10.0, %v1521_v52  ;;  %v1530_v39 = vmul.f32 10.0, %v1522_v34 }
 0x236   : > { %v1531_v24 = vadd.f32 %v1523_v7, %v3262_v42  ;;  %v1532_v16 = vadd.f32 %v1524_v31, %v3278_v19  ;;  %v1533_v41 = vadd.f32 %v1525_v33, %v3260_v1  ;;  %v1534_v15 = vadd.f32 %v1526_v53, %v3276_v25 }
 0x237   : > { %v1535_v57 = vadd.f32 %v1527_v32, %v3228_v3  ;;  %v1536_v46 = vadd.f32 %v1528_v59, %v3236_v14  ;;  %v1537_v20 = vadd.f32 %v1529_v13, %v4802_v4  ;;  %v1538_v63 = vadd.f32 %v1530_v39, %v4803_v49 }
 0x238   : > { %v1539_v47 = vmul.f32 1.442695, %v1531_v24  ;;  %v1541_v44 = vmul.f32 1.442695, %v1532_v16  ;;  %v1543_v60 = vmul.f32 1.442695, %v1533_v41 }
 0x239   : > { %v1545_v10 = vmul.f32 1.442695, %v1534_v15  ;;  %v1547_v54 = vmul.f32 1.442695, %v1535_v57  ;;  %v1549_v52 = vmul.f32 1.442695, %v1536_v46 }
 0x23a   : > { %2704 = vpow2.f32 %v1539_v47  ;;  %v1551_v34 = vmul.f32 1.442695, %v1537_v20  ;;  %v1553_v7 = vmul.f32 1.442695, %v1538_v63 }
 0x23b   : > { %2706 = vpow2.f32 %v1541_v44 }
 0x23c   : > { %2708 = vpow2.f32 %v1543_v60 }
 0x23d   : > { %2710 = vpow2.f32 %v1545_v10 }
 0x23e   : > { %2712 = vpow2.f32 %v1547_v54 }
 0x23f   : > { %2714 = vpow2.f32 %v1549_v52 }
 0x240   : > { %v2705_v31 = vpop.eup %2704  ;;  %2716 = vpow2.f32 %v1551_v34 }
 0x241   : > { %v2707_v33 = vpop.eup %2706  ;;  %2718 = vpow2.f32 %v1553_v7  ;;  %v1555_v53 = vrot.slane %v2705_v31, 4 }
 0x242   : > { %v2709_v32 = vpop.eup %2708  ;;  %v1561_v59 = vrot.slane %v2707_v33, 4 }
 0x243   : > { %v2711_v13 = vpop.eup %2710  ;;  %v1556_v39 = vadd.f32 %v2705_v31, %v1555_v53  ;;  %v1567_v24 = vrot.slane %v2709_v32, 4 }
 0x244   : > { %v2713_v16 = vpop.eup %2712  ;;  %v1562_v41 = vadd.f32 %v2707_v33, %v1561_v59  ;;  %v1573_v15 = vrot.slane %v2711_v13, 4 }
 0x245   : > { %v2715_v57 = vpop.eup %2714  ;;  %v1557_v46 = vrot.slane %v1556_v39, 2  ;;  %v1568_v20 = vadd.f32 %v2709_v32, %v1567_v24  ;;  %v1579_v47 = vrot.slane %v2713_v16, 4 }
 0x246   : > { %v2717_v44 = vpop.eup %2716  ;;  %v1563_v60 = vrot.slane %v1562_v41, 2  ;;  %v1574_v63 = vadd.f32 %v2711_v13, %v1573_v15  ;;  %v1585_v10 = vrot.slane %v2715_v57, 4 }
 0x247   : > { %v2719_v54 = vpop.eup %2718  ;;  %v1558_v52 = vadd.f32 %v1557_v46, %v1556_v39  ;;  %v1569_v34 = vrot.slane %v1568_v20, 2  ;;  %v1580_v7 = vadd.f32 %v2713_v16, %v1579_v47  ;;  %v1591_v40 = vrot.slane %v2717_v44, 4 }
 0x248   : > { %v1564_v26 = vadd.f32 %v1563_v60, %v1562_v41  ;;  %v1575_v27 = vrot.slane %v1574_v63, 2  ;;  %v1586_v31 = vadd.f32 %v2715_v57, %v1585_v10  ;;  %v1597_v53 = vrot.slane %v2719_v54, 4 }
 0x249   : > { %v1559_v23 = vrot.slane %v1558_v52, 1  ;;  %v1570_v33 = vadd.f32 %v1569_v34, %v1568_v20  ;;  %v1581_v59 = vrot.slane %v1580_v7, 2  ;;  %v1592_v48 = vadd.f32 %v2717_v44, %v1591_v40 }
 0x24a   : > { %v1565_v29 = vrot.slane %v1564_v26, 1  ;;  %v1576_v32 = vadd.f32 %v1575_v27, %v1574_v63  ;;  %v1587_v24 = vrot.slane %v1586_v31, 2  ;;  %v1598_v61 = vadd.f32 %v2719_v54, %v1597_v53 }
 0x24b   : > { %v1560_v45 = vadd.f32 %v1559_v23, %v1558_v52  ;;  %v1571_v13 = vrot.slane %v1570_v33, 1  ;;  %v1582_v15 = vadd.f32 %v1581_v59, %v1580_v7  ;;  %v1593_v49 = vrot.slane %v1592_v48, 2 }
 0x24c   : > { %v1566_v39 = vadd.f32 %v1565_v29, %v1564_v26  ;;  %v1577_v46 = vrot.slane %v1576_v32, 1  ;;  %v1588_v16 = vadd.f32 %v1587_v24, %v1586_v31  ;;  %v1599_v47 = vrot.slane %v1598_v61, 2 }
 0x24d   : > { %v1572_v41 = vadd.f32 %v1571_v13, %v1570_v33  ;;  %v1583_v60 = vrot.slane %v1582_v15, 1  ;;  %v1594_v57 = vadd.f32 %v1593_v49, %v1592_v48  ;;  %v1603_v10 = vadd.f32 1e-08, %v1560_v45 }
 0x24e   : > { %v1578_v4 = vadd.f32 %v1577_v46, %v1576_v32  ;;  %v1589_v20 = vrot.slane %v1588_v16, 1  ;;  %v1600_v34 = vadd.f32 %v1599_v47, %v1598_v61  ;;  %v1604_v40 = vadd.f32 1e-08, %v1566_v39 }
 0x24f   : > { %v1584_v44 = vadd.f32 %v1583_v60, %v1582_v15  ;;  %v1595_v27 = vrot.slane %v1594_v57, 1  ;;  %v1605_v63 = vadd.f32 1e-08, %v1572_v41  ;;  %2720 = vlog2.f32 %v1603_v10 }
 0x250   : > { %v1590_v23 = vadd.f32 %v1589_v20, %v1588_v16  ;;  %v1601_v54 = vrot.slane %v1600_v34, 1  ;;  %v1606_v52 = vadd.f32 1e-08, %v1578_v4  ;;  %2722 = vlog2.f32 %v1604_v40 }
 0x251   : > { %v1596_v29 = vadd.f32 %v1595_v27, %v1594_v57  ;;  %v1607_v26 = vadd.f32 1e-08, %v1584_v44  ;;  %2724 = vlog2.f32 %v1605_v63 }
 0x252   : > { %v1602_v7 = vadd.f32 %v1601_v54, %v1600_v34  ;;  %v1608_v31 = vadd.f32 1e-08, %v1590_v23  ;;  %2726 = vlog2.f32 %v1606_v52 }
 0x253   : > { %v1609_v49 = vadd.f32 1e-08, %v1596_v29  ;;  %2728 = vlog2.f32 %v1607_v26 }
 0x254   : > { %v1610_v45 = vadd.f32 1e-08, %v1602_v7  ;;  %2730 = vlog2.f32 %v1608_v31 }
 0x255   : > { %v2721_v61 = vpop.eup %2720  ;;  %2732 = vlog2.f32 %v1609_v49 }
 0x256   : > { %v2723_v48 = vpop.eup %2722  ;;  %v1612_v53 = vmul.f32 0.6931472, %v2721_v61  ;;  %2734 = vlog2.f32 %v1610_v45 }
 0x257   : > { %v2725_v33 = vpop.eup %2724  ;;  %v1614_v59 = vmul.f32 0.6931472, %v2723_v48 }
 0x258   : > { %v2727_v32 = vpop.eup %2726  ;;  %v1616_v4 = vmul.f32 0.6931472, %v2725_v33  ;;  %v1627_v24 = vmul.f32 0.1, %v1612_v53 }
 0x259   : > { %v2729_v13 = vpop.eup %2728  ;;  %v1618_v15 = vmul.f32 0.6931472, %v2727_v32  ;;  %v1628_v39 = vmul.f32 0.1, %v1614_v59 }
 0x25a   : > { %v2731_v46 = vpop.eup %2730  ;;  %v1620_v16 = vmul.f32 0.6931472, %v2729_v13  ;;  %v1629_v47 = vmul.f32 0.1, %v1616_v4  ;;  %v1635_v41 = vsub.f32 %v3282_v30, %v1627_v24 }
 0x25b   : > { %v2733_v60 = vpop.eup %2732  ;;  %v1622_v57 = vmul.f32 0.6931472, %v2731_v46  ;;  %v1630_v10 = vmul.f32 0.1, %v1618_v15  ;;  %v1636_v20 = vsub.f32 %v3290_v35, %v1628_v39 }
 0x25c   : > { %v2735_v34 = vpop.eup %2734  ;;  %v1624_v40 = vmul.f32 0.6931472, %v2733_v60  ;;  %v1631_v44 = vmul.f32 0.1, %v1620_v16  ;;  %v1637_v27 = vsub.f32 %v3292_v0, %v1629_v47  ;;  %v1643_v63 = vadd.f32 %v1635_v41, %v4050_v11 }
 0x25d   : > { %v1626_v23 = vmul.f32 0.6931472, %v2735_v34  ;;  %v1632_v54 = vmul.f32 0.1, %v1622_v57  ;;  %v1638_v52 = vsub.f32 %v3296_v50, %v1630_v10  ;;  %v1644_v29 = vadd.f32 %v1636_v20, %v4055_v38 }
 0x25e   : > { %v1633_v26 = vmul.f32 0.1, %v1624_v40  ;;  %v1639_v7 = vsub.f32 %v4769_v56, %v1631_v44  ;;  %v1645_v31 = vadd.f32 %v1637_v27, %v4068_v2  ;;  %v4151_v49 = vmul.f32 %v1643_v63, %v3184_v6 }
 0x25f   : > { %v1634_v45 = vmul.f32 0.1, %v1626_v23  ;;  %v1640_v61 = vsub.f32 %v4821_v37, %v1632_v54  ;;  %v1646_v48 = vadd.f32 %v1638_v52, %v4080_v55  ;;  %v4156_v53 = vmul.f32 %v1644_v29, %v3169_v62 }
 0x260   : > { %v1641_v33 = vsub.f32 %v4822_v12, %v1633_v26  ;;  %v1647_v59 = vadd.f32 %v1639_v7, %v4091_v9  ;;  %v4161_v32 = vmul.f32 %v1645_v31, %v3180_v5  ;;  %v1758_v4 = vsub.f32 %v4151_v49, %v4050_v11 }
 0x261   : > { %v1642_v24 = vsub.f32 %v4823_v43, %v1634_v45  ;;  %v1648_v13 = vadd.f32 %v1640_v61, %v4096_v58  ;;  %v4168_v15 = vmul.f32 %v1646_v48, %v3191_v18  ;;  %v1759_v39 = vsub.f32 %v4156_v53, %v4055_v38 }
 0x262   : > { %v1649_v46 = vadd.f32 %v1641_v33, %v4103_v21  ;;  %v4174_v16 = vmul.f32 %v1647_v59, %v3198_v22  ;;  %v1760_v47 = vsub.f32 %v4161_v32, %v4068_v2  ;;  %v1766_v41 = vand.u32 2147483647, %v1758_v4 }
 0x263   : > { %v1650_v60 = vadd.f32 %v1642_v24, %v4108_v51  ;;  %v4180_v57 = vmul.f32 %v1648_v13, %v3205_v28  ;;  %v1761_v10 = vsub.f32 %v4168_v15, %v4080_v55  ;;  %v1767_v20 = vand.u32 2147483647, %v1759_v39 }
 0x264   : > { %v4185_v34 = vmul.f32 %v1649_v46, %v3216_v8  ;;  %v1762_v40 = vsub.f32 %v4174_v16, %v4091_v9  ;;  %v1768_v44 = vand.u32 2147483647, %v1760_v47  ;;  %v1659_v27 = vperm.slane %v4151_v49, 0 }
 0x265   : > { %v4191_v63 = vmul.f32 %v1650_v60, %v3212_v36  ;;  %v1763_v23 = vsub.f32 %v4180_v57, %v4096_v58  ;;  %v1769_v54 = vand.u32 2147483647, %v1761_v10  ;;  %v1782_v52 = vrot.slane %v1767_v20, 7 }
 0x266   : > { %v1764_v29 = vsub.f32 %v4185_v34, %v4103_v21  ;;  %v1770_v26 = vand.u32 2147483647, %v1762_v40  ;;  %v1784_v7 = vrot.slane %v1768_v44, 6  ;;  %v1660_v31 = vperm.slane %v4156_v53, 0 }
 0x267   : > { %v1765_v45 = vsub.f32 %v4191_v63, %v4108_v51  ;;  %v1771_v61 = vand.u32 2147483647, %v1763_v23  ;;  %v1783_v48 = vsel %vm323_vm5, %v1782_v52, %v1766_v41  ;;  %v1786_v33 = vrot.slane %v1769_v54, 5 }
 0x268   : > { %v1772_v59 = vand.u32 2147483647, %v1764_v29  ;;  %v1785_v4 = vsel %vm326_vm7, %v1784_v7, %v1783_v48  ;;  %v1788_v24 = vrot.slane %v1770_v26, 4  ;;  %v1661_v13 = vperm.slane %v4161_v32, 0 }
 0x269   : > { %v1773_v39 = vand.u32 2147483647, %v1765_v45  ;;  %v1787_v46 = vsel %vm329_vm9, %v1786_v33, %v1785_v4  ;;  %v1790_v47 = vrot.slane %v1771_v61, 3  ;;  %v1662_v44 = vperm.slane %v4168_v15, 0 }
 0x26a   : > { %v1789_v60 = vsel %vm332_vm11, %v1788_v24, %v1787_v46  ;;  %v1792_v10 = vrot.slane %v1772_v59, 2  ;;  %v1667_v23 = vadd.f32 %v1659_v27, %v4124_v17  ;;  %v1668_v54 = vadd.f32 %v1660_v31, %v4124_v17 }
 0x26b   : > { %v1791_v20 = vsel %vm335_vm12, %v1790_v47, %v1789_v60  ;;  %v1794_v40 = vrot.slane %v1773_v39, 1  ;;  %v1669_v52 = vadd.f32 %v1661_v13, %v4124_v17  ;;  %v1663_v7 = vperm.slane %v4174_v16, 0 }
 0x26c   : > { %v1793_v41 = vsel %vm338_vm14, %v1792_v10, %v1791_v20  ;;  %v1675_v45 = vmul.f32 10.0, %v1667_v23  ;;  %v1670_v61 = vadd.f32 %v1662_v44, %v4124_v17  ;;  %v1676_v48 = vmul.f32 10.0, %v1668_v54 }
 0x26d   : > { %v1795_v29 = vsel %vm341_vm15, %v1794_v40, %v1793_v41  ;;  %v1677_v33 = vmul.f32 10.0, %v1669_v52  ;;  %v1664_v13 = vperm.slane %v4180_v57, 0  ;;  %v1671_v46 = vadd.f32 %v1663_v7, %v4124_v17 }
 0x26e   : > { %v1797_v26 = vrot.slane %v1795_v29, 4  ;;  %v1683_v24 = vadd.f32 %v1675_v45, %v3262_v42  ;;  %v1684_v27 = vadd.f32 %v1676_v48, %v3278_v19  ;;  %v1678_v47 = vmul.f32 10.0, %v1670_v61 }
 0x26f   : > { %v1685_v60 = vadd.f32 %v1677_v33, %v3260_v1  ;;  %v1665_v54 = vperm.slane %v4185_v34, 0  ;;  %v1672_v52 = vadd.f32 %v1664_v13, %v4124_v17 }
 0x270   : > { %v1798_v59 = vadd.f32 %v1797_v26, %v1795_v29  ;;  %v1691_v10 = vmul.f32 1.442695, %v1683_v24  ;;  %v1693_v20 = vmul.f32 1.442695, %v1684_v27  ;;  %v1679_v29 = vmul.f32 10.0, %v1671_v46 }
 0x271   : > { %v1686_v26 = vadd.f32 %v1678_v47, %v3276_v25  ;;  %v1695_v45 = vmul.f32 1.442695, %v1685_v60  ;;  %v1680_v27 = vmul.f32 10.0, %v1672_v52 }
 0x272   : > { %v1799_v39 = vrot.slane %v1798_v59, 2  ;;  %2736 = vpow2.f32 %v1691_v10 }
 0x273   : > { %2738 = vpow2.f32 %v1693_v20  ;;  %v1688_v20 = vadd.f32 %v1680_v27, %v3236_v14 }
 0x274   : > { %v1800_v40 = vadd.f32 %v1799_v39, %v1798_v59  ;;  %v1666_v59 = vperm.slane %v4191_v63, 0  ;;  %v1687_v39 = vadd.f32 %v1679_v29, %v3228_v3  ;;  %2740 = vpow2.f32 %v1695_v45 }
 0x275   : > { %v1701_v29 = vmul.f32 1.442695, %v1688_v20 }
 0x276   : > { %v1801_v41 = vrot.slane %v1800_v40, 1  ;;  %v1674_v47 = vadd.f32 %v1666_v59, %v4124_v17 }
 0x277   : > { %v1455_v4 = vpop.xlane.xlu1 %1454 }
 0x278   : > { %v1456_v31 = vrot.slane %v1455_v4, 4  ;;  %v1802_v7 = vadd.f32 %v1801_v41, %v1800_v40  ;;  %v2737_v24 = vpop.eup %2736  ;;  %v1699_v40 = vmul.f32 1.442695, %v1687_v39 }
 0x279   : > { %v2739_v13 = vpop.eup %2738 }
 0x27a   : > { %v1457_v44 = vmax.f32 %v1455_v4, %v1456_v31  ;;  %v1803_v48 = vsel %vm752_vm4, %v1802_v7, -inf  ;;  %v1673_v4 = vadd.f32 %v1665_v54, %v4124_v17  ;;  %v1697_v31 = vmul.f32 1.442695, %v1686_v26  ;;  %v4843_v54 = vld [vmem:[#allocation24_spill] sm:$0xff]  ;;  %v4844_v7 = vld [vmem:[#allocation23_spill] sm:$0xff] }
 0x27b   : > { %1804 = vmax.xlane.f32.xlu1 %v1803_v48  ;;  %v1707_v60 = vadd.f32 %v2739_v13, %v2737_v24 }
 0x27c   : > { %v1458_v23 = vrot.slane %v1457_v44, 2  ;;  %v1681_v10 = vmul.f32 10.0, %v1673_v4  ;;  %2742 = vpow2.f32 %v1697_v31 }
 0x27d   : > { %2744 = vpow2.f32 %v1699_v40 }
 0x27e   : > { %v1459_v61 = vmax.f32 %v1457_v44, %v1458_v23  ;;  %v2741_v44 = vpop.eup %2740  ;;  %v1682_v23 = vmul.f32 10.0, %v1674_v47  ;;  %v1689_v52 = vadd.f32 %v1681_v10, %v4843_v54  ;;  %2746 = vpow2.f32 %v1701_v29 }
 0x27f   : > { %v1708_v41 = vadd.f32 %v2741_v44, %v1707_v60 }
 0x280   : > { %v1460_v33 = vrot.slane %v1459_v61, 1  ;;  %v1703_v48 = vmul.f32 1.442695, %v1689_v52 }
 0x282   : > { %v1461_v46 = vmax.f32 %v1459_v61, %v1460_v33  ;;  %v2743_v45 = vpop.eup %2742  ;;  %v1690_v61 = vadd.f32 %v1682_v23, %v4844_v7  ;;  %2748 = vpow2.f32 %v1703_v48 }
 0x283   : > { %v1709_v26 = vadd.f32 %v2743_v45, %v1708_v41  ;;  %v2745_v17 = vpop.eup %2744 }
 0x284   : > { %2377 = vpush %v1461_v46  ;;  %v1705_v59 = vmul.f32 1.442695, %v1690_v61  ;;  %v2747_v4 = vpop.eup %2746 }
 0x285   : > { %v1710_v33 = vadd.f32 %v2745_v17, %v1709_v26 }
 0x286   : > { %2750 = vpow2.f32 %v1705_v59 }
 0x287   : > { %v1711_v24 = vadd.f32 %v2747_v4, %v1710_v33  ;;  %v4846_v4 = vld [vmem:[#allocation32_spill] sm:$0xff] }
 0x288   : > { %v2749_v27 = vpop.eup %2748 }
 0x289   : > { %v1712_v39 = vadd.f32 %v2749_v27, %v1711_v24  ;;  %v4847_v27 = vld [vmem:[#allocation31_spill] sm:$0xff] }
 0x28c   : > { %v2751_v31 = vpop.eup %2750 }
 0x28d   : > { %v1713_v13 = vadd.f32 %v2751_v31, %v1712_v39 }
 0x28f   : > { %v1714_v46 = vadd.f32 1e-08, %v1713_v13 }
 0x291   : > { %2752 = vlog2.f32 %v1714_v46  ;;  %v4848_v46 = vld [vmem:[#allocation30_spill] sm:$0xff] }
 0x297   : > { %v2753_v47 = vpop.eup %2752 }
 0x298   : > { %v1716_v60 = vmul.f32 0.6931472, %v2753_v47 }
 0x29a   : > { %v1717_v10 = vmul.f32 0.1, %v1716_v60  ;;  %v4849_v60 = vld [vmem:[#allocation28_spill] sm:$0xff] }
 0x29c   : > { %v1719_v20 = vrot.slane %v1717_v10, 1  ;;  %v1720_v40 = vrot.slane %v1717_v10, 2  ;;  %v1721_v44 = vrot.slane %v1717_v10, 3  ;;  %v1722_v41 = vrot.slane %v1717_v10, 4 }
 0x29d   : > { %v1723_v23 = vrot.slane %v1717_v10, 5  ;;  %v1724_v52 = vrot.slane %v1717_v10, 6  ;;  %v1725_v26 = vrot.slane %v1717_v10, 7  ;;  %v1734_v48 = vsub.f32 %v3282_v30, %v1717_v10  ;;  %v4851_v10 = vld [vmem:[#allocation29_spill] sm:$0xff] }
 0x29e   : > { %v1735_v29 = vsub.f32 %v3290_v35, %v1719_v20  ;;  %v1736_v45 = vsub.f32 %v3292_v0, %v1720_v40  ;;  %v1737_v61 = vsub.f32 %v3296_v50, %v1721_v44  ;;  %v1738_v17 = vsub.f32 %v4769_v56, %v1722_v41  ;;  %v4850_v40 = vld [vmem:[#allocation33_spill] sm:$0xff]  ;;  %v4852_v56 = vld [vmem:[#allocation27_spill] sm:$0xff] }
 0x29f   : > { %v1739_v33 = vsub.f32 %v4821_v37, %v1723_v23  ;;  %v1740_v59 = vsub.f32 %v4822_v12, %v1724_v52  ;;  %v1741_v31 = vsub.f32 %v4823_v43, %v1725_v26  ;;  %v1742_v20 = vadd.f32 %v1734_v48, %v4849_v60  ;;  %v4853_v12 = vld [vmem:[#allocation35_spill] sm:$0xff] }
 0x2a0   : > { %v1743_v24 = vadd.f32 %v1735_v29, %v4846_v4  ;;  %v1744_v39 = vadd.f32 %v1736_v45, %v4847_v27  ;;  %v1745_v47 = vadd.f32 %v1737_v61, %v4848_v46  ;;  %v1746_v44 = vadd.f32 %v1738_v17, %v4850_v40 }
 0x2a1   : > { %v1747_v41 = vadd.f32 %v1739_v33, %v4851_v10  ;;  %v1748_v23 = vadd.f32 %v1740_v59, %v4852_v56  ;;  %v1749_v45 = vadd.f32 %v1741_v31, %v4853_v12  ;;  %v1750_v33 = vmul.f32 %v1742_v20, %v3184_v6 }
 0x2a2   : > { %v1751_v52 = vmul.f32 %v1743_v24, %v3169_v62  ;;  %v1752_v29 = vmul.f32 %v1744_v39, %v3180_v5  ;;  %v1753_v26 = vmul.f32 %v1745_v47, %v3191_v18  ;;  %v1754_v17 = vmul.f32 %v1746_v44, %v3198_v22 }
 0x2a3   : > { %v1755_v59 = vmul.f32 %v1747_v41, %v3205_v28  ;;  %v1756_v24 = vmul.f32 %v1748_v23, %v3216_v8  ;;  %v1757_v31 = vmul.f32 %v1749_v45, %v3212_v36 }
 0x2b5   : > { %s2378_s7 = spop %2377 }
 0x2b6   : > { %p1482_p5 = scmp.lt.f32.partialorder %s2378_s7, 0.1 }
 0x2b8   : > { %p4232_p6 = por %p1482_p5, %p3999_p4 }
 0x2ba   : > { %s1813_s9 = scalar_select %p4232_p6, 1, 0 }
 0x2bc   : > { %v1814_v13 = vstv %s1813_s9 }
 0x2bd   : > { %vm1815_vm13 = vcmp.eq.s32.totalorder %v1814_v13, 1 }
 0x2be   : > { %v4259_v61 = vsel %vm1815_vm13, %v4846_v4, %v1751_v52  ;;  %v4263_v48 = vsel %vm1815_vm13, %v4847_v27, %v1752_v29  ;;  %v4271_v39 = vsel %vm1815_vm13, %v4848_v46, %v1753_v26  ;;  %v4276_v4 = vsel %vm1815_vm13, %v4850_v40, %v1754_v17 }
 0x2bf   : > { %4854 = vst [vmem:[#allocation34_spill] sm:$0xff] %v4259_v61  ;;  %v1850_v27 = vrot.slane %v4259_v61, 7  ;;  %v1852_v47 = vrot.slane %v4263_v48, 6  ;;  %v4283_v20 = vsel %vm1815_vm13, %v4050_v11, %v4151_v49  ;;  %v4288_v46 = vsel %vm1815_vm13, %v4055_v38, %v4156_v53 }
 0x2c0   : > { %4855 = vst [vmem:[#allocation26_spill] sm:$0xff] %v4263_v48  ;;  %v4292_v44 = vsel %vm1815_vm13, %v4849_v60, %v1750_v33  ;;  %v4296_v40 = vsel %vm1815_vm13, %v4851_v10, %v1755_v59  ;;  %v4301_v41 = vsel %vm1815_vm13, %v4068_v2, %v4161_v32  ;;  %v4305_v11 = vsel %vm1815_vm13, %v4852_v56, %v1756_v24 }
 0x2c1   : > { %4856 = vst [vmem:[#allocation32_spill] sm:$0xff] %v4271_v39  ;;  %v1851_v38 = vsel %vm323_vm5, %v1850_v27, %v4292_v44  ;;  %v1854_v49 = vrot.slane %v4271_v39, 5  ;;  %v4313_v53 = vsel %vm1815_vm13, %v4080_v55, %v4168_v15  ;;  %v4317_v60 = vsel %vm1815_vm13, %v4853_v12, %v1757_v31 }
 0x2c2   : > { %4857 = vst [vmem:[#allocation31_spill] sm:$0xff] %v4276_v4  ;;  %v1853_v2 = vsel %vm326_vm7, %v1852_v47, %v1851_v38  ;;  %v1856_v32 = vrot.slane %v4276_v4, 4  ;;  %v4324_v56 = vsel %vm1815_vm13, %v4091_v9, %v4174_v16  ;;  %v4329_v10 = vsel %vm1815_vm13, %v4096_v58, %v4180_v57 }
 0x2c3   : > { %4858 = vst [vmem:[#allocation30_spill] sm:$0xff] %v4292_v44  ;;  %v1855_v55 = vsel %vm329_vm9, %v1854_v49, %v1853_v2  ;;  %v1858_v15 = vrot.slane %v4296_v40, 3  ;;  %v4336_v12 = vsel %vm1815_vm13, %v4103_v21, %v4185_v34  ;;  %v4341_v23 = vsel %vm1815_vm13, %v4108_v51, %v4191_v63 }
 0x2c4   : > { %4859 = vst [vmem:[#allocation28_spill] sm:$0xff] %v4296_v40  ;;  %v1857_v9 = vsel %vm332_vm11, %v1856_v32, %v1855_v55  ;;  %v1860_v16 = vrot.slane %v4305_v11, 2  ;;  %v1834_v58 = vperm.slane %v4283_v20, 0  ;;  %v1835_v57 = vperm.slane %v4288_v46, 0 }
 0x2c5   : > { %4860 = vst [vmem:[#allocation33_spill] sm:$0xff] %v4305_v11  ;;  %v1859_v52 = vsel %vm335_vm12, %v1858_v15, %v1857_v9  ;;  %v1862_v29 = vrot.slane %v4317_v60, 1  ;;  %v1836_v21 = vperm.slane %v4301_v41, 0  ;;  %v1837_v34 = vperm.slane %v4313_v53, 0 }
 0x2c6   : > { %4861 = vst [vmem:[#allocation29_spill] sm:$0xff] %v4317_v60  ;;  %v1838_v13 = vperm.slane %v4324_v56, 0  ;;  %v1861_v51 = vsel %vm338_vm14, %v1860_v16, %v1859_v52  ;;  %v1839_v63 = vperm.slane %v4329_v10, 0  ;;  %v1840_v45 = vperm.slane %v4336_v12, 0 }
 0x2c7   : > { %4862 = vst [vmem:[#allocation27_spill] sm:$0xff] %v4341_v23  ;;  %v1841_v26 = vperm.slane %v4341_v23, 0  ;;  %v4357_v17 = vsel %vm341_vm15, %v1862_v29, %v1861_v51 }
 0x2c8   : > { %v1865_v33 = vadd.f32 %v4357_v17, %v1834_v58  ;;  %v1866_v59 = vadd.f32 %v4357_v17, %v1835_v57  ;;  %v1867_v24 = vadd.f32 %v4357_v17, %v1836_v21  ;;  %v1868_v31 = vadd.f32 %v4357_v17, %v1837_v34 }
 0x2c9   : > { %v1869_v27 = vadd.f32 %v4357_v17, %v1838_v13  ;;  %v1870_v47 = vadd.f32 %v4357_v17, %v1839_v63  ;;  %v1871_v38 = vadd.f32 %v4357_v17, %v1840_v45  ;;  %v1872_v49 = vadd.f32 %v4357_v17, %v1841_v26 }
 0x2ca   : > { %v1873_v2 = vmul.f32 10.0, %v1865_v33  ;;  %v1874_v32 = vmul.f32 10.0, %v1866_v59  ;;  %v1875_v55 = vmul.f32 10.0, %v1867_v24  ;;  %v1876_v15 = vmul.f32 10.0, %v1868_v31 }
 0x2cb   : > { %v1877_v9 = vmul.f32 10.0, %v1869_v27  ;;  %v1878_v16 = vmul.f32 10.0, %v1870_v47  ;;  %v1879_v58 = vmul.f32 10.0, %v1871_v38  ;;  %v1880_v57 = vmul.f32 10.0, %v1872_v49 }
 0x2cc   : > { %v1881_v52 = vadd.f32 %v1873_v2, %v3262_v42  ;;  %v1882_v29 = vadd.f32 %v1874_v32, %v3278_v19  ;;  %v1883_v21 = vadd.f32 %v1875_v55, %v3260_v1  ;;  %v1884_v34 = vadd.f32 %v1876_v15, %v3276_v25 }
 0x2cd   : > { %v1885_v13 = vadd.f32 %v1877_v9, %v3228_v3  ;;  %v1886_v51 = vadd.f32 %v1878_v16, %v3236_v14  ;;  %v1887_v63 = vadd.f32 %v1879_v58, %v4843_v54  ;;  %v1888_v59 = vadd.f32 %v1880_v57, %v4844_v7 }
 0x2ce   : > { %v1889_v45 = vmul.f32 1.442695, %v1881_v52  ;;  %v1891_v26 = vmul.f32 1.442695, %v1882_v29  ;;  %v1893_v33 = vmul.f32 1.442695, %v1883_v21 }
 0x2cf   : > { %v1895_v24 = vmul.f32 1.442695, %v1884_v34  ;;  %v1897_v31 = vmul.f32 1.442695, %v1885_v13  ;;  %v1899_v27 = vmul.f32 1.442695, %v1886_v51 }
 0x2d0   : > { %2754 = vpow2.f32 %v1889_v45  ;;  %v1901_v47 = vmul.f32 1.442695, %v1887_v63  ;;  %v1903_v38 = vmul.f32 1.442695, %v1888_v59 }
 0x2d1   : > { %2756 = vpow2.f32 %v1891_v26 }
 0x2d2   : > { %2758 = vpow2.f32 %v1893_v33 }
 0x2d3   : > { %2760 = vpow2.f32 %v1895_v24 }
 0x2d4   : > { %2762 = vpow2.f32 %v1897_v31 }
 0x2d5   : > { %2764 = vpow2.f32 %v1899_v27 }
 0x2d6   : > { %v2755_v49 = vpop.eup %2754  ;;  %2766 = vpow2.f32 %v1901_v47 }
 0x2d7   : > { %v2757_v2 = vpop.eup %2756  ;;  %2768 = vpow2.f32 %v1903_v38  ;;  %v1905_v32 = vrot.slane %v2755_v49, 4 }
 0x2d8   : > { %v2759_v55 = vpop.eup %2758  ;;  %v1911_v15 = vrot.slane %v2757_v2, 4 }
 0x2d9   : > { %v2761_v9 = vpop.eup %2760  ;;  %v1906_v16 = vadd.f32 %v2755_v49, %v1905_v32  ;;  %v1917_v58 = vrot.slane %v2759_v55, 4 }
 0x2da   : > { %v2763_v57 = vpop.eup %2762  ;;  %v1912_v52 = vadd.f32 %v2757_v2, %v1911_v15  ;;  %v1923_v29 = vrot.slane %v2761_v9, 4 }
 0x2db   : > { %v2765_v21 = vpop.eup %2764  ;;  %v1907_v34 = vrot.slane %v1906_v16, 2  ;;  %v1918_v13 = vadd.f32 %v2759_v55, %v1917_v58  ;;  %v1929_v51 = vrot.slane %v2763_v57, 4 }
 0x2dc   : > { %v2767_v63 = vpop.eup %2766  ;;  %v1913_v45 = vrot.slane %v1912_v52, 2  ;;  %v1924_v26 = vadd.f32 %v2761_v9, %v1923_v29  ;;  %v1935_v33 = vrot.slane %v2765_v21, 4 }
 0x2dd   : > { %v2769_v59 = vpop.eup %2768  ;;  %v1908_v24 = vadd.f32 %v1907_v34, %v1906_v16  ;;  %v1919_v31 = vrot.slane %v1918_v13, 2  ;;  %v1930_v27 = vadd.f32 %v2763_v57, %v1929_v51  ;;  %v1941_v47 = vrot.slane %v2767_v63, 4 }
 0x2de   : > { %v1914_v38 = vadd.f32 %v1913_v45, %v1912_v52  ;;  %v1925_v60 = vrot.slane %v1924_v26, 2  ;;  %v1936_v49 = vadd.f32 %v2765_v21, %v1935_v33  ;;  %v1947_v32 = vrot.slane %v2769_v59, 4 }
 0x2df   : > { %v1909_v11 = vrot.slane %v1908_v24, 1  ;;  %v1920_v2 = vadd.f32 %v1919_v31, %v1918_v13  ;;  %v1931_v15 = vrot.slane %v1930_v27, 2  ;;  %v1942_v40 = vadd.f32 %v2767_v63, %v1941_v47 }
 0x2e0   : > { %v1915_v4 = vrot.slane %v1914_v38, 1  ;;  %v1926_v55 = vadd.f32 %v1925_v60, %v1924_v26  ;;  %v1937_v58 = vrot.slane %v1936_v49, 2  ;;  %v1948_v39 = vadd.f32 %v2769_v59, %v1947_v32 }
 0x2e1   : > { %v1910_v48 = vadd.f32 %v1909_v11, %v1908_v24  ;;  %v1921_v9 = vrot.slane %v1920_v2, 1  ;;  %v1932_v29 = vadd.f32 %v1931_v15, %v1930_v27  ;;  %v1943_v61 = vrot.slane %v1942_v40, 2 }
 0x2e2   : > { %v1916_v16 = vadd.f32 %v1915_v4, %v1914_v38  ;;  %v1927_v34 = vrot.slane %v1926_v55, 1  ;;  %v1938_v57 = vadd.f32 %v1937_v58, %v1936_v49  ;;  %v1949_v51 = vrot.slane %v1948_v39, 2 }
 0x2e3   : > { %v1922_v52 = vadd.f32 %v1921_v9, %v1920_v2  ;;  %v1933_v45 = vrot.slane %v1932_v29, 1  ;;  %v1944_v21 = vadd.f32 %v1943_v61, %v1942_v40  ;;  %v1953_v33 = vadd.f32 1e-08, %v1910_v48 }
 0x2e4   : > { %v1928_v44 = vadd.f32 %v1927_v34, %v1926_v55  ;;  %v1939_v13 = vrot.slane %v1938_v57, 1  ;;  %v1950_v31 = vadd.f32 %v1949_v51, %v1948_v39  ;;  %v1954_v63 = vadd.f32 1e-08, %v1916_v16 }
 0x2e5   : > { %v1934_v47 = vadd.f32 %v1933_v45, %v1932_v29  ;;  %v1945_v60 = vrot.slane %v1944_v21, 1  ;;  %v1955_v26 = vadd.f32 1e-08, %v1922_v52  ;;  %2770 = vlog2.f32 %v1953_v33 }
 0x2e6   : > { %v1940_v11 = vadd.f32 %v1939_v13, %v1938_v57  ;;  %v1951_v59 = vrot.slane %v1950_v31, 1  ;;  %v1956_v24 = vadd.f32 1e-08, %v1928_v44  ;;  %2772 = vlog2.f32 %v1954_v63 }
 0x2e7   : > { %v1946_v4 = vadd.f32 %v1945_v60, %v1944_v21  ;;  %v1957_v27 = vadd.f32 1e-08, %v1934_v47  ;;  %2774 = vlog2.f32 %v1955_v26 }
 0x2e8   : > { %v1952_v38 = vadd.f32 %v1951_v59, %v1950_v31  ;;  %v1958_v49 = vadd.f32 1e-08, %v1940_v11  ;;  %2776 = vlog2.f32 %v1956_v24 }
 0x2e9   : > { %v1959_v61 = vadd.f32 1e-08, %v1946_v4  ;;  %2778 = vlog2.f32 %v1957_v27 }
 0x2ea   : > { %v1960_v48 = vadd.f32 1e-08, %v1952_v38  ;;  %2780 = vlog2.f32 %v1958_v49 }
 0x2eb   : > { %v2771_v39 = vpop.eup %2770  ;;  %2782 = vlog2.f32 %v1959_v61 }
 0x2ec   : > { %v2773_v40 = vpop.eup %2772  ;;  %v1962_v32 = vmul.f32 0.6931472, %v2771_v39  ;;  %2784 = vlog2.f32 %v1960_v48  ;;  %v4863_v39 = vld [vmem:[#allocation20_spill] sm:$0xff] }
 0x2ed   : > { %v2775_v2 = vpop.eup %2774  ;;  %v1964_v55 = vmul.f32 0.6931472, %v2773_v40 }
 0x2ee   : > { %v1805_v15 = vpop.xlane.xlu1 %1804  ;;  %v2777_v44 = vpop.eup %2776  ;;  %v1966_v9 = vmul.f32 0.6931472, %v2775_v2  ;;  %v1977_v29 = vmul.f32 0.1, %v1962_v32 }
 0x2ef   : > { %v1806_v58 = vrot.slane %v1805_v15, 4  ;;  %v2779_v16 = vpop.eup %2778  ;;  %v1968_v34 = vmul.f32 0.6931472, %v2777_v44  ;;  %v1978_v57 = vmul.f32 0.1, %v1964_v55 }
 0x2f0   : > { %v2781_v51 = vpop.eup %2780  ;;  %v1970_v45 = vmul.f32 0.6931472, %v2779_v16  ;;  %v1979_v21 = vmul.f32 0.1, %v1966_v9  ;;  %v1985_v33 = vsub.f32 %v3282_v30, %v1977_v29  ;;  %v4864_v9 = vld [vmem:[#allocation22_spill] sm:$0xff] }
 0x2f1   : > { %v1807_v52 = vmax.f32 %v1805_v15, %v1806_v58  ;;  %v2783_v13 = vpop.eup %2782  ;;  %v1972_v31 = vmul.f32 0.6931472, %v2781_v51  ;;  %v1980_v63 = vmul.f32 0.1, %v1968_v34  ;;  %v1986_v47 = vsub.f32 %v3290_v35, %v1978_v57 }
 0x2f2   : > { %v2785_v60 = vpop.eup %2784  ;;  %v1974_v11 = vmul.f32 0.6931472, %v2783_v13  ;;  %v1981_v59 = vmul.f32 0.1, %v1970_v45  ;;  %v1987_v24 = vsub.f32 %v3292_v0, %v1979_v21  ;;  %v1993_v49 = vadd.f32 %v1985_v33, %v4283_v20 }
 0x2f3   : > { %v1808_v26 = vrot.slane %v1807_v52, 2  ;;  %v1976_v4 = vmul.f32 0.6931472, %v2785_v60  ;;  %v1982_v27 = vmul.f32 0.1, %v1972_v31  ;;  %v1988_v38 = vsub.f32 %v3296_v50, %v1980_v63 }
 0x2f4   : > { %v1983_v48 = vmul.f32 0.1, %v1974_v11  ;;  %v1989_v40 = vsub.f32 %v4863_v39, %v1981_v59  ;;  %v1994_v32 = vadd.f32 %v1986_v47, %v4288_v46  ;;  %v1995_v55 = vadd.f32 %v1987_v24, %v4301_v41 }
 0x2f5   : > { %v1809_v61 = vmax.f32 %v1807_v52, %v1808_v26  ;;  %v1984_v2 = vmul.f32 0.1, %v1976_v4  ;;  %v1990_v15 = vsub.f32 %v4821_v37, %v1982_v27  ;;  %v1996_v44 = vadd.f32 %v1988_v38, %v4313_v53 }
 0x2f6   : > { %v1991_v29 = vsub.f32 %v4864_v9, %v1983_v48  ;;  %v1997_v16 = vadd.f32 %v1989_v40, %v4324_v56  ;;  %v4388_v34 = vmul.f32 %v1993_v49, %v3184_v6  ;;  %v4393_v52 = vmul.f32 %v1994_v32, %v3169_v62 }
 0x2f7   : > { %v1810_v58 = vrot.slane %v1809_v61, 1  ;;  %v1992_v57 = vsub.f32 %v4823_v43, %v1984_v2  ;;  %v1998_v51 = vadd.f32 %v1990_v15, %v4329_v10  ;;  %v4396_v45 = vmul.f32 %v1995_v55, %v3180_v5 }
 0x2f8   : > { %v1999_v33 = vadd.f32 %v1991_v29, %v4336_v12  ;;  %v4400_v13 = vmul.f32 %v1996_v44, %v3191_v18  ;;  %v4403_v31 = vmul.f32 %v1997_v16, %v3198_v22  ;;  %v2108_v60 = vsub.f32 %v4388_v34, %v4283_v20 }
 0x2f9   : > { %v1811_v21 = vmax.f32 %v1809_v61, %v1810_v58  ;;  %v2000_v63 = vadd.f32 %v1992_v57, %v4341_v23  ;;  %v4407_v47 = vmul.f32 %v1998_v51, %v3205_v28  ;;  %v2109_v26 = vsub.f32 %v4393_v52, %v4288_v46 }
 0x2fa   : > { %v4414_v11 = vmul.f32 %v1999_v33, %v3216_v8  ;;  %v2110_v59 = vsub.f32 %v4396_v45, %v4301_v41  ;;  %v2111_v24 = vsub.f32 %v4400_v13, %v4313_v53  ;;  %v2112_v4 = vsub.f32 %v4403_v31, %v4324_v56 }
 0x2fb   : > { %2379 = vpush %v1811_v21  ;;  %v4423_v27 = vmul.f32 %v2000_v63, %v3212_v36  ;;  %v2113_v38 = vsub.f32 %v4407_v47, %v4329_v10  ;;  %v2116_v49 = vand.u32 2147483647, %v2108_v60  ;;  %v2117_v61 = vand.u32 2147483647, %v2109_v26 }
 0x2fc   : > { %v2114_v48 = vsub.f32 %v4414_v11, %v4336_v12  ;;  %v2118_v40 = vand.u32 2147483647, %v2110_v59  ;;  %v2119_v32 = vand.u32 2147483647, %v2111_v24  ;;  %v2120_v2 = vand.u32 2147483647, %v2112_v4 }
 0x2fd   : > { %4865 = vst [vmem:[#allocation35_spill] sm:$0xff] %v4423_v27  ;;  %v2115_v15 = vsub.f32 %v4423_v27, %v4341_v23  ;;  %v2121_v55 = vand.u32 2147483647, %v2113_v38  ;;  %v2132_v44 = vrot.slane %v2117_v61, 7  ;;  %v2009_v58 = vperm.slane %v4388_v34, 0 }
 0x2fe   : > { %v2122_v29 = vand.u32 2147483647, %v2114_v48  ;;  %v2134_v16 = vrot.slane %v2118_v40, 6  ;;  %v2136_v57 = vrot.slane %v2119_v32, 5  ;;  %v2138_v51 = vrot.slane %v2120_v2, 4 }
 0x2ff   : > { %v2123_v21 = vand.u32 2147483647, %v2115_v15  ;;  %v2133_v33 = vsel %vm323_vm5, %v2132_v44, %v2116_v49  ;;  %v2140_v63 = vrot.slane %v2121_v55, 3  ;;  %v2010_v60 = vperm.slane %v4393_v52, 0 }
 0x300   : > { %v2135_v26 = vsel %vm326_vm7, %v2134_v16, %v2133_v33  ;;  %v2142_v59 = vrot.slane %v2122_v29, 2  ;;  %v2011_v24 = vperm.slane %v4396_v45, 0  ;;  %v2012_v4 = vperm.slane %v4400_v13, 0 }
 0x301   : > { %v2137_v38 = vsel %vm329_vm9, %v2136_v57, %v2135_v26  ;;  %v2144_v61 = vrot.slane %v2123_v21, 1  ;;  %v2013_v48 = vperm.slane %v4403_v31, 0  ;;  %v2014_v40 = vperm.slane %v4407_v47, 0 }
 0x302   : > { %v2139_v32 = vsel %vm332_vm11, %v2138_v51, %v2137_v38  ;;  %v2015_v49 = vperm.slane %v4414_v11, 0  ;;  %v2016_v2 = vperm.slane %v4423_v27, 0  ;;  %v2017_v15 = vadd.f32 %v2009_v58, %v4357_v17 }
 0x303   : > { %v2141_v55 = vsel %vm335_vm12, %v2140_v63, %v2139_v32  ;;  %v2018_v44 = vadd.f32 %v2010_v60, %v4357_v17  ;;  %v2019_v29 = vadd.f32 %v2011_v24, %v4357_v17  ;;  %v2020_v16 = vadd.f32 %v2012_v4, %v4357_v17 }
 0x304   : > { %v2143_v57 = vsel %vm338_vm14, %v2142_v59, %v2141_v55  ;;  %v2021_v21 = vadd.f32 %v2013_v48, %v4357_v17  ;;  %v2022_v51 = vadd.f32 %v2014_v40, %v4357_v17  ;;  %v2023_v33 = vadd.f32 %v2015_v49, %v4357_v17 }
 0x305   : > { %v2145_v26 = vsel %vm341_vm15, %v2144_v61, %v2143_v57  ;;  %v2024_v58 = vadd.f32 %v2016_v2, %v4357_v17  ;;  %v2025_v38 = vmul.f32 10.0, %v2017_v15  ;;  %v2026_v63 = vmul.f32 10.0, %v2018_v44 }
 0x306   : > { %v2147_v32 = vrot.slane %v2145_v26, 4  ;;  %v2027_v60 = vmul.f32 10.0, %v2019_v29  ;;  %v2028_v23 = vmul.f32 10.0, %v2020_v16  ;;  %v2029_v24 = vmul.f32 10.0, %v2021_v21 }
 0x307   : > { %v2033_v4 = vadd.f32 %v2025_v38, %v3262_v42  ;;  %v2034_v59 = vadd.f32 %v2026_v63, %v3278_v19  ;;  %v2030_v40 = vmul.f32 10.0, %v2022_v51  ;;  %v2031_v17 = vmul.f32 10.0, %v2023_v33 }
 0x308   : > { %v2148_v27 = vadd.f32 %v2147_v32, %v2145_v26  ;;  %v2035_v48 = vadd.f32 %v2027_v60, %v3260_v1  ;;  %v2036_v49 = vadd.f32 %v2028_v23, %v3276_v25  ;;  %v2037_v2 = vadd.f32 %v2029_v24, %v3228_v3 }
 0x309   : > { %v2041_v61 = vmul.f32 1.442695, %v2033_v4  ;;  %v2043_v57 = vmul.f32 1.442695, %v2034_v59  ;;  %v2032_v29 = vmul.f32 10.0, %v2024_v58  ;;  %v2038_v16 = vadd.f32 %v2030_v40, %v3236_v14 }
 0x30a   : > { %v2149_v55 = vrot.slane %v2148_v27, 2  ;;  %v2045_v15 = vmul.f32 1.442695, %v2035_v48  ;;  %v2047_v21 = vmul.f32 1.442695, %v2036_v49  ;;  %v2039_v38 = vadd.f32 %v2031_v17, %v4843_v54 }
 0x30b   : > { %2786 = vpow2.f32 %v2041_v61  ;;  %v2049_v51 = vmul.f32 1.442695, %v2037_v2  ;;  %v2040_v63 = vadd.f32 %v2032_v29, %v4844_v7  ;;  %v2051_v33 = vmul.f32 1.442695, %v2038_v16 }
 0x30c   : > { %v2150_v44 = vadd.f32 %v2149_v55, %v2148_v27  ;;  %2788 = vpow2.f32 %v2043_v57  ;;  %v2053_v58 = vmul.f32 1.442695, %v2039_v38 }
 0x30d   : > { %2790 = vpow2.f32 %v2045_v15  ;;  %v2055_v59 = vmul.f32 1.442695, %v2040_v63 }
 0x30e   : > { %v2151_v26 = vrot.slane %v2150_v44, 1  ;;  %2792 = vpow2.f32 %v2047_v21 }
 0x30f   : > { %2794 = vpow2.f32 %v2049_v51 }
 0x310   : > { %v2152_v23 = vadd.f32 %v2151_v26, %v2150_v44  ;;  %2796 = vpow2.f32 %v2051_v33 }
 0x311   : > { %v2787_v32 = vpop.eup %2786  ;;  %2798 = vpow2.f32 %v2053_v58 }
 0x312   : > { %v2153_v60 = vsel %vm752_vm4, %v2152_v23, -inf  ;;  %v2789_v27 = vpop.eup %2788  ;;  %2800 = vpow2.f32 %v2055_v59 }
 0x313   : > { %2154 = vmax.xlane.f32.xlu2 %v2153_v60  ;;  %v2057_v24 = vadd.f32 %v2789_v27, %v2787_v32  ;;  %v2791_v4 = vpop.eup %2790 }
 0x314   : > { %v2793_v54 = vpop.eup %2792 }
 0x315   : > { %v2058_v48 = vadd.f32 %v2791_v4, %v2057_v24  ;;  %v2795_v49 = vpop.eup %2794 }
 0x316   : > { %v2797_v55 = vpop.eup %2796 }
 0x317   : > { %v2059_v40 = vadd.f32 %v2793_v54, %v2058_v48  ;;  %v2799_v57 = vpop.eup %2798 }
 0x318   : > { %v2801_v2 = vpop.eup %2800 }
 0x319   : > { %v2060_v7 = vadd.f32 %v2795_v49, %v2059_v40  ;;  %v4867_v40 = vld [vmem:[#allocation30_spill] sm:$0xff] }
 0x31b   : > { %v2061_v61 = vadd.f32 %v2797_v55, %v2060_v7  ;;  %v4868_v7 = vld [vmem:[#allocation34_spill] sm:$0xff] }
 0x31d   : > { %v2062_v17 = vadd.f32 %v2799_v57, %v2061_v61  ;;  %v4869_v61 = vld [vmem:[#allocation26_spill] sm:$0xff] }
 0x31f   : > { %v2063_v15 = vadd.f32 %v2801_v2, %v2062_v17  ;;  %v4870_v17 = vld [vmem:[#allocation32_spill] sm:$0xff] }
 0x321   : > { %v2064_v44 = vadd.f32 1e-08, %v2063_v15  ;;  %v4871_v15 = vld [vmem:[#allocation31_spill] sm:$0xff] }
 0x323   : > { %2802 = vlog2.f32 %v2064_v44 }
 0x329   : > { %v2803_v29 = vpop.eup %2802 }
 0x32a   : > { %v2066_v16 = vmul.f32 0.6931472, %v2803_v29  ;;  %v4872_v29 = vld [vmem:[#allocation28_spill] sm:$0xff] }
 0x32c   : > { %s2380_s10 = spop %2379  ;;  %v2067_v21 = vmul.f32 0.1, %v2066_v16  ;;  %v4873_v16 = vld [vmem:[#allocation33_spill] sm:$0xff] }
 0x32d   : > { %p1832_p7 = scmp.lt.f32.partialorder %s2380_s10, 0.1 }
 0x32e   : > { %v2069_v26 = vrot.slane %v2067_v21, 1  ;;  %v2070_v38 = vrot.slane %v2067_v21, 2  ;;  %v2071_v51 = vrot.slane %v2067_v21, 3  ;;  %v2072_v23 = vrot.slane %v2067_v21, 4 }
 0x32f   : > { %p4465_p8 = por %p1832_p7, %p4232_p6  ;;  %v2073_v63 = vrot.slane %v2067_v21, 5  ;;  %v2074_v33 = vrot.slane %v2067_v21, 6  ;;  %v2075_v32 = vrot.slane %v2067_v21, 7  ;;  %v2084_v60 = vsub.f32 %v3282_v30, %v2067_v21  ;;  %v4874_v21 = vld [vmem:[#allocation29_spill] sm:$0xff] }
 0x330   : > { %v2085_v27 = vsub.f32 %v3290_v35, %v2069_v26  ;;  %v2086_v58 = vsub.f32 %v3292_v0, %v2070_v38  ;;  %v2087_v24 = vsub.f32 %v3296_v50, %v2071_v51  ;;  %v2088_v4 = vsub.f32 %v4863_v39, %v2072_v23 }
 0x331   : > { %v2089_v59 = vsub.f32 %v4821_v37, %v2073_v63  ;;  %v2090_v48 = vsub.f32 %v4864_v9, %v2074_v33  ;;  %v2091_v54 = vsub.f32 %v4823_v43, %v2075_v32  ;;  %v2092_v49 = vadd.f32 %v2084_v60, %v4867_v40  ;;  %s2163_s12 = scalar_select %p4465_p8, 1, 0 }
 0x332   : > { %v2093_v55 = vadd.f32 %v2085_v27, %v4868_v7  ;;  %v2094_v57 = vadd.f32 %v2086_v58, %v4869_v61  ;;  %v2095_v2 = vadd.f32 %v2087_v24, %v4870_v17  ;;  %v2096_v44 = vadd.f32 %v2088_v4, %v4871_v15 }
 0x333   : > { %v2097_v39 = vadd.f32 %v2089_v59, %v4872_v29  ;;  %v2098_v37 = vadd.f32 %v2090_v48, %v4873_v16  ;;  %v2099_v9 = vadd.f32 %v2091_v54, %v4874_v21  ;;  %v2100_v43 = vmul.f32 %v2092_v49, %v3184_v6 }
 0x334   : > { %v2101_v26 = vmul.f32 %v2093_v55, %v3169_v62  ;;  %v2102_v38 = vmul.f32 %v2094_v57, %v3180_v5  ;;  %v2103_v51 = vmul.f32 %v2095_v2, %v3191_v18  ;;  %v2104_v23 = vmul.f32 %v2096_v44, %v3198_v22 }
 0x335   : > { %v2164_v63 = vstv %s2163_s12  ;;  %v2105_v33 = vmul.f32 %v2097_v39, %v3205_v28  ;;  %v2106_v32 = vmul.f32 %v2098_v37, %v3216_v8  ;;  %v2107_v60 = vmul.f32 %v2099_v9, %v3212_v36 }
 0x336   : > { %vm2165_vm0 = vcmp.eq.s32.totalorder %v2164_v63, 1 }
 0x337   : > { %v4498_v48 = vsel %vm2165_vm0, %v4283_v20, %v4388_v34   ;;  %v4503_v27 = vsel %vm2165_vm0, %v4288_v46, %v4393_v52   ;;  %v4508_v24 = vsel %vm2165_vm0, %v4301_v41, %v4396_v45   ;;  %v4513_v4 = vsel %vm2165_vm0, %v4313_v53, %v4400_v13   ;;  %v4882_v41 = vld [vmem:[#allocation35_spill] sm:$0xff] }
 0x338   : > { %v4875_v58 = vmov %v4498_v48  ;;  %v4876_v59 = vmov %v4503_v27  ;;  %v4877_v54 = vmov %v4508_v24  ;;  %v4878_v49 = vmov %v4513_v4  ;;  %v4883_v27 = vld [vmem:[#allocation27_spill] sm:$0xff] }
 0x339   : > { %v4518_v20 = vsel %vm2165_vm0, %v4324_v56, %v4403_v31   ;;  %v4523_v44 = vsel %vm2165_vm0, %v4329_v10, %v4407_v47   ;;  %v4528_v46 = vsel %vm2165_vm0, %v4336_v12, %v4414_v11   ;;  %v4533_v13 = vsel %vm2165_vm0, %v4883_v27, %v4882_v41  }
 0x33a   : > { %v4879_v34 = vmov %v4518_v20  ;;  %v4880_v52 = vmov %v4523_v44  ;;  %v4881_v45 = vmov %v4528_v46  ;;  %v4884_v53 = vmov %v4533_v13 }
 0x33b   : > { %v2174_v55 = vsel %vm2165_vm0, %v4867_v40, %v2100_v43   ;;  %v2175_v56 = vsel %vm2165_vm0, %v4868_v7, %v2101_v26   ;;  %v2176_v10 = vsel %vm2165_vm0, %v4869_v61, %v2102_v38   ;;  %v2177_v31 = vsel %vm2165_vm0, %v4870_v17, %v2103_v51  }
 0x33c   : > { %v2178_v47 = vsel %vm2165_vm0, %v4871_v15, %v2104_v23   ;;  %v2179_v57 = vsel %vm2165_vm0, %v4872_v29, %v2105_v33   ;;  %v2180_v2 = vsel %vm2165_vm0, %v4873_v16, %v2106_v32   ;;  %v2181_v39 = vsel %vm2165_vm0, %v4874_v21, %v2107_v60  }
 0x33d   : > { %v4888_v7 = vmov %v2181_v39  ;;  %v4889_v4 = vmov %v2180_v2  ;;  %v4893_v46 = vmov %v2176_v10  ;;  %v4894_v41 = vmov %v2175_v56 }
 0x33e   : > { %v4895_v32 = vmov %v2174_v55  ;;  %v4897_v15 = vmov %v4881_v45  ;;  %v4898_v44 = vmov %v4880_v52  ;;  %v4900_v23 = vmov %v4878_v49 }
 0x33f   : > { %v4902_v27 = vmov %v4876_v59 }
 0x386   : > { %v2155_v20 = vpop.xlane.xlu2 %2154 }
 0x387   : > { %v2156_v12 = vrot.slane %v2155_v20, 4 }
 0x389   : > { %v2157_v13 = vmax.f32 %v2155_v20, %v2156_v12  ;;  %v4891_v12 = vmov %v2178_v47  ;;  %v4899_v20 = vmov %v4879_v34 }
 0x38b   : > { %v2158_v11 = vrot.slane %v2157_v13, 2 }
 0x38d   : > { %v2159_v24 = vmax.f32 %v2157_v13, %v2158_v11  ;;  %v4890_v11 = vmov %v2179_v57  ;;  %v4896_v13 = vmov %v4884_v53 }
 0x38f   : > { %v2160_v48 = vrot.slane %v2159_v24, 1 }
 0x391   : > { %v2161_v40 = vmax.f32 %v2159_v24, %v2160_v48  ;;  %v4901_v24 = vmov %v4877_v54  ;;  %v4903_v48 = vmov %v4875_v58 }
 0x393   : > { %2381 = vpush %v2161_v40  ;;  %v4892_v40 = vmov %v2177_v31 }
 0x3c4   : > { %s2382_s14 = spop %2381 }
 0x3c5   : > { %p2182_p9 = scmp.lt.f32.partialorder %s2382_s14, 0.1 }
 0x3c7   : > { %p2183_p0 = por %p2182_p9, %p4465_p8  }
 0x3c9   : > { %p428_p11 = pneg %p2183_p0 }
 0x3cb   : > { %p4556_p12 = pnand %p428_p11, %p427_p10 }
 0x3cc   :  { %v2201_v61 = vrot.slane (%p4556_p12), %v2175_v56, 7  ;;  %v2203_v17 = vrot.slane (%p4556_p12), %v2176_v10, 6  ;;  %v2205_v29 = vrot.slane (%p4556_p12), %v2177_v31, 5  ;;  %v2207_v16 = vrot.slane (%p4556_p12), %v2178_v47, 4  ;;  %v4905_v47 = vld [vmem:[#allocation24_spill] sm:$0xff] (%p4556_p12)  ;;  %v4907_v12 = vld [vmem:[#allocation15_spill] sm:$0xff] (%p4556_p12) }
 0x3cd   :  { %432 = sbr.rel (!%p4556_p12) target bundleno = 164 (0xa4), region = 47  ;;  %v2209_v21 = vrot.slane (%p4556_p12), %v2179_v57, 3  ;;  %v2211_v43 = vrot.slane (%p4556_p12), %v2180_v2, 2  ;;  %v2185_v26 = vperm.slane (%p4556_p12), %v4875_v58, 0  ;;  %v2186_v38 = vperm.slane (%p4556_p12), %v4876_v59, 0  ;;  %v4908_v24 = vld [vmem:[#allocation17_spill] sm:$0xff] (%p4556_p12) }
 0x3ce   :  { %v2202_v37 = vsel (%p4556_p12), %vm323_vm5, %v2201_v61, %v2174_v55  ;;  %v2213_v63 = vrot.slane (%p4556_p12), %v2181_v39, 1  ;;  %v2187_v33 = vperm.slane (%p4556_p12), %v4877_v54, 0  ;;  %v2188_v62 = vperm.slane (%p4556_p12), %v4878_v49, 0  ;;  %v4909_v61 = vld [vmem:[#allocation14_spill] sm:$0xff] (%p4556_p12)  ;;  %s3047_s17 = smov (%p4556_p12), [#allocation8]   ;;  %s2285_s21 = sshll.u32 (%p4556_p12), %s4647_s3, 4  ;;  %s2286_s21 = int_to_ptr.hbm [resolvable:$true] %s2285_s21 }
 0x3cf   :  { %v2204_v9 = vsel (%p4556_p12), %vm326_vm7, %v2203_v17, %v2202_v37  ;;  %v2189_v5 = vperm.slane (%p4556_p12), %v4879_v34, 0  ;;  %v2190_v18 = vperm.slane (%p4556_p12), %v4880_v52, 0  ;;  %v2191_v22 = vperm.slane (%p4556_p12), %v4881_v45, 0  ;;  %s2283_s18 = sshll.u32 (%p4556_p12), %s3047_s17, 4  ;;  %s2284_s18 = int_to_ptr.vmem [resolvable:$true] %s2283_s18 }
 0x3d0   :  { %v2206_v51 = vsel (%p4556_p12), %vm329_vm9, %v2205_v29, %v2204_v9  ;;  %v2192_v28 = vperm.slane (%p4556_p12), %v4884_v53, 0 }
 0x3d1   :  { %v2208_v6 = vsel (%p4556_p12), %vm332_vm11, %v2207_v16, %v2206_v51  ;;  %v4910_v16 = vld [vmem:[#allocation16_spill] sm:$0xff] (%p4556_p12) }
 0x3d2   :  { %v2210_v36 = vsel %vm335_vm12, %v2209_v21, %v2208_v6  ;;  %v4913_v6 = vld [vmem:[#allocation19_spill] sm:$0xff] }
 0x3d3   :  { %v2212_v8 = vsel %vm338_vm14, %v2211_v43, %v2210_v36  ;;  %v4911_v43 = vld [vmem:[#allocation12_spill] sm:$0xff] }
 0x3d4   :  { %v2214_v30 = vsel %vm341_vm15, %v2213_v63, %v2212_v8  ;;  %v4912_v63 = vld [vmem:[#allocation13_spill] sm:$0xff] }
 0x3d5   :  { %v2216_v35 = vadd.f32 %v2214_v30, %v2185_v26  ;;  %v2217_v0 = vadd.f32 %v2214_v30, %v2186_v38  ;;  %v2218_v50 = vadd.f32 %v2214_v30, %v2187_v33  ;;  %v2219_v7 = vadd.f32 %v2214_v30, %v2188_v62 }
 0x3d6   :  { %v2220_v15 = vadd.f32 %v2214_v30, %v2189_v5  ;;  %v2221_v44 = vadd.f32 %v2214_v30, %v2190_v18  ;;  %v2222_v23 = vadd.f32 %v2214_v30, %v2191_v22  ;;  %v2223_v32 = vadd.f32 %v2214_v30, %v2192_v28  ;;  %v4914_v28 = vld [vmem:[#allocation18_spill] sm:$0xff] }
 0x3d7   :  { %v2224_v60 = vmul.f32 10.0, %v2216_v35  ;;  %v2225_v58 = vmul.f32 10.0, %v2217_v0  ;;  %v2226_v59 = vmul.f32 10.0, %v2218_v50  ;;  %v2227_v54 = vmul.f32 10.0, %v2219_v7 }
 0x3d8   :  { %v2228_v4 = vmul.f32 10.0, %v2220_v15  ;;  %v2229_v49 = vmul.f32 10.0, %v2221_v44  ;;  %v2230_v34 = vmul.f32 10.0, %v2222_v23  ;;  %v2231_v27 = vmul.f32 10.0, %v2223_v32 }
 0x3d9   :  { %v2232_v52 = vadd.f32 %v2224_v60, %v3262_v42  ;;  %v2233_v46 = vadd.f32 %v2225_v58, %v3278_v19  ;;  %v2234_v45 = vadd.f32 %v2226_v59, %v3260_v1  ;;  %v2235_v41 = vadd.f32 %v2227_v54, %v3276_v25  ;;  %v4906_v42 = vld [vmem:[#allocation23_spill] sm:$0xff] }
 0x3da   :  { %v2236_v53 = vadd.f32 %v2228_v4, %v3228_v3  ;;  %v2237_v55 = vadd.f32 %v2229_v49, %v3236_v14  ;;  %v2238_v57 = vadd.f32 %v2230_v34, %v4905_v47  ;;  %v2239_v20 = vadd.f32 %v2231_v27, %v4906_v42 }
 0x3db   :  { %v2240_v56 = vmul.f32 1.442695, %v2232_v52  ;;  %v2242_v10 = vmul.f32 1.442695, %v2233_v46  ;;  %v2244_v31 = vmul.f32 1.442695, %v2234_v45 }
 0x3dc   :  { %v2246_v2 = vmul.f32 1.442695, %v2235_v41  ;;  %v2248_v39 = vmul.f32 1.442695, %v2236_v53  ;;  %v2250_v19 = vmul.f32 1.442695, %v2237_v55 }
 0x3dd   :  { %2804 = vpow2.f32 %v2240_v56  ;;  %v2252_v1 = vmul.f32 1.442695, %v2238_v57  ;;  %v2254_v3 = vmul.f32 1.442695, %v2239_v20 }
 0x3de   :  { %2806 = vpow2.f32 %v2242_v10 }
 0x3df   :  { %2808 = vpow2.f32 %v2244_v31 }
 0x3e0   :  { %2810 = vpow2.f32 %v2246_v2 }
 0x3e1   :  { %2812 = vpow2.f32 %v2248_v39 }
 0x3e2   :  { %2814 = vpow2.f32 %v2250_v19 }
 0x3e3   :  { %v2805_v25 = vpop.eup %2804  ;;  %2816 = vpow2.f32 %v2252_v1 }
 0x3e4   :  { %v2807_v14 = vpop.eup %2806  ;;  %v2256_v13 = vmul.f32 %v2805_v25, %v4907_v12  ;;  %2818 = vpow2.f32 %v2254_v3 }
 0x3e5   :  { %v2809_v11 = vpop.eup %2808  ;;  %v2257_v48 = vmul.f32 %v2807_v14, %v4908_v24 }
 0x3e6   :  { %v2811_v40 = vpop.eup %2810  ;;  %v2258_v17 = vmul.f32 %v2809_v11, %v4909_v61 }
 0x3e7   :  { %v2813_v29 = vpop.eup %2812  ;;  %v2259_v37 = vmul.f32 %v2811_v40, %v4910_v16  ;;  %v2264_v21 = vadd.f32 %v2257_v48, %v2256_v13 }
 0x3e8   :  { %v2815_v9 = vpop.eup %2814  ;;  %v2260_v26 = vmul.f32 %v2813_v29, %v4911_v43 }
 0x3e9   :  { %v2265_v38 = vadd.f32 %v2264_v21, %v2258_v17  ;;  %v2817_v51 = vpop.eup %2816  ;;  %v2261_v33 = vmul.f32 %v2815_v9, %v4912_v63 }
 0x3ea   :  { %v2819_v5 = vpop.eup %2818  ;;  %v2262_v18 = vmul.f32 %v2817_v51, %v4913_v6 }
 0x3eb   :  { %v2266_v62 = vadd.f32 %v2265_v38, %v2259_v37  ;;  %v2263_v36 = vmul.f32 %v2819_v5, %v4914_v28 }
 0x3ed   :  { %v2267_v22 = vadd.f32 %v2266_v62, %v2260_v26 }
 0x3ef   :  { %v2268_v8 = vadd.f32 %v2267_v22, %v2261_v33 }
 0x3f1   :  { %v2269_v30 = vadd.f32 %v2268_v8, %v2262_v18 }
 0x3f3   :  { %v2270_v35 = vadd.f32 %v2269_v30, %v2263_v36 }
 0x3f5   :  { %v2271_v0 = vrot.slane %v2270_v35, 4 }
 0x3f7   :  { %v2272_v50 = vadd.f32 %v2271_v0, %v2270_v35 }
 0x3f9   :  { %v2273_v7 = vrot.slane %v2272_v50, 2 }
 0x3fb   :  { %v2274_v15 = vadd.f32 %v2273_v7, %v2272_v50 }
 0x3fd   :  { %v2275_v44 = vrot.slane %v2274_v15, 1 }
 0x3ff   :  { %v2276_v23 = vadd.f32 %v2275_v44, %v2274_v15 }
 0x401   :  { %2277 = vst [vmem:[#allocation8] sm:$0x1] %v2276_v23 }
 0x402   :  { %2288 = dma.vmem_to_hbm [thread:$0]  %s2284_s18, 16, %s2286_s21, [#allocation5]  }
 0x403   :  { %2968 = dma.done.wait [#allocation5], 16  }
 0x404   :  { %2969 = vsyncadd [#allocation5], 4294967280 }
 0x405   :  { %2293 = vsyncpa [#allocation4], 1 }
 0x406   :  { %2294 = vsyncpa [#allocation7], 1 }
 0x407   :  { %2295 = vsyncpa [#allocation5], 1 }

</bundles_post_ra>
